<compile_context>
chip_gen: v7x
topology: tpu7x:2x2x1
jax: 0.10.0
libtpu: 0.0.40
codegen_flags: <defaults>
</compile_context>

<pallas_src>
import math

import jax
import jax.numpy as jnp
from jax.experimental import pallas as pl
from jax.experimental.pallas import tpu as pltpu


_VMEM_SPEC = pl.BlockSpec(memory_space=pltpu.MemorySpace.VMEM)


# ----------------------------- fused kernel --------------------------------

def make_fused_kernel(T, Bp, H_fe, dims):
    """Builds the fused MARK-LSTM forward kernel for static (T, Bp, dims)."""
    n_layers = len(dims)
    offs = [0]
    for d in dims:
        offs.append(offs[-1] + d)

    def lstm_scan(x_flat, lens, wih, whh, b, H, return_seq):
        """x_flat: (T*Bp, D_in) f32; wih/whh bf16; b (1,4H) f32.

        Returns list of T masked outputs (Bp,H) if return_seq else only the
        output at t=T-1 (zeroed for rows with length < T)."""
        # Hoisted input projection: one big matmul instead of T tiny ones.
        xg = jnp.dot(x_flat.astype(jnp.bfloat16), wih,
                     preferred_element_type=jnp.float32)          # (T*Bp, 4H)
        h = jnp.zeros((Bp, H), jnp.float32)
        c = jnp.zeros((Bp, H), jnp.float32)
        outs = []
        out_last = None
        for t in range(T):                                        # unrolled
            g = (xg[t * Bp:(t + 1) * Bp, :]
                 + jnp.dot(h.astype(jnp.bfloat16), whh,
                           preferred_element_type=jnp.float32)
                 + b)                                             # (Bp, 4H)
            # PyTorch gate order: i, f, g, o
            i_g = jax.nn.sigmoid(g[:, 0 * H:1 * H])
            f_g = jax.nn.sigmoid(g[:, 1 * H:2 * H])
            g_g = jnp.tanh(g[:, 2 * H:3 * H])
            o_g = jax.nn.sigmoid(g[:, 3 * H:4 * H])
            c_new = f_g * c + i_g * g_g
            h_new = o_g * jnp.tanh(c_new)
            valid = lens > t                                      # (Bp, 1)
            if return_seq:
                outs.append(jnp.where(valid, h_new, 0.0))         # packed-seq zeroing
            elif t == T - 1:
                out_last = jnp.where(valid, h_new, 0.0)
            # freeze recurrent state past sequence length
            h = jnp.where(valid, h_new, h)
            c = jnp.where(valid, c_new, c)
        return outs if return_seq else out_last

    def kernel(*refs):
        x_ref, len_ref = refs[0], refs[1]
        fe_wih_ref, fe_whh_ref, fe_b_ref = refs[2], refs[3], refs[4]
        mg_w_ref, mg_b_ref = refs[5], refs[6]
        kb_refs = []
        p = 7
        for _ in range(n_layers):
            kb_refs.append((refs[p], refs[p + 1], refs[p + 2]))
            p += 3
        kbc_w_ref, kbc_b_ref = refs[p], refs[p + 1]
        out_ref = refs[p + 2]

        lens = len_ref[...]                      # (Bp, 1) int32
        x_flat = x_ref[...]                      # (T*Bp, F) f32, time-major rows

        # -------- FeatExtractorLSTM: only last padded timestep is consumed ----
        x_fe = lstm_scan(x_flat, lens, fe_wih_ref[...], fe_whh_ref[...],
                         fe_b_ref[...], H_fe, return_seq=False)   # (Bp, H_fe)

        # -------- MaskGenerator: all masks in one concatenated matmul --------
        mg_all = (jnp.dot(x_fe.astype(jnp.bfloat16), mg_w_ref[...],
                          preferred_element_type=jnp.float32)
                  + mg_b_ref[...])                                # (Bp, sum(dims))

        # -------- LSTMKB stack with per-layer masks (fused mask multiply) ----
        cur = x_flat                                              # (T*Bp, D)
        x_kb = None
        for li, (wih_r, whh_r, b_r) in enumerate(kb_refs):
            H = dims[li]
            mask = mg_all[:, offs[li]:offs[li + 1]]               # (Bp, H)
            if li < n_layers - 1:
                seq = lstm_scan(cur, lens, wih_r[...], whh_r[...], b_r[...],
                                H, return_seq=True)
                cur = jnp.concatenate([o * mask for o in seq], axis=0)  # (T*Bp, H)
            else:
                last = lstm_scan(cur, lens, wih_r[...], whh_r[...], b_r[...],
                                 H, return_seq=False)             # (Bp, H)
                x_kb = last * mask

        # -------- KBLSTMClassifier: all 4 heads in one concatenated matmul ---
        out_ref[...] = (jnp.dot(x_kb.astype(jnp.bfloat16), kbc_w_ref[...],
                                preferred_element_type=jnp.float32)
                        + kbc_b_ref[...])

    return kernel


# --------------------------- parameter construction -------------------------

def init_lstm_params(key, din, h):
    """PyTorch nn.LSTM init: U(-1/sqrt(H), 1/sqrt(H)). Weights stored bf16 (MXU path)."""
    k = 1.0 / math.sqrt(h)
    k0, k1, k2, k3 = jax.random.split(key, 4)
    wih = jax.random.uniform(k0, (4 * h, din), jnp.float32, -k, k)
    whh = jax.random.uniform(k1, (4 * h, h), jnp.float32, -k, k)
    bih = jax.random.uniform(k2, (4 * h,), jnp.float32, -k, k)
    bhh = jax.random.uniform(k3, (4 * h,), jnp.float32, -k, k)
    return (wih.T.astype(jnp.bfloat16), whh.T.astype(jnp.bfloat16),
            (bih + bhh).reshape(1, 4 * h))


def init_linear_params(key, din, dout):
    """PyTorch nn.Linear init: U(-1/sqrt(Din), 1/sqrt(Din))."""
    k = 1.0 / math.sqrt(din)
    k0, k1 = jax.random.split(key)
    w = jax.random.uniform(k0, (dout, din), jnp.float32, -k, k)
    b = jax.random.uniform(k1, (dout,), jnp.float32, -k, k)
    return w.T, b


def init_mark_lstm(key, input_feat, fe_hidden, dimensions, num_classes,
                   num_tasks, num_labels=4):
    keys = jax.random.split(key, 4)
    # fes: one FeatExtractorLSTM per task
    fes = [init_lstm_params(k, input_feat, fe_hidden)
           for k in jax.random.split(keys[0], num_tasks)]
    # mgs: MaskGenerator per task -> concatenated (fe_hidden, sum(dims)) weight
    mgs = []
    for k in jax.random.split(keys[1], num_tasks):
        ws, bs = [], []
        for kk, d in zip(jax.random.split(k, len(dimensions)), dimensions):
            w, b = init_linear_params(kk, fe_hidden, d)
            ws.append(w)
            bs.append(b)
        mgs.append((jnp.concatenate(ws, axis=1).astype(jnp.bfloat16),
                    jnp.concatenate(bs).reshape(1, -1)))
    # kbcs: KBLSTMClassifier per task -> concatenated (dims[-1], 4*num_classes)
    kbcs = []
    for k in jax.random.split(keys[2], num_tasks):
        ws, bs = [], []
        for kk in jax.random.split(k, num_labels):
            w, b = init_linear_params(kk, dimensions[-1], num_classes)
            ws.append(w)
            bs.append(b)
        kbcs.append((jnp.concatenate(ws, axis=1).astype(jnp.bfloat16),
                     jnp.concatenate(bs).reshape(1, -1)))
    # kb: LSTMKB(28, DIMENSIONS) per task
    kb = []
    for k in jax.random.split(keys[3], num_tasks):
        layers, prev = [], 28
        for kk, d in zip(jax.random.split(k, len(dimensions)), dimensions):
            layers.append(init_lstm_params(kk, prev, d))
            prev = d
        kb.append(layers)
    # NOTE: fecs (FeatureExtractorLSTMClassifier) is never used in forward().
    return dict(fes=fes, mgs=mgs, kbcs=kbcs, kb=kb,
                num_labels=num_labels, num_classes=num_classes)


# --------------------------------- forward ----------------------------------

def mark_lstm_forward(params, X, lengths, task_id):
    """MARKLSTMModel.forward, baseline=0 / supsup=False path.

    X: (B, T, F) batch-first; lengths: (B,) int.
    Returns num_labels logits arrays, each (B, NUM_CLASSES)."""
    fe_wih, fe_whh, fe_b = params['fes'][task_id]
    mg_w, mg_b = params['mgs'][task_id]
    kbc_w, kbc_b = params['kbcs'][task_id]
    kb_layers = params['kb'][0]          # faithful to `self.kb[0](...)` in PyTorch
    num_labels = params['num_labels']
    num_classes = params['num_classes']

    B, T, F = X.shape
    H_fe = fe_whh.shape[0]
    dims = [whh.shape[0] for (_, whh, _) in kb_layers]
    num_out = kbc_w.shape[1]             # num_labels * num_classes

    # Pad batch to a multiple of 8 sublanes; padded rows get length 0 (masked).
    Bp = max(8, ((B + 7) // 8) * 8)
    x_tm = jnp.transpose(X.astype(jnp.float32), (1, 0, 2))            # (T, B, F)
    x_pad = jnp.zeros((T, Bp, F), jnp.float32).at[:, :B, :].set(x_tm)
    x_flat = x_pad.reshape(T * Bp, F)                                  # time-major rows
    lens = jnp.zeros((Bp, 1), jnp.int32).at[:B, 0].set(lengths.astype(jnp.int32))

    flat_params = [fe_wih, fe_whh, fe_b, mg_w, mg_b]
    for (wih, whh, b) in kb_layers:
        flat_params += [wih, whh, b]
    flat_params += [kbc_w, kbc_b]

    kernel = make_fused_kernel(T, Bp, H_fe, dims)
    out = pl.pallas_call(
        kernel,
        out_shape=jax.ShapeDtypeStruct((Bp, num_out), jnp.float32),
        in_specs=[_VMEM_SPEC] * (2 + len(flat_params)),
        out_specs=_VMEM_SPEC,
    )(x_flat, lens, *flat_params)

    return [out[:B, j * num_classes:(j + 1) * num_classes]
            for j in range(num_labels)]


# ------------------------- pure-JAX reference (check) ------------------------

def _ref_lstm(x_tm, lens, wih, whh, b):
    T, B, _ = x_tm.shape
    H = whh.shape[0]
    wih32, whh32 = wih.astype(jnp.float32), whh.astype(jnp.float32)
    h = jnp.zeros((B, H), jnp.float32)
    c = jnp.zeros((B, H), jnp.float32)
    outs = []
    for t in range(T):
        xt = x_tm[t].astype(jnp.bfloat16).astype(jnp.float32)
        hq = h.astype(jnp.bfloat16).astype(jnp.float32)
        g = xt @ wih32 + hq @ whh32 + b
        i = jax.nn.sigmoid(g[:, :H])
        f = jax.nn.sigmoid(g[:, H:2 * H])
        gg = jnp.tanh(g[:, 2 * H:3 * H])
        o = jax.nn.sigmoid(g[:, 3 * H:])
        c_new = f * c + i * gg
        h_new = o * jnp.tanh(c_new)
        valid = lens[:, None] > t
        outs.append(jnp.where(valid, h_new, 0.0))
        h = jnp.where(valid, h_new, h)
        c = jnp.where(valid, c_new, c)
    return outs


def mark_lstm_forward_ref(params, X, lengths, task_id):
    fe = params['fes'][task_id]
    mg_w, mg_b = params['mgs'][task_id]
    kbc_w, kbc_b = params['kbcs'][task_id]
    kb_layers = params['kb'][0]
    nl, nc = params['num_labels'], params['num_classes']
    x_tm = jnp.transpose(X.astype(jnp.float32), (1, 0, 2))
    lens = lengths.astype(jnp.int32)
    x_fe = _ref_lstm(x_tm, lens, *fe)[-1]
    mg_all = (x_fe.astype(jnp.bfloat16).astype(jnp.float32)
              @ mg_w.astype(jnp.float32) + mg_b)
    dims = [whh.shape[0] for (_, whh, _) in kb_layers]
    offs = [0]
    for d in dims:
        offs.append(offs[-1] + d)
    cur = x_tm
    for i, lp in enumerate(kb_layers):
        outs = _ref_lstm(cur, lens, *lp)
        mask = mg_all[:, offs[i]:offs[i + 1]]
        cur = jnp.stack([o * mask for o in outs], axis=0)
    x_kb = cur[-1]
    logits = (x_kb.astype(jnp.bfloat16).astype(jnp.float32)
              @ kbc_w.astype(jnp.float32) + kbc_b)
    return [logits[:, j * nc:(j + 1) * nc] for j in range(nl)]


# ----------------------------------- main ------------------------------------

if __name__ == "__main__":
    INPUT_FEAT_SIZE = 28          # must be 28 to match LSTMKB(28, DIMENSIONS)
    FE_HIDDEN = 32
    DIMENSIONS = [32, 32]
    NUM_CLASSES = 4
    NUM_TASKS = 2
    B, T = 2, 8

    key = jax.random.PRNGKey(0)
    pkey, xkey = jax.random.split(key)
    params = init_mark_lstm(pkey, INPUT_FEAT_SIZE, FE_HIDDEN, DIMENSIONS,
                            NUM_CLASSES, NUM_TASKS)

    X = jax.random.normal(xkey, (B, T, INPUT_FEAT_SIZE), jnp.float32)
    lengths = jnp.array([8, 6], dtype=jnp.int32)   # padded-sequence lengths

    logits = mark_lstm_forward(params, X, lengths, task_id=1)
    logits = [jax.block_until_ready(l) for l in logits]

    assert len(logits) == 4
    assert all(l.shape == (B, NUM_CLASSES) for l in logits)
    assert all(bool(jnp.all(jnp.isfinite(l))) for l in logits)

    # Cross-check against a pure-JAX reference of the same (bf16-weight) model.
    ref = mark_lstm_forward_ref(params, X, lengths, task_id=1)
    for got, want in zip(logits, ref):
        assert bool(jnp.allclose(got, want, atol=2e-2, rtol=2e-2)), \
            f"mismatch: max abs err {float(jnp.max(jnp.abs(got - want)))}"

    print("KERNEL_OK")
</pallas_src>

<mosaic_0001>
module attributes {stable_mosaic.version = 11 : i64} {
  func.func @kernel(%arg0: memref<64x28xf32, #tpu.memory_space<vmem>>, %arg1: memref<8x1xi32, #tpu.memory_space<vmem>>, %arg2: memref<28x128xbf16, #tpu.memory_space<vmem>>, %arg3: memref<32x128xbf16, #tpu.memory_space<vmem>>, %arg4: memref<1x128xf32, #tpu.memory_space<vmem>>, %arg5: memref<32x64xbf16, #tpu.memory_space<vmem>>, %arg6: memref<1x64xf32, #tpu.memory_space<vmem>>, %arg7: memref<28x128xbf16, #tpu.memory_space<vmem>>, %arg8: memref<32x128xbf16, #tpu.memory_space<vmem>>, %arg9: memref<1x128xf32, #tpu.memory_space<vmem>>, %arg10: memref<32x128xbf16, #tpu.memory_space<vmem>>, %arg11: memref<32x128xbf16, #tpu.memory_space<vmem>>, %arg12: memref<1x128xf32, #tpu.memory_space<vmem>>, %arg13: memref<32x16xbf16, #tpu.memory_space<vmem>>, %arg14: memref<1x16xf32, #tpu.memory_space<vmem>>, %arg15: memref<8x16xf32, #tpu.memory_space<vmem>>) attributes {dimension_semantics = [], scalar_prefetch = 0 : i64, scratch_operands = 0 : i64, tpu.core_type = #tpu.core_type<tc>} {
    %c0 = arith.constant 0 : index
    %c0_0 = arith.constant 0 : index
    %0 = vector.load %arg1[%c0, %c0_0] : memref<8x1xi32, #tpu.memory_space<vmem>>, vector<8x1xi32>
    %c0_1 = arith.constant 0 : index
    %c0_2 = arith.constant 0 : index
    %1 = vector.load %arg0[%c0_1, %c0_2] : memref<64x28xf32, #tpu.memory_space<vmem>>, vector<64x28xf32>
    %c0_3 = arith.constant 0 : index
    %c0_4 = arith.constant 0 : index
    %2 = vector.load %arg2[%c0_3, %c0_4] : memref<28x128xbf16, #tpu.memory_space<vmem>>, vector<28x128xbf16>
    %c0_5 = arith.constant 0 : index
    %c0_6 = arith.constant 0 : index
    %3 = vector.load %arg3[%c0_5, %c0_6] : memref<32x128xbf16, #tpu.memory_space<vmem>>, vector<32x128xbf16>
    %c0_7 = arith.constant 0 : index
    %c0_8 = arith.constant 0 : index
    %4 = vector.load %arg4[%c0_7, %c0_8] : memref<1x128xf32, #tpu.memory_space<vmem>>, vector<1x128xf32>
    %5 = arith.truncf %1 : vector<64x28xf32> to vector<64x28xbf16>
    %cst = arith.constant dense<0.000000e+00> : vector<64x128xf32>
    %6 = tpu.matmul %5, %2, %cst {dimension_numbers = #tpu.dot_dimension_numbers<[1], [0], [0], [1], [0, 0, 1, 1], [], []>} : vector<64x28xbf16>, vector<28x128xbf16>, vector<64x128xf32> -> vector<64x128xf32>
    %cst_9 = arith.constant 0.000000e+00 : f32
    %7 = vector.broadcast %cst_9 : f32 to vector<8x32xf32>
    %cst_10 = arith.constant 0.000000e+00 : f32
    %8 = vector.broadcast %cst_10 : f32 to vector<8x32xf32>
    %9 = vector.extract_strided_slice %6 {offsets = [0, 0], sizes = [8, 128], strides = [1, 1]} : vector<64x128xf32> to vector<8x128xf32>
    %10 = arith.truncf %7 : vector<8x32xf32> to vector<8x32xbf16>
    %cst_11 = arith.constant dense<0.000000e+00> : vector<8x128xf32>
    %11 = tpu.matmul %10, %3, %cst_11 {dimension_numbers = #tpu.dot_dimension_numbers<[1], [0], [0], [1], [0, 0, 1, 1], [], []>} : vector<8x32xbf16>, vector<32x128xbf16>, vector<8x128xf32> -> vector<8x128xf32>
    %12 = arith.addf %9, %11 : vector<8x128xf32>
    %13 = vector.broadcast %4 : vector<1x128xf32> to vector<8x128xf32>
    %14 = arith.addf %12, %13 : vector<8x128xf32>
    %15 = vector.extract_strided_slice %14 {offsets = [0, 0], sizes = [8, 32], strides = [1, 1]} : vector<8x128xf32> to vector<8x32xf32>
    %16 = arith.negf %15 : vector<8x32xf32>
    %17 = math.exp %16 : vector<8x32xf32>
    %cst_12 = arith.constant 1.000000e+00 : f32
    %18 = vector.broadcast %cst_12 : f32 to vector<8x32xf32>
    %19 = arith.addf %18, %17 : vector<8x32xf32>
    %20 = arith.divf %18, %19 : vector<8x32xf32>
    %21 = vector.extract_strided_slice %14 {offsets = [0, 32], sizes = [8, 32], strides = [1, 1]} : vector<8x128xf32> to vector<8x32xf32>
    %22 = arith.negf %21 : vector<8x32xf32>
    %23 = math.exp %22 : vector<8x32xf32>
    %cst_13 = arith.constant 1.000000e+00 : f32
    %24 = vector.broadcast %cst_13 : f32 to vector<8x32xf32>
    %25 = arith.addf %24, %23 : vector<8x32xf32>
    %26 = arith.divf %24, %25 : vector<8x32xf32>
    %27 = vector.extract_strided_slice %14 {offsets = [0, 64], sizes = [8, 32], strides = [1, 1]} : vector<8x128xf32> to vector<8x32xf32>
    %28 = math.tanh %27 : vector<8x32xf32>
    %29 = vector.extract_strided_slice %14 {offsets = [0, 96], sizes = [8, 32], strides = [1, 1]} : vector<8x128xf32> to vector<8x32xf32>
    %30 = arith.negf %29 : vector<8x32xf32>
    %31 = math.exp %30 : vector<8x32xf32>
    %cst_14 = arith.constant 1.000000e+00 : f32
    %32 = vector.broadcast %cst_14 : f32 to vector<8x32xf32>
    %33 = arith.addf %32, %31 : vector<8x32xf32>
    %34 = arith.divf %32, %33 : vector<8x32xf32>
    %35 = arith.mulf %26, %8 : vector<8x32xf32>
    %36 = arith.mulf %20, %28 : vector<8x32xf32>
    %37 = arith.addf %35, %36 : vector<8x32xf32>
    %38 = math.tanh %37 : vector<8x32xf32>
    %39 = arith.mulf %34, %38 : vector<8x32xf32>
    %c0_i32 = arith.constant 0 : i32
    %40 = vector.broadcast %c0_i32 : i32 to vector<8x1xi32>
    %41 = arith.cmpi sgt, %0, %40 : vector<8x1xi32>
    %42 = vector.shape_cast %41 : vector<8x1xi1> to vector<8x1xi1>
    %43 = vector.broadcast %42 : vector<8x1xi1> to vector<8x32xi1>
    %44 = arith.select %43, %39, %7 : vector<8x32xi1>, vector<8x32xf32>
    %45 = vector.shape_cast %41 : vector<8x1xi1> to vector<8x1xi1>
    %46 = vector.broadcast %45 : vector<8x1xi1> to vector<8x32xi1>
    %47 = arith.select %46, %37, %8 : vector<8x32xi1>, vector<8x32xf32>
    %48 = vector.extract_strided_slice %6 {offsets = [8, 0], sizes = [8, 128], strides = [1, 1]} : vector<64x128xf32> to vector<8x128xf32>
    %49 = arith.truncf %44 : vector<8x32xf32> to vector<8x32xbf16>
    %cst_15 = arith.constant dense<0.000000e+00> : vector<8x128xf32>
    %50 = tpu.matmul %49, %3, %cst_15 {dimension_numbers = #tpu.dot_dimension_numbers<[1], [0], [0], [1], [0, 0, 1, 1], [], []>} : vector<8x32xbf16>, vector<32x128xbf16>, vector<8x128xf32> -> vector<8x128xf32>
    %51 = arith.addf %48, %50 : vector<8x128xf32>
    %52 = vector.broadcast %4 : vector<1x128xf32> to vector<8x128xf32>
    %53 = arith.addf %51, %52 : vector<8x128xf32>
    %54 = vector.extract_strided_slice %53 {offsets = [0, 0], sizes = [8, 32], strides = [1, 1]} : vector<8x128xf32> to vector<8x32xf32>
    %55 = arith.negf %54 : vector<8x32xf32>
    %56 = math.exp %55 : vector<8x32xf32>
    %cst_16 = arith.constant 1.000000e+00 : f32
    %57 = vector.broadcast %cst_16 : f32 to vector<8x32xf32>
    %58 = arith.addf %57, %56 : vector<8x32xf32>
    %59 = arith.divf %57, %58 : vector<8x32xf32>
    %60 = vector.extract_strided_slice %53 {offsets = [0, 32], sizes = [8, 32], strides = [1, 1]} : vector<8x128xf32> to vector<8x32xf32>
    %61 = arith.negf %60 : vector<8x32xf32>
    %62 = math.exp %61 : vector<8x32xf32>
    %cst_17 = arith.constant 1.000000e+00 : f32
    %63 = vector.broadcast %cst_17 : f32 to vector<8x32xf32>
    %64 = arith.addf %63, %62 : vector<8x32xf32>
    %65 = arith.divf %63, %64 : vector<8x32xf32>
    %66 = vector.extract_strided_slice %53 {offsets = [0, 64], sizes = [8, 32], strides = [1, 1]} : vector<8x128xf32> to vector<8x32xf32>
    %67 = math.tanh %66 : vector<8x32xf32>
    %68 = vector.extract_strided_slice %53 {offsets = [0, 96], sizes = [8, 32], strides = [1, 1]} : vector<8x128xf32> to vector<8x32xf32>
    %69 = arith.negf %68 : vector<8x32xf32>
    %70 = math.exp %69 : vector<8x32xf32>
    %cst_18 = arith.constant 1.000000e+00 : f32
    %71 = vector.broadcast %cst_18 : f32 to vector<8x32xf32>
    %72 = arith.addf %71, %70 : vector<8x32xf32>
    %73 = arith.divf %71, %72 : vector<8x32xf32>
    %74 = arith.mulf %65, %47 : vector<8x32xf32>
    %75 = arith.mulf %59, %67 : vector<8x32xf32>
    %76 = arith.addf %74, %75 : vector<8x32xf32>
    %77 = math.tanh %76 : vector<8x32xf32>
    %78 = arith.mulf %73, %77 : vector<8x32xf32>
    %c1_i32 = arith.constant 1 : i32
    %79 = vector.broadcast %c1_i32 : i32 to vector<8x1xi32>
    %80 = arith.cmpi sgt, %0, %79 : vector<8x1xi32>
    %81 = vector.shape_cast %80 : vector<8x1xi1> to vector<8x1xi1>
    %82 = vector.broadcast %81 : vector<8x1xi1> to vector<8x32xi1>
    %83 = arith.select %82, %78, %44 : vector<8x32xi1>, vector<8x32xf32>
    %84 = vector.shape_cast %80 : vector<8x1xi1> to vector<8x1xi1>
    %85 = vector.broadcast %84 : vector<8x1xi1> to vector<8x32xi1>
    %86 = arith.select %85, %76, %47 : vector<8x32xi1>, vector<8x32xf32>
    %87 = vector.extract_strided_slice %6 {offsets = [16, 0], sizes = [8, 128], strides = [1, 1]} : vector<64x128xf32> to vector<8x128xf32>
    %88 = arith.truncf %83 : vector<8x32xf32> to vector<8x32xbf16>
    %cst_19 = arith.constant dense<0.000000e+00> : vector<8x128xf32>
    %89 = tpu.matmul %88, %3, %cst_19 {dimension_numbers = #tpu.dot_dimension_numbers<[1], [0], [0], [1], [0, 0, 1, 1], [], []>} : vector<8x32xbf16>, vector<32x128xbf16>, vector<8x128xf32> -> vector<8x128xf32>
    %90 = arith.addf %87, %89 : vector<8x128xf32>
    %91 = vector.broadcast %4 : vector<1x128xf32> to vector<8x128xf32>
    %92 = arith.addf %90, %91 : vector<8x128xf32>
    %93 = vector.extract_strided_slice %92 {offsets = [0, 0], sizes = [8, 32], strides = [1, 1]} : vector<8x128xf32> to vector<8x32xf32>
    %94 = arith.negf %93 : vector<8x32xf32>
    %95 = math.exp %94 : vector<8x32xf32>
    %cst_20 = arith.constant 1.000000e+00 : f32
    %96 = vector.broadcast %cst_20 : f32 to vector<8x32xf32>
    %97 = arith.addf %96, %95 : vector<8x32xf32>
    %98 = arith.divf %96, %97 : vector<8x32xf32>
    %99 = vector.extract_strided_slice %92 {offsets = [0, 32], sizes = [8, 32], strides = [1, 1]} : vector<8x128xf32> to vector<8x32xf32>
    %100 = arith.negf %99 : vector<8x32xf32>
    %101 = math.exp %100 : vector<8x32xf32>
    %cst_21 = arith.constant 1.000000e+00 : f32
    %102 = vector.broadcast %cst_21 : f32 to vector<8x32xf32>
    %103 = arith.addf %102, %101 : vector<8x32xf32>
    %104 = arith.divf %102, %103 : vector<8x32xf32>
    %105 = vector.extract_strided_slice %92 {offsets = [0, 64], sizes = [8, 32], strides = [1, 1]} : vector<8x128xf32> to vector<8x32xf32>
    %106 = math.tanh %105 : vector<8x32xf32>
    %107 = vector.extract_strided_slice %92 {offsets = [0, 96], sizes = [8, 32], strides = [1, 1]} : vector<8x128xf32> to vector<8x32xf32>
    %108 = arith.negf %107 : vector<8x32xf32>
    %109 = math.exp %108 : vector<8x32xf32>
    %cst_22 = arith.constant 1.000000e+00 : f32
    %110 = vector.broadcast %cst_22 : f32 to vector<8x32xf32>
    %111 = arith.addf %110, %109 : vector<8x32xf32>
    %112 = arith.divf %110, %111 : vector<8x32xf32>
    %113 = arith.mulf %104, %86 : vector<8x32xf32>
    %114 = arith.mulf %98, %106 : vector<8x32xf32>
    %115 = arith.addf %113, %114 : vector<8x32xf32>
    %116 = math.tanh %115 : vector<8x32xf32>
    %117 = arith.mulf %112, %116 : vector<8x32xf32>
    %c2_i32 = arith.constant 2 : i32
    %118 = vector.broadcast %c2_i32 : i32 to vector<8x1xi32>
    %119 = arith.cmpi sgt, %0, %118 : vector<8x1xi32>
    %120 = vector.shape_cast %119 : vector<8x1xi1> to vector<8x1xi1>
    %121 = vector.broadcast %120 : vector<8x1xi1> to vector<8x32xi1>
    %122 = arith.select %121, %117, %83 : vector<8x32xi1>, vector<8x32xf32>
    %123 = vector.shape_cast %119 : vector<8x1xi1> to vector<8x1xi1>
    %124 = vector.broadcast %123 : vector<8x1xi1> to vector<8x32xi1>
    %125 = arith.select %124, %115, %86 : vector<8x32xi1>, vector<8x32xf32>
    %126 = vector.extract_strided_slice %6 {offsets = [24, 0], sizes = [8, 128], strides = [1, 1]} : vector<64x128xf32> to vector<8x128xf32>
    %127 = arith.truncf %122 : vector<8x32xf32> to vector<8x32xbf16>
    %cst_23 = arith.constant dense<0.000000e+00> : vector<8x128xf32>
    %128 = tpu.matmul %127, %3, %cst_23 {dimension_numbers = #tpu.dot_dimension_numbers<[1], [0], [0], [1], [0, 0, 1, 1], [], []>} : vector<8x32xbf16>, vector<32x128xbf16>, vector<8x128xf32> -> vector<8x128xf32>
    %129 = arith.addf %126, %128 : vector<8x128xf32>
    %130 = vector.broadcast %4 : vector<1x128xf32> to vector<8x128xf32>
    %131 = arith.addf %129, %130 : vector<8x128xf32>
    %132 = vector.extract_strided_slice %131 {offsets = [0, 0], sizes = [8, 32], strides = [1, 1]} : vector<8x128xf32> to vector<8x32xf32>
    %133 = arith.negf %132 : vector<8x32xf32>
    %134 = math.exp %133 : vector<8x32xf32>
    %cst_24 = arith.constant 1.000000e+00 : f32
    %135 = vector.broadcast %cst_24 : f32 to vector<8x32xf32>
    %136 = arith.addf %135, %134 : vector<8x32xf32>
    %137 = arith.divf %135, %136 : vector<8x32xf32>
    %138 = vector.extract_strided_slice %131 {offsets = [0, 32], sizes = [8, 32], strides = [1, 1]} : vector<8x128xf32> to vector<8x32xf32>
    %139 = arith.negf %138 : vector<8x32xf32>
    %140 = math.exp %139 : vector<8x32xf32>
    %cst_25 = arith.constant 1.000000e+00 : f32
    %141 = vector.broadcast %cst_25 : f32 to vector<8x32xf32>
    %142 = arith.addf %141, %140 : vector<8x32xf32>
    %143 = arith.divf %141, %142 : vector<8x32xf32>
    %144 = vector.extract_strided_slice %131 {offsets = [0, 64], sizes = [8, 32], strides = [1, 1]} : vector<8x128xf32> to vector<8x32xf32>
    %145 = math.tanh %144 : vector<8x32xf32>
    %146 = vector.extract_strided_slice %131 {offsets = [0, 96], sizes = [8, 32], strides = [1, 1]} : vector<8x128xf32> to vector<8x32xf32>
    %147 = arith.negf %146 : vector<8x32xf32>
    %148 = math.exp %147 : vector<8x32xf32>
    %cst_26 = arith.constant 1.000000e+00 : f32
    %149 = vector.broadcast %cst_26 : f32 to vector<8x32xf32>
    %150 = arith.addf %149, %148 : vector<8x32xf32>
    %151 = arith.divf %149, %150 : vector<8x32xf32>
    %152 = arith.mulf %143, %125 : vector<8x32xf32>
    %153 = arith.mulf %137, %145 : vector<8x32xf32>
    %154 = arith.addf %152, %153 : vector<8x32xf32>
    %155 = math.tanh %154 : vector<8x32xf32>
    %156 = arith.mulf %151, %155 : vector<8x32xf32>
    %c3_i32 = arith.constant 3 : i32
    %157 = vector.broadcast %c3_i32 : i32 to vector<8x1xi32>
    %158 = arith.cmpi sgt, %0, %157 : vector<8x1xi32>
    %159 = vector.shape_cast %158 : vector<8x1xi1> to vector<8x1xi1>
    %160 = vector.broadcast %159 : vector<8x1xi1> to vector<8x32xi1>
    %161 = arith.select %160, %156, %122 : vector<8x32xi1>, vector<8x32xf32>
    %162 = vector.shape_cast %158 : vector<8x1xi1> to vector<8x1xi1>
    %163 = vector.broadcast %162 : vector<8x1xi1> to vector<8x32xi1>
    %164 = arith.select %163, %154, %125 : vector<8x32xi1>, vector<8x32xf32>
    %165 = vector.extract_strided_slice %6 {offsets = [32, 0], sizes = [8, 128], strides = [1, 1]} : vector<64x128xf32> to vector<8x128xf32>
    %166 = arith.truncf %161 : vector<8x32xf32> to vector<8x32xbf16>
    %cst_27 = arith.constant dense<0.000000e+00> : vector<8x128xf32>
    %167 = tpu.matmul %166, %3, %cst_27 {dimension_numbers = #tpu.dot_dimension_numbers<[1], [0], [0], [1], [0, 0, 1, 1], [], []>} : vector<8x32xbf16>, vector<32x128xbf16>, vector<8x128xf32> -> vector<8x128xf32>
    %168 = arith.addf %165, %167 : vector<8x128xf32>
    %169 = vector.broadcast %4 : vector<1x128xf32> to vector<8x128xf32>
    %170 = arith.addf %168, %169 : vector<8x128xf32>
    %171 = vector.extract_strided_slice %170 {offsets = [0, 0], sizes = [8, 32], strides = [1, 1]} : vector<8x128xf32> to vector<8x32xf32>
    %172 = arith.negf %171 : vector<8x32xf32>
    %173 = math.exp %172 : vector<8x32xf32>
    %cst_28 = arith.constant 1.000000e+00 : f32
    %174 = vector.broadcast %cst_28 : f32 to vector<8x32xf32>
    %175 = arith.addf %174, %173 : vector<8x32xf32>
    %176 = arith.divf %174, %175 : vector<8x32xf32>
    %177 = vector.extract_strided_slice %170 {offsets = [0, 32], sizes = [8, 32], strides = [1, 1]} : vector<8x128xf32> to vector<8x32xf32>
    %178 = arith.negf %177 : vector<8x32xf32>
    %179 = math.exp %178 : vector<8x32xf32>
    %cst_29 = arith.constant 1.000000e+00 : f32
    %180 = vector.broadcast %cst_29 : f32 to vector<8x32xf32>
    %181 = arith.addf %180, %179 : vector<8x32xf32>
    %182 = arith.divf %180, %181 : vector<8x32xf32>
    %183 = vector.extract_strided_slice %170 {offsets = [0, 64], sizes = [8, 32], strides = [1, 1]} : vector<8x128xf32> to vector<8x32xf32>
    %184 = math.tanh %183 : vector<8x32xf32>
    %185 = vector.extract_strided_slice %170 {offsets = [0, 96], sizes = [8, 32], strides = [1, 1]} : vector<8x128xf32> to vector<8x32xf32>
    %186 = arith.negf %185 : vector<8x32xf32>
    %187 = math.exp %186 : vector<8x32xf32>
    %cst_30 = arith.constant 1.000000e+00 : f32
    %188 = vector.broadcast %cst_30 : f32 to vector<8x32xf32>
    %189 = arith.addf %188, %187 : vector<8x32xf32>
    %190 = arith.divf %188, %189 : vector<8x32xf32>
    %191 = arith.mulf %182, %164 : vector<8x32xf32>
    %192 = arith.mulf %176, %184 : vector<8x32xf32>
    %193 = arith.addf %191, %192 : vector<8x32xf32>
    %194 = math.tanh %193 : vector<8x32xf32>
    %195 = arith.mulf %190, %194 : vector<8x32xf32>
    %c4_i32 = arith.constant 4 : i32
    %196 = vector.broadcast %c4_i32 : i32 to vector<8x1xi32>
    %197 = arith.cmpi sgt, %0, %196 : vector<8x1xi32>
    %198 = vector.shape_cast %197 : vector<8x1xi1> to vector<8x1xi1>
    %199 = vector.broadcast %198 : vector<8x1xi1> to vector<8x32xi1>
    %200 = arith.select %199, %195, %161 : vector<8x32xi1>, vector<8x32xf32>
    %201 = vector.shape_cast %197 : vector<8x1xi1> to vector<8x1xi1>
    %202 = vector.broadcast %201 : vector<8x1xi1> to vector<8x32xi1>
    %203 = arith.select %202, %193, %164 : vector<8x32xi1>, vector<8x32xf32>
    %204 = vector.extract_strided_slice %6 {offsets = [40, 0], sizes = [8, 128], strides = [1, 1]} : vector<64x128xf32> to vector<8x128xf32>
    %205 = arith.truncf %200 : vector<8x32xf32> to vector<8x32xbf16>
    %cst_31 = arith.constant dense<0.000000e+00> : vector<8x128xf32>
    %206 = tpu.matmul %205, %3, %cst_31 {dimension_numbers = #tpu.dot_dimension_numbers<[1], [0], [0], [1], [0, 0, 1, 1], [], []>} : vector<8x32xbf16>, vector<32x128xbf16>, vector<8x128xf32> -> vector<8x128xf32>
    %207 = arith.addf %204, %206 : vector<8x128xf32>
    %208 = vector.broadcast %4 : vector<1x128xf32> to vector<8x128xf32>
    %209 = arith.addf %207, %208 : vector<8x128xf32>
    %210 = vector.extract_strided_slice %209 {offsets = [0, 0], sizes = [8, 32], strides = [1, 1]} : vector<8x128xf32> to vector<8x32xf32>
    %211 = arith.negf %210 : vector<8x32xf32>
    %212 = math.exp %211 : vector<8x32xf32>
    %cst_32 = arith.constant 1.000000e+00 : f32
    %213 = vector.broadcast %cst_32 : f32 to vector<8x32xf32>
    %214 = arith.addf %213, %212 : vector<8x32xf32>
    %215 = arith.divf %213, %214 : vector<8x32xf32>
    %216 = vector.extract_strided_slice %209 {offsets = [0, 32], sizes = [8, 32], strides = [1, 1]} : vector<8x128xf32> to vector<8x32xf32>
    %217 = arith.negf %216 : vector<8x32xf32>
    %218 = math.exp %217 : vector<8x32xf32>
    %cst_33 = arith.constant 1.000000e+00 : f32
    %219 = vector.broadcast %cst_33 : f32 to vector<8x32xf32>
    %220 = arith.addf %219, %218 : vector<8x32xf32>
    %221 = arith.divf %219, %220 : vector<8x32xf32>
    %222 = vector.extract_strided_slice %209 {offsets = [0, 64], sizes = [8, 32], strides = [1, 1]} : vector<8x128xf32> to vector<8x32xf32>
    %223 = math.tanh %222 : vector<8x32xf32>
    %224 = vector.extract_strided_slice %209 {offsets = [0, 96], sizes = [8, 32], strides = [1, 1]} : vector<8x128xf32> to vector<8x32xf32>
    %225 = arith.negf %224 : vector<8x32xf32>
    %226 = math.exp %225 : vector<8x32xf32>
    %cst_34 = arith.constant 1.000000e+00 : f32
    %227 = vector.broadcast %cst_34 : f32 to vector<8x32xf32>
    %228 = arith.addf %227, %226 : vector<8x32xf32>
    %229 = arith.divf %227, %228 : vector<8x32xf32>
    %230 = arith.mulf %221, %203 : vector<8x32xf32>
    %231 = arith.mulf %215, %223 : vector<8x32xf32>
    %232 = arith.addf %230, %231 : vector<8x32xf32>
    %233 = math.tanh %232 : vector<8x32xf32>
    %234 = arith.mulf %229, %233 : vector<8x32xf32>
    %c5_i32 = arith.constant 5 : i32
    %235 = vector.broadcast %c5_i32 : i32 to vector<8x1xi32>
    %236 = arith.cmpi sgt, %0, %235 : vector<8x1xi32>
    %237 = vector.shape_cast %236 : vector<8x1xi1> to vector<8x1xi1>
    %238 = vector.broadcast %237 : vector<8x1xi1> to vector<8x32xi1>
    %239 = arith.select %238, %234, %200 : vector<8x32xi1>, vector<8x32xf32>
    %240 = vector.shape_cast %236 : vector<8x1xi1> to vector<8x1xi1>
    %241 = vector.broadcast %240 : vector<8x1xi1> to vector<8x32xi1>
    %242 = arith.select %241, %232, %203 : vector<8x32xi1>, vector<8x32xf32>
    %243 = vector.extract_strided_slice %6 {offsets = [48, 0], sizes = [8, 128], strides = [1, 1]} : vector<64x128xf32> to vector<8x128xf32>
    %244 = arith.truncf %239 : vector<8x32xf32> to vector<8x32xbf16>
    %cst_35 = arith.constant dense<0.000000e+00> : vector<8x128xf32>
    %245 = tpu.matmul %244, %3, %cst_35 {dimension_numbers = #tpu.dot_dimension_numbers<[1], [0], [0], [1], [0, 0, 1, 1], [], []>} : vector<8x32xbf16>, vector<32x128xbf16>, vector<8x128xf32> -> vector<8x128xf32>
    %246 = arith.addf %243, %245 : vector<8x128xf32>
    %247 = vector.broadcast %4 : vector<1x128xf32> to vector<8x128xf32>
    %248 = arith.addf %246, %247 : vector<8x128xf32>
    %249 = vector.extract_strided_slice %248 {offsets = [0, 0], sizes = [8, 32], strides = [1, 1]} : vector<8x128xf32> to vector<8x32xf32>
    %250 = arith.negf %249 : vector<8x32xf32>
    %251 = math.exp %250 : vector<8x32xf32>
    %cst_36 = arith.constant 1.000000e+00 : f32
    %252 = vector.broadcast %cst_36 : f32 to vector<8x32xf32>
    %253 = arith.addf %252, %251 : vector<8x32xf32>
    %254 = arith.divf %252, %253 : vector<8x32xf32>
    %255 = vector.extract_strided_slice %248 {offsets = [0, 32], sizes = [8, 32], strides = [1, 1]} : vector<8x128xf32> to vector<8x32xf32>
    %256 = arith.negf %255 : vector<8x32xf32>
    %257 = math.exp %256 : vector<8x32xf32>
    %cst_37 = arith.constant 1.000000e+00 : f32
    %258 = vector.broadcast %cst_37 : f32 to vector<8x32xf32>
    %259 = arith.addf %258, %257 : vector<8x32xf32>
    %260 = arith.divf %258, %259 : vector<8x32xf32>
    %261 = vector.extract_strided_slice %248 {offsets = [0, 64], sizes = [8, 32], strides = [1, 1]} : vector<8x128xf32> to vector<8x32xf32>
    %262 = math.tanh %261 : vector<8x32xf32>
    %263 = vector.extract_strided_slice %248 {offsets = [0, 96], sizes = [8, 32], strides = [1, 1]} : vector<8x128xf32> to vector<8x32xf32>
    %264 = arith.negf %263 : vector<8x32xf32>
    %265 = math.exp %264 : vector<8x32xf32>
    %cst_38 = arith.constant 1.000000e+00 : f32
    %266 = vector.broadcast %cst_38 : f32 to vector<8x32xf32>
    %267 = arith.addf %266, %265 : vector<8x32xf32>
    %268 = arith.divf %266, %267 : vector<8x32xf32>
    %269 = arith.mulf %260, %242 : vector<8x32xf32>
    %270 = arith.mulf %254, %262 : vector<8x32xf32>
    %271 = arith.addf %269, %270 : vector<8x32xf32>
    %272 = math.tanh %271 : vector<8x32xf32>
    %273 = arith.mulf %268, %272 : vector<8x32xf32>
    %c6_i32 = arith.constant 6 : i32
    %274 = vector.broadcast %c6_i32 : i32 to vector<8x1xi32>
    %275 = arith.cmpi sgt, %0, %274 : vector<8x1xi32>
    %276 = vector.shape_cast %275 : vector<8x1xi1> to vector<8x1xi1>
    %277 = vector.broadcast %276 : vector<8x1xi1> to vector<8x32xi1>
    %278 = arith.select %277, %273, %239 : vector<8x32xi1>, vector<8x32xf32>
    %279 = vector.shape_cast %275 : vector<8x1xi1> to vector<8x1xi1>
    %280 = vector.broadcast %279 : vector<8x1xi1> to vector<8x32xi1>
    %281 = arith.select %280, %271, %242 : vector<8x32xi1>, vector<8x32xf32>
    %282 = vector.extract_strided_slice %6 {offsets = [56, 0], sizes = [8, 128], strides = [1, 1]} : vector<64x128xf32> to vector<8x128xf32>
    %283 = arith.truncf %278 : vector<8x32xf32> to vector<8x32xbf16>
    %cst_39 = arith.constant dense<0.000000e+00> : vector<8x128xf32>
    %284 = tpu.matmul %283, %3, %cst_39 {dimension_numbers = #tpu.dot_dimension_numbers<[1], [0], [0], [1], [0, 0, 1, 1], [], []>} : vector<8x32xbf16>, vector<32x128xbf16>, vector<8x128xf32> -> vector<8x128xf32>
    %285 = arith.addf %282, %284 : vector<8x128xf32>
    %286 = vector.broadcast %4 : vector<1x128xf32> to vector<8x128xf32>
    %287 = arith.addf %285, %286 : vector<8x128xf32>
    %288 = vector.extract_strided_slice %287 {offsets = [0, 0], sizes = [8, 32], strides = [1, 1]} : vector<8x128xf32> to vector<8x32xf32>
    %289 = arith.negf %288 : vector<8x32xf32>
    %290 = math.exp %289 : vector<8x32xf32>
    %cst_40 = arith.constant 1.000000e+00 : f32
    %291 = vector.broadcast %cst_40 : f32 to vector<8x32xf32>
    %292 = arith.addf %291, %290 : vector<8x32xf32>
    %293 = arith.divf %291, %292 : vector<8x32xf32>
    %294 = vector.extract_strided_slice %287 {offsets = [0, 32], sizes = [8, 32], strides = [1, 1]} : vector<8x128xf32> to vector<8x32xf32>
    %295 = arith.negf %294 : vector<8x32xf32>
    %296 = math.exp %295 : vector<8x32xf32>
    %cst_41 = arith.constant 1.000000e+00 : f32
    %297 = vector.broadcast %cst_41 : f32 to vector<8x32xf32>
    %298 = arith.addf %297, %296 : vector<8x32xf32>
    %299 = arith.divf %297, %298 : vector<8x32xf32>
    %300 = vector.extract_strided_slice %287 {offsets = [0, 64], sizes = [8, 32], strides = [1, 1]} : vector<8x128xf32> to vector<8x32xf32>
    %301 = math.tanh %300 : vector<8x32xf32>
    %302 = vector.extract_strided_slice %287 {offsets = [0, 96], sizes = [8, 32], strides = [1, 1]} : vector<8x128xf32> to vector<8x32xf32>
    %303 = arith.negf %302 : vector<8x32xf32>
    %304 = math.exp %303 : vector<8x32xf32>
    %cst_42 = arith.constant 1.000000e+00 : f32
    %305 = vector.broadcast %cst_42 : f32 to vector<8x32xf32>
    %306 = arith.addf %305, %304 : vector<8x32xf32>
    %307 = arith.divf %305, %306 : vector<8x32xf32>
    %308 = arith.mulf %299, %281 : vector<8x32xf32>
    %309 = arith.mulf %293, %301 : vector<8x32xf32>
    %310 = arith.addf %308, %309 : vector<8x32xf32>
    %311 = math.tanh %310 : vector<8x32xf32>
    %312 = arith.mulf %307, %311 : vector<8x32xf32>
    %c7_i32 = arith.constant 7 : i32
    %313 = vector.broadcast %c7_i32 : i32 to vector<8x1xi32>
    %314 = arith.cmpi sgt, %0, %313 : vector<8x1xi32>
    %cst_43 = arith.constant 0.000000e+00 : f32
    %315 = vector.shape_cast %314 : vector<8x1xi1> to vector<8x1xi1>
    %316 = vector.broadcast %315 : vector<8x1xi1> to vector<8x32xi1>
    %317 = vector.broadcast %cst_43 : f32 to vector<8x32xf32>
    %318 = arith.select %316, %312, %317 : vector<8x32xi1>, vector<8x32xf32>
    %319 = arith.truncf %318 : vector<8x32xf32> to vector<8x32xbf16>
    %c0_44 = arith.constant 0 : index
    %c0_45 = arith.constant 0 : index
    %320 = vector.load %arg5[%c0_44, %c0_45] : memref<32x64xbf16, #tpu.memory_space<vmem>>, vector<32x64xbf16>
    %cst_46 = arith.constant dense<0.000000e+00> : vector<8x64xf32>
    %321 = tpu.matmul %319, %320, %cst_46 {dimension_numbers = #tpu.dot_dimension_numbers<[1], [0], [0], [1], [0, 0, 1, 1], [], []>} : vector<8x32xbf16>, vector<32x64xbf16>, vector<8x64xf32> -> vector<8x64xf32>
    %c0_47 = arith.constant 0 : index
    %c0_48 = arith.constant 0 : index
    %322 = vector.load %arg6[%c0_47, %c0_48] : memref<1x64xf32, #tpu.memory_space<vmem>>, vector<1x64xf32>
    %323 = vector.broadcast %322 : vector<1x64xf32> to vector<8x64xf32>
    %324 = arith.addf %321, %323 : vector<8x64xf32>
    %325 = vector.extract_strided_slice %324 {offsets = [0, 0], sizes = [8, 32], strides = [1, 1]} : vector<8x64xf32> to vector<8x32xf32>
    %c0_49 = arith.constant 0 : index
    %c0_50 = arith.constant 0 : index
    %326 = vector.load %arg7[%c0_49, %c0_50] : memref<28x128xbf16, #tpu.memory_space<vmem>>, vector<28x128xbf16>
    %c0_51 = arith.constant 0 : index
    %c0_52 = arith.constant 0 : index
    %327 = vector.load %arg8[%c0_51, %c0_52] : memref<32x128xbf16, #tpu.memory_space<vmem>>, vector<32x128xbf16>
    %c0_53 = arith.constant 0 : index
    %c0_54 = arith.constant 0 : index
    %328 = vector.load %arg9[%c0_53, %c0_54] : memref<1x128xf32, #tpu.memory_space<vmem>>, vector<1x128xf32>
    %329 = arith.truncf %1 : vector<64x28xf32> to vector<64x28xbf16>
    %cst_55 = arith.constant dense<0.000000e+00> : vector<64x128xf32>
    %330 = tpu.matmul %329, %326, %cst_55 {dimension_numbers = #tpu.dot_dimension_numbers<[1], [0], [0], [1], [0, 0, 1, 1], [], []>} : vector<64x28xbf16>, vector<28x128xbf16>, vector<64x128xf32> -> vector<64x128xf32>
    %cst_56 = arith.constant 0.000000e+00 : f32
    %331 = vector.broadcast %cst_56 : f32 to vector<8x32xf32>
    %cst_57 = arith.constant 0.000000e+00 : f32
    %332 = vector.broadcast %cst_57 : f32 to vector<8x32xf32>
    %333 = vector.extract_strided_slice %330 {offsets = [0, 0], sizes = [8, 128], strides = [1, 1]} : vector<64x128xf32> to vector<8x128xf32>
    %334 = arith.truncf %331 : vector<8x32xf32> to vector<8x32xbf16>
    %cst_58 = arith.constant dense<0.000000e+00> : vector<8x128xf32>
    %335 = tpu.matmul %334, %327, %cst_58 {dimension_numbers = #tpu.dot_dimension_numbers<[1], [0], [0], [1], [0, 0, 1, 1], [], []>} : vector<8x32xbf16>, vector<32x128xbf16>, vector<8x128xf32> -> vector<8x128xf32>
    %336 = arith.addf %333, %335 : vector<8x128xf32>
    %337 = vector.broadcast %328 : vector<1x128xf32> to vector<8x128xf32>
    %338 = arith.addf %336, %337 : vector<8x128xf32>
    %339 = vector.extract_strided_slice %338 {offsets = [0, 0], sizes = [8, 32], strides = [1, 1]} : vector<8x128xf32> to vector<8x32xf32>
    %340 = arith.negf %339 : vector<8x32xf32>
    %341 = math.exp %340 : vector<8x32xf32>
    %cst_59 = arith.constant 1.000000e+00 : f32
    %342 = vector.broadcast %cst_59 : f32 to vector<8x32xf32>
    %343 = arith.addf %342, %341 : vector<8x32xf32>
    %344 = arith.divf %342, %343 : vector<8x32xf32>
    %345 = vector.extract_strided_slice %338 {offsets = [0, 32], sizes = [8, 32], strides = [1, 1]} : vector<8x128xf32> to vector<8x32xf32>
    %346 = arith.negf %345 : vector<8x32xf32>
    %347 = math.exp %346 : vector<8x32xf32>
    %cst_60 = arith.constant 1.000000e+00 : f32
    %348 = vector.broadcast %cst_60 : f32 to vector<8x32xf32>
    %349 = arith.addf %348, %347 : vector<8x32xf32>
    %350 = arith.divf %348, %349 : vector<8x32xf32>
    %351 = vector.extract_strided_slice %338 {offsets = [0, 64], sizes = [8, 32], strides = [1, 1]} : vector<8x128xf32> to vector<8x32xf32>
    %352 = math.tanh %351 : vector<8x32xf32>
    %353 = vector.extract_strided_slice %338 {offsets = [0, 96], sizes = [8, 32], strides = [1, 1]} : vector<8x128xf32> to vector<8x32xf32>
    %354 = arith.negf %353 : vector<8x32xf32>
    %355 = math.exp %354 : vector<8x32xf32>
    %cst_61 = arith.constant 1.000000e+00 : f32
    %356 = vector.broadcast %cst_61 : f32 to vector<8x32xf32>
    %357 = arith.addf %356, %355 : vector<8x32xf32>
    %358 = arith.divf %356, %357 : vector<8x32xf32>
    %359 = arith.mulf %350, %332 : vector<8x32xf32>
    %360 = arith.mulf %344, %352 : vector<8x32xf32>
    %361 = arith.addf %359, %360 : vector<8x32xf32>
    %362 = math.tanh %361 : vector<8x32xf32>
    %363 = arith.mulf %358, %362 : vector<8x32xf32>
    %c0_i32_62 = arith.constant 0 : i32
    %364 = vector.broadcast %c0_i32_62 : i32 to vector<8x1xi32>
    %365 = arith.cmpi sgt, %0, %364 : vector<8x1xi32>
    %cst_63 = arith.constant 0.000000e+00 : f32
    %366 = vector.shape_cast %365 : vector<8x1xi1> to vector<8x1xi1>
    %367 = vector.broadcast %366 : vector<8x1xi1> to vector<8x32xi1>
    %368 = vector.broadcast %cst_63 : f32 to vector<8x32xf32>
    %369 = arith.select %367, %363, %368 : vector<8x32xi1>, vector<8x32xf32>
    %370 = vector.shape_cast %365 : vector<8x1xi1> to vector<8x1xi1>
    %371 = vector.broadcast %370 : vector<8x1xi1> to vector<8x32xi1>
    %372 = arith.select %371, %363, %331 : vector<8x32xi1>, vector<8x32xf32>
    %373 = vector.shape_cast %365 : vector<8x1xi1> to vector<8x1xi1>
    %374 = vector.broadcast %373 : vector<8x1xi1> to vector<8x32xi1>
    %375 = arith.select %374, %361, %332 : vector<8x32xi1>, vector<8x32xf32>
    %376 = vector.extract_strided_slice %330 {offsets = [8, 0], sizes = [8, 128], strides = [1, 1]} : vector<64x128xf32> to vector<8x128xf32>
    %377 = arith.truncf %372 : vector<8x32xf32> to vector<8x32xbf16>
    %cst_64 = arith.constant dense<0.000000e+00> : vector<8x128xf32>
    %378 = tpu.matmul %377, %327, %cst_64 {dimension_numbers = #tpu.dot_dimension_numbers<[1], [0], [0], [1], [0, 0, 1, 1], [], []>} : vector<8x32xbf16>, vector<32x128xbf16>, vector<8x128xf32> -> vector<8x128xf32>
    %379 = arith.addf %376, %378 : vector<8x128xf32>
    %380 = vector.broadcast %328 : vector<1x128xf32> to vector<8x128xf32>
    %381 = arith.addf %379, %380 : vector<8x128xf32>
    %382 = vector.extract_strided_slice %381 {offsets = [0, 0], sizes = [8, 32], strides = [1, 1]} : vector<8x128xf32> to vector<8x32xf32>
    %383 = arith.negf %382 : vector<8x32xf32>
    %384 = math.exp %383 : vector<8x32xf32>
    %cst_65 = arith.constant 1.000000e+00 : f32
    %385 = vector.broadcast %cst_65 : f32 to vector<8x32xf32>
    %386 = arith.addf %385, %384 : vector<8x32xf32>
    %387 = arith.divf %385, %386 : vector<8x32xf32>
    %388 = vector.extract_strided_slice %381 {offsets = [0, 32], sizes = [8, 32], strides = [1, 1]} : vector<8x128xf32> to vector<8x32xf32>
    %389 = arith.negf %388 : vector<8x32xf32>
    %390 = math.exp %389 : vector<8x32xf32>
    %cst_66 = arith.constant 1.000000e+00 : f32
    %391 = vector.broadcast %cst_66 : f32 to vector<8x32xf32>
    %392 = arith.addf %391, %390 : vector<8x32xf32>
    %393 = arith.divf %391, %392 : vector<8x32xf32>
    %394 = vector.extract_strided_slice %381 {offsets = [0, 64], sizes = [8, 32], strides = [1, 1]} : vector<8x128xf32> to vector<8x32xf32>
    %395 = math.tanh %394 : vector<8x32xf32>
    %396 = vector.extract_strided_slice %381 {offsets = [0, 96], sizes = [8, 32], strides = [1, 1]} : vector<8x128xf32> to vector<8x32xf32>
    %397 = arith.negf %396 : vector<8x32xf32>
    %398 = math.exp %397 : vector<8x32xf32>
    %cst_67 = arith.constant 1.000000e+00 : f32
    %399 = vector.broadcast %cst_67 : f32 to vector<8x32xf32>
    %400 = arith.addf %399, %398 : vector<8x32xf32>
    %401 = arith.divf %399, %400 : vector<8x32xf32>
    %402 = arith.mulf %393, %375 : vector<8x32xf32>
    %403 = arith.mulf %387, %395 : vector<8x32xf32>
    %404 = arith.addf %402, %403 : vector<8x32xf32>
    %405 = math.tanh %404 : vector<8x32xf32>
    %406 = arith.mulf %401, %405 : vector<8x32xf32>
    %c1_i32_68 = arith.constant 1 : i32
    %407 = vector.broadcast %c1_i32_68 : i32 to vector<8x1xi32>
    %408 = arith.cmpi sgt, %0, %407 : vector<8x1xi32>
    %cst_69 = arith.constant 0.000000e+00 : f32
    %409 = vector.shape_cast %408 : vector<8x1xi1> to vector<8x1xi1>
    %410 = vector.broadcast %409 : vector<8x1xi1> to vector<8x32xi1>
    %411 = vector.broadcast %cst_69 : f32 to vector<8x32xf32>
    %412 = arith.select %410, %406, %411 : vector<8x32xi1>, vector<8x32xf32>
    %413 = vector.shape_cast %408 : vector<8x1xi1> to vector<8x1xi1>
    %414 = vector.broadcast %413 : vector<8x1xi1> to vector<8x32xi1>
    %415 = arith.select %414, %406, %372 : vector<8x32xi1>, vector<8x32xf32>
    %416 = vector.shape_cast %408 : vector<8x1xi1> to vector<8x1xi1>
    %417 = vector.broadcast %416 : vector<8x1xi1> to vector<8x32xi1>
    %418 = arith.select %417, %404, %375 : vector<8x32xi1>, vector<8x32xf32>
    %419 = vector.extract_strided_slice %330 {offsets = [16, 0], sizes = [8, 128], strides = [1, 1]} : vector<64x128xf32> to vector<8x128xf32>
    %420 = arith.truncf %415 : vector<8x32xf32> to vector<8x32xbf16>
    %cst_70 = arith.constant dense<0.000000e+00> : vector<8x128xf32>
    %421 = tpu.matmul %420, %327, %cst_70 {dimension_numbers = #tpu.dot_dimension_numbers<[1], [0], [0], [1], [0, 0, 1, 1], [], []>} : vector<8x32xbf16>, vector<32x128xbf16>, vector<8x128xf32> -> vector<8x128xf32>
    %422 = arith.addf %419, %421 : vector<8x128xf32>
    %423 = vector.broadcast %328 : vector<1x128xf32> to vector<8x128xf32>
    %424 = arith.addf %422, %423 : vector<8x128xf32>
    %425 = vector.extract_strided_slice %424 {offsets = [0, 0], sizes = [8, 32], strides = [1, 1]} : vector<8x128xf32> to vector<8x32xf32>
    %426 = arith.negf %425 : vector<8x32xf32>
    %427 = math.exp %426 : vector<8x32xf32>
    %cst_71 = arith.constant 1.000000e+00 : f32
    %428 = vector.broadcast %cst_71 : f32 to vector<8x32xf32>
    %429 = arith.addf %428, %427 : vector<8x32xf32>
    %430 = arith.divf %428, %429 : vector<8x32xf32>
    %431 = vector.extract_strided_slice %424 {offsets = [0, 32], sizes = [8, 32], strides = [1, 1]} : vector<8x128xf32> to vector<8x32xf32>
    %432 = arith.negf %431 : vector<8x32xf32>
    %433 = math.exp %432 : vector<8x32xf32>
    %cst_72 = arith.constant 1.000000e+00 : f32
    %434 = vector.broadcast %cst_72 : f32 to vector<8x32xf32>
    %435 = arith.addf %434, %433 : vector<8x32xf32>
    %436 = arith.divf %434, %435 : vector<8x32xf32>
    %437 = vector.extract_strided_slice %424 {offsets = [0, 64], sizes = [8, 32], strides = [1, 1]} : vector<8x128xf32> to vector<8x32xf32>
    %438 = math.tanh %437 : vector<8x32xf32>
    %439 = vector.extract_strided_slice %424 {offsets = [0, 96], sizes = [8, 32], strides = [1, 1]} : vector<8x128xf32> to vector<8x32xf32>
    %440 = arith.negf %439 : vector<8x32xf32>
    %441 = math.exp %440 : vector<8x32xf32>
    %cst_73 = arith.constant 1.000000e+00 : f32
    %442 = vector.broadcast %cst_73 : f32 to vector<8x32xf32>
    %443 = arith.addf %442, %441 : vector<8x32xf32>
    %444 = arith.divf %442, %443 : vector<8x32xf32>
    %445 = arith.mulf %436, %418 : vector<8x32xf32>
    %446 = arith.mulf %430, %438 : vector<8x32xf32>
    %447 = arith.addf %445, %446 : vector<8x32xf32>
    %448 = math.tanh %447 : vector<8x32xf32>
    %449 = arith.mulf %444, %448 : vector<8x32xf32>
    %c2_i32_74 = arith.constant 2 : i32
    %450 = vector.broadcast %c2_i32_74 : i32 to vector<8x1xi32>
    %451 = arith.cmpi sgt, %0, %450 : vector<8x1xi32>
    %cst_75 = arith.constant 0.000000e+00 : f32
    %452 = vector.shape_cast %451 : vector<8x1xi1> to vector<8x1xi1>
    %453 = vector.broadcast %452 : vector<8x1xi1> to vector<8x32xi1>
    %454 = vector.broadcast %cst_75 : f32 to vector<8x32xf32>
    %455 = arith.select %453, %449, %454 : vector<8x32xi1>, vector<8x32xf32>
    %456 = vector.shape_cast %451 : vector<8x1xi1> to vector<8x1xi1>
    %457 = vector.broadcast %456 : vector<8x1xi1> to vector<8x32xi1>
    %458 = arith.select %457, %449, %415 : vector<8x32xi1>, vector<8x32xf32>
    %459 = vector.shape_cast %451 : vector<8x1xi1> to vector<8x1xi1>
    %460 = vector.broadcast %459 : vector<8x1xi1> to vector<8x32xi1>
    %461 = arith.select %460, %447, %418 : vector<8x32xi1>, vector<8x32xf32>
    %462 = vector.extract_strided_slice %330 {offsets = [24, 0], sizes = [8, 128], strides = [1, 1]} : vector<64x128xf32> to vector<8x128xf32>
    %463 = arith.truncf %458 : vector<8x32xf32> to vector<8x32xbf16>
    %cst_76 = arith.constant dense<0.000000e+00> : vector<8x128xf32>
    %464 = tpu.matmul %463, %327, %cst_76 {dimension_numbers = #tpu.dot_dimension_numbers<[1], [0], [0], [1], [0, 0, 1, 1], [], []>} : vector<8x32xbf16>, vector<32x128xbf16>, vector<8x128xf32> -> vector<8x128xf32>
    %465 = arith.addf %462, %464 : vector<8x128xf32>
    %466 = vector.broadcast %328 : vector<1x128xf32> to vector<8x128xf32>
    %467 = arith.addf %465, %466 : vector<8x128xf32>
    %468 = vector.extract_strided_slice %467 {offsets = [0, 0], sizes = [8, 32], strides = [1, 1]} : vector<8x128xf32> to vector<8x32xf32>
    %469 = arith.negf %468 : vector<8x32xf32>
    %470 = math.exp %469 : vector<8x32xf32>
    %cst_77 = arith.constant 1.000000e+00 : f32
    %471 = vector.broadcast %cst_77 : f32 to vector<8x32xf32>
    %472 = arith.addf %471, %470 : vector<8x32xf32>
    %473 = arith.divf %471, %472 : vector<8x32xf32>
    %474 = vector.extract_strided_slice %467 {offsets = [0, 32], sizes = [8, 32], strides = [1, 1]} : vector<8x128xf32> to vector<8x32xf32>
    %475 = arith.negf %474 : vector<8x32xf32>
    %476 = math.exp %475 : vector<8x32xf32>
    %cst_78 = arith.constant 1.000000e+00 : f32
    %477 = vector.broadcast %cst_78 : f32 to vector<8x32xf32>
    %478 = arith.addf %477, %476 : vector<8x32xf32>
    %479 = arith.divf %477, %478 : vector<8x32xf32>
    %480 = vector.extract_strided_slice %467 {offsets = [0, 64], sizes = [8, 32], strides = [1, 1]} : vector<8x128xf32> to vector<8x32xf32>
    %481 = math.tanh %480 : vector<8x32xf32>
    %482 = vector.extract_strided_slice %467 {offsets = [0, 96], sizes = [8, 32], strides = [1, 1]} : vector<8x128xf32> to vector<8x32xf32>
    %483 = arith.negf %482 : vector<8x32xf32>
    %484 = math.exp %483 : vector<8x32xf32>
    %cst_79 = arith.constant 1.000000e+00 : f32
    %485 = vector.broadcast %cst_79 : f32 to vector<8x32xf32>
    %486 = arith.addf %485, %484 : vector<8x32xf32>
    %487 = arith.divf %485, %486 : vector<8x32xf32>
    %488 = arith.mulf %479, %461 : vector<8x32xf32>
    %489 = arith.mulf %473, %481 : vector<8x32xf32>
    %490 = arith.addf %488, %489 : vector<8x32xf32>
    %491 = math.tanh %490 : vector<8x32xf32>
    %492 = arith.mulf %487, %491 : vector<8x32xf32>
    %c3_i32_80 = arith.constant 3 : i32
    %493 = vector.broadcast %c3_i32_80 : i32 to vector<8x1xi32>
    %494 = arith.cmpi sgt, %0, %493 : vector<8x1xi32>
    %cst_81 = arith.constant 0.000000e+00 : f32
    %495 = vector.shape_cast %494 : vector<8x1xi1> to vector<8x1xi1>
    %496 = vector.broadcast %495 : vector<8x1xi1> to vector<8x32xi1>
    %497 = vector.broadcast %cst_81 : f32 to vector<8x32xf32>
    %498 = arith.select %496, %492, %497 : vector<8x32xi1>, vector<8x32xf32>
    %499 = vector.shape_cast %494 : vector<8x1xi1> to vector<8x1xi1>
    %500 = vector.broadcast %499 : vector<8x1xi1> to vector<8x32xi1>
    %501 = arith.select %500, %492, %458 : vector<8x32xi1>, vector<8x32xf32>
    %502 = vector.shape_cast %494 : vector<8x1xi1> to vector<8x1xi1>
    %503 = vector.broadcast %502 : vector<8x1xi1> to vector<8x32xi1>
    %504 = arith.select %503, %490, %461 : vector<8x32xi1>, vector<8x32xf32>
    %505 = vector.extract_strided_slice %330 {offsets = [32, 0], sizes = [8, 128], strides = [1, 1]} : vector<64x128xf32> to vector<8x128xf32>
    %506 = arith.truncf %501 : vector<8x32xf32> to vector<8x32xbf16>
    %cst_82 = arith.constant dense<0.000000e+00> : vector<8x128xf32>
    %507 = tpu.matmul %506, %327, %cst_82 {dimension_numbers = #tpu.dot_dimension_numbers<[1], [0], [0], [1], [0, 0, 1, 1], [], []>} : vector<8x32xbf16>, vector<32x128xbf16>, vector<8x128xf32> -> vector<8x128xf32>
    %508 = arith.addf %505, %507 : vector<8x128xf32>
    %509 = vector.broadcast %328 : vector<1x128xf32> to vector<8x128xf32>
    %510 = arith.addf %508, %509 : vector<8x128xf32>
    %511 = vector.extract_strided_slice %510 {offsets = [0, 0], sizes = [8, 32], strides = [1, 1]} : vector<8x128xf32> to vector<8x32xf32>
    %512 = arith.negf %511 : vector<8x32xf32>
    %513 = math.exp %512 : vector<8x32xf32>
    %cst_83 = arith.constant 1.000000e+00 : f32
    %514 = vector.broadcast %cst_83 : f32 to vector<8x32xf32>
    %515 = arith.addf %514, %513 : vector<8x32xf32>
    %516 = arith.divf %514, %515 : vector<8x32xf32>
    %517 = vector.extract_strided_slice %510 {offsets = [0, 32], sizes = [8, 32], strides = [1, 1]} : vector<8x128xf32> to vector<8x32xf32>
    %518 = arith.negf %517 : vector<8x32xf32>
    %519 = math.exp %518 : vector<8x32xf32>
    %cst_84 = arith.constant 1.000000e+00 : f32
    %520 = vector.broadcast %cst_84 : f32 to vector<8x32xf32>
    %521 = arith.addf %520, %519 : vector<8x32xf32>
    %522 = arith.divf %520, %521 : vector<8x32xf32>
    %523 = vector.extract_strided_slice %510 {offsets = [0, 64], sizes = [8, 32], strides = [1, 1]} : vector<8x128xf32> to vector<8x32xf32>
    %524 = math.tanh %523 : vector<8x32xf32>
    %525 = vector.extract_strided_slice %510 {offsets = [0, 96], sizes = [8, 32], strides = [1, 1]} : vector<8x128xf32> to vector<8x32xf32>
    %526 = arith.negf %525 : vector<8x32xf32>
    %527 = math.exp %526 : vector<8x32xf32>
    %cst_85 = arith.constant 1.000000e+00 : f32
    %528 = vector.broadcast %cst_85 : f32 to vector<8x32xf32>
    %529 = arith.addf %528, %527 : vector<8x32xf32>
    %530 = arith.divf %528, %529 : vector<8x32xf32>
    %531 = arith.mulf %522, %504 : vector<8x32xf32>
    %532 = arith.mulf %516, %524 : vector<8x32xf32>
    %533 = arith.addf %531, %532 : vector<8x32xf32>
    %534 = math.tanh %533 : vector<8x32xf32>
    %535 = arith.mulf %530, %534 : vector<8x32xf32>
    %c4_i32_86 = arith.constant 4 : i32
    %536 = vector.broadcast %c4_i32_86 : i32 to vector<8x1xi32>
    %537 = arith.cmpi sgt, %0, %536 : vector<8x1xi32>
    %cst_87 = arith.constant 0.000000e+00 : f32
    %538 = vector.shape_cast %537 : vector<8x1xi1> to vector<8x1xi1>
    %539 = vector.broadcast %538 : vector<8x1xi1> to vector<8x32xi1>
    %540 = vector.broadcast %cst_87 : f32 to vector<8x32xf32>
    %541 = arith.select %539, %535, %540 : vector<8x32xi1>, vector<8x32xf32>
    %542 = vector.shape_cast %537 : vector<8x1xi1> to vector<8x1xi1>
    %543 = vector.broadcast %542 : vector<8x1xi1> to vector<8x32xi1>
    %544 = arith.select %543, %535, %501 : vector<8x32xi1>, vector<8x32xf32>
    %545 = vector.shape_cast %537 : vector<8x1xi1> to vector<8x1xi1>
    %546 = vector.broadcast %545 : vector<8x1xi1> to vector<8x32xi1>
    %547 = arith.select %546, %533, %504 : vector<8x32xi1>, vector<8x32xf32>
    %548 = vector.extract_strided_slice %330 {offsets = [40, 0], sizes = [8, 128], strides = [1, 1]} : vector<64x128xf32> to vector<8x128xf32>
    %549 = arith.truncf %544 : vector<8x32xf32> to vector<8x32xbf16>
    %cst_88 = arith.constant dense<0.000000e+00> : vector<8x128xf32>
    %550 = tpu.matmul %549, %327, %cst_88 {dimension_numbers = #tpu.dot_dimension_numbers<[1], [0], [0], [1], [0, 0, 1, 1], [], []>} : vector<8x32xbf16>, vector<32x128xbf16>, vector<8x128xf32> -> vector<8x128xf32>
    %551 = arith.addf %548, %550 : vector<8x128xf32>
    %552 = vector.broadcast %328 : vector<1x128xf32> to vector<8x128xf32>
    %553 = arith.addf %551, %552 : vector<8x128xf32>
    %554 = vector.extract_strided_slice %553 {offsets = [0, 0], sizes = [8, 32], strides = [1, 1]} : vector<8x128xf32> to vector<8x32xf32>
    %555 = arith.negf %554 : vector<8x32xf32>
    %556 = math.exp %555 : vector<8x32xf32>
    %cst_89 = arith.constant 1.000000e+00 : f32
    %557 = vector.broadcast %cst_89 : f32 to vector<8x32xf32>
    %558 = arith.addf %557, %556 : vector<8x32xf32>
    %559 = arith.divf %557, %558 : vector<8x32xf32>
    %560 = vector.extract_strided_slice %553 {offsets = [0, 32], sizes = [8, 32], strides = [1, 1]} : vector<8x128xf32> to vector<8x32xf32>
    %561 = arith.negf %560 : vector<8x32xf32>
    %562 = math.exp %561 : vector<8x32xf32>
    %cst_90 = arith.constant 1.000000e+00 : f32
    %563 = vector.broadcast %cst_90 : f32 to vector<8x32xf32>
    %564 = arith.addf %563, %562 : vector<8x32xf32>
    %565 = arith.divf %563, %564 : vector<8x32xf32>
    %566 = vector.extract_strided_slice %553 {offsets = [0, 64], sizes = [8, 32], strides = [1, 1]} : vector<8x128xf32> to vector<8x32xf32>
    %567 = math.tanh %566 : vector<8x32xf32>
    %568 = vector.extract_strided_slice %553 {offsets = [0, 96], sizes = [8, 32], strides = [1, 1]} : vector<8x128xf32> to vector<8x32xf32>
    %569 = arith.negf %568 : vector<8x32xf32>
    %570 = math.exp %569 : vector<8x32xf32>
    %cst_91 = arith.constant 1.000000e+00 : f32
    %571 = vector.broadcast %cst_91 : f32 to vector<8x32xf32>
    %572 = arith.addf %571, %570 : vector<8x32xf32>
    %573 = arith.divf %571, %572 : vector<8x32xf32>
    %574 = arith.mulf %565, %547 : vector<8x32xf32>
    %575 = arith.mulf %559, %567 : vector<8x32xf32>
    %576 = arith.addf %574, %575 : vector<8x32xf32>
    %577 = math.tanh %576 : vector<8x32xf32>
    %578 = arith.mulf %573, %577 : vector<8x32xf32>
    %c5_i32_92 = arith.constant 5 : i32
    %579 = vector.broadcast %c5_i32_92 : i32 to vector<8x1xi32>
    %580 = arith.cmpi sgt, %0, %579 : vector<8x1xi32>
    %cst_93 = arith.constant 0.000000e+00 : f32
    %581 = vector.shape_cast %580 : vector<8x1xi1> to vector<8x1xi1>
    %582 = vector.broadcast %581 : vector<8x1xi1> to vector<8x32xi1>
    %583 = vector.broadcast %cst_93 : f32 to vector<8x32xf32>
    %584 = arith.select %582, %578, %583 : vector<8x32xi1>, vector<8x32xf32>
    %585 = vector.shape_cast %580 : vector<8x1xi1> to vector<8x1xi1>
    %586 = vector.broadcast %585 : vector<8x1xi1> to vector<8x32xi1>
    %587 = arith.select %586, %578, %544 : vector<8x32xi1>, vector<8x32xf32>
    %588 = vector.shape_cast %580 : vector<8x1xi1> to vector<8x1xi1>
    %589 = vector.broadcast %588 : vector<8x1xi1> to vector<8x32xi1>
    %590 = arith.select %589, %576, %547 : vector<8x32xi1>, vector<8x32xf32>
    %591 = vector.extract_strided_slice %330 {offsets = [48, 0], sizes = [8, 128], strides = [1, 1]} : vector<64x128xf32> to vector<8x128xf32>
    %592 = arith.truncf %587 : vector<8x32xf32> to vector<8x32xbf16>
    %cst_94 = arith.constant dense<0.000000e+00> : vector<8x128xf32>
    %593 = tpu.matmul %592, %327, %cst_94 {dimension_numbers = #tpu.dot_dimension_numbers<[1], [0], [0], [1], [0, 0, 1, 1], [], []>} : vector<8x32xbf16>, vector<32x128xbf16>, vector<8x128xf32> -> vector<8x128xf32>
    %594 = arith.addf %591, %593 : vector<8x128xf32>
    %595 = vector.broadcast %328 : vector<1x128xf32> to vector<8x128xf32>
    %596 = arith.addf %594, %595 : vector<8x128xf32>
    %597 = vector.extract_strided_slice %596 {offsets = [0, 0], sizes = [8, 32], strides = [1, 1]} : vector<8x128xf32> to vector<8x32xf32>
    %598 = arith.negf %597 : vector<8x32xf32>
    %599 = math.exp %598 : vector<8x32xf32>
    %cst_95 = arith.constant 1.000000e+00 : f32
    %600 = vector.broadcast %cst_95 : f32 to vector<8x32xf32>
    %601 = arith.addf %600, %599 : vector<8x32xf32>
    %602 = arith.divf %600, %601 : vector<8x32xf32>
    %603 = vector.extract_strided_slice %596 {offsets = [0, 32], sizes = [8, 32], strides = [1, 1]} : vector<8x128xf32> to vector<8x32xf32>
    %604 = arith.negf %603 : vector<8x32xf32>
    %605 = math.exp %604 : vector<8x32xf32>
    %cst_96 = arith.constant 1.000000e+00 : f32
    %606 = vector.broadcast %cst_96 : f32 to vector<8x32xf32>
    %607 = arith.addf %606, %605 : vector<8x32xf32>
    %608 = arith.divf %606, %607 : vector<8x32xf32>
    %609 = vector.extract_strided_slice %596 {offsets = [0, 64], sizes = [8, 32], strides = [1, 1]} : vector<8x128xf32> to vector<8x32xf32>
    %610 = math.tanh %609 : vector<8x32xf32>
    %611 = vector.extract_strided_slice %596 {offsets = [0, 96], sizes = [8, 32], strides = [1, 1]} : vector<8x128xf32> to vector<8x32xf32>
    %612 = arith.negf %611 : vector<8x32xf32>
    %613 = math.exp %612 : vector<8x32xf32>
    %cst_97 = arith.constant 1.000000e+00 : f32
    %614 = vector.broadcast %cst_97 : f32 to vector<8x32xf32>
    %615 = arith.addf %614, %613 : vector<8x32xf32>
    %616 = arith.divf %614, %615 : vector<8x32xf32>
    %617 = arith.mulf %608, %590 : vector<8x32xf32>
    %618 = arith.mulf %602, %610 : vector<8x32xf32>
    %619 = arith.addf %617, %618 : vector<8x32xf32>
    %620 = math.tanh %619 : vector<8x32xf32>
    %621 = arith.mulf %616, %620 : vector<8x32xf32>
    %c6_i32_98 = arith.constant 6 : i32
    %622 = vector.broadcast %c6_i32_98 : i32 to vector<8x1xi32>
    %623 = arith.cmpi sgt, %0, %622 : vector<8x1xi32>
    %cst_99 = arith.constant 0.000000e+00 : f32
    %624 = vector.shape_cast %623 : vector<8x1xi1> to vector<8x1xi1>
    %625 = vector.broadcast %624 : vector<8x1xi1> to vector<8x32xi1>
    %626 = vector.broadcast %cst_99 : f32 to vector<8x32xf32>
    %627 = arith.select %625, %621, %626 : vector<8x32xi1>, vector<8x32xf32>
    %628 = vector.shape_cast %623 : vector<8x1xi1> to vector<8x1xi1>
    %629 = vector.broadcast %628 : vector<8x1xi1> to vector<8x32xi1>
    %630 = arith.select %629, %621, %587 : vector<8x32xi1>, vector<8x32xf32>
    %631 = vector.shape_cast %623 : vector<8x1xi1> to vector<8x1xi1>
    %632 = vector.broadcast %631 : vector<8x1xi1> to vector<8x32xi1>
    %633 = arith.select %632, %619, %590 : vector<8x32xi1>, vector<8x32xf32>
    %634 = vector.extract_strided_slice %330 {offsets = [56, 0], sizes = [8, 128], strides = [1, 1]} : vector<64x128xf32> to vector<8x128xf32>
    %635 = arith.truncf %630 : vector<8x32xf32> to vector<8x32xbf16>
    %cst_100 = arith.constant dense<0.000000e+00> : vector<8x128xf32>
    %636 = tpu.matmul %635, %327, %cst_100 {dimension_numbers = #tpu.dot_dimension_numbers<[1], [0], [0], [1], [0, 0, 1, 1], [], []>} : vector<8x32xbf16>, vector<32x128xbf16>, vector<8x128xf32> -> vector<8x128xf32>
    %637 = arith.addf %634, %636 : vector<8x128xf32>
    %638 = vector.broadcast %328 : vector<1x128xf32> to vector<8x128xf32>
    %639 = arith.addf %637, %638 : vector<8x128xf32>
    %640 = vector.extract_strided_slice %639 {offsets = [0, 0], sizes = [8, 32], strides = [1, 1]} : vector<8x128xf32> to vector<8x32xf32>
    %641 = arith.negf %640 : vector<8x32xf32>
    %642 = math.exp %641 : vector<8x32xf32>
    %cst_101 = arith.constant 1.000000e+00 : f32
    %643 = vector.broadcast %cst_101 : f32 to vector<8x32xf32>
    %644 = arith.addf %643, %642 : vector<8x32xf32>
    %645 = arith.divf %643, %644 : vector<8x32xf32>
    %646 = vector.extract_strided_slice %639 {offsets = [0, 32], sizes = [8, 32], strides = [1, 1]} : vector<8x128xf32> to vector<8x32xf32>
    %647 = arith.negf %646 : vector<8x32xf32>
    %648 = math.exp %647 : vector<8x32xf32>
    %cst_102 = arith.constant 1.000000e+00 : f32
    %649 = vector.broadcast %cst_102 : f32 to vector<8x32xf32>
    %650 = arith.addf %649, %648 : vector<8x32xf32>
    %651 = arith.divf %649, %650 : vector<8x32xf32>
    %652 = vector.extract_strided_slice %639 {offsets = [0, 64], sizes = [8, 32], strides = [1, 1]} : vector<8x128xf32> to vector<8x32xf32>
    %653 = math.tanh %652 : vector<8x32xf32>
    %654 = vector.extract_strided_slice %639 {offsets = [0, 96], sizes = [8, 32], strides = [1, 1]} : vector<8x128xf32> to vector<8x32xf32>
    %655 = arith.negf %654 : vector<8x32xf32>
    %656 = math.exp %655 : vector<8x32xf32>
    %cst_103 = arith.constant 1.000000e+00 : f32
    %657 = vector.broadcast %cst_103 : f32 to vector<8x32xf32>
    %658 = arith.addf %657, %656 : vector<8x32xf32>
    %659 = arith.divf %657, %658 : vector<8x32xf32>
    %660 = arith.mulf %651, %633 : vector<8x32xf32>
    %661 = arith.mulf %645, %653 : vector<8x32xf32>
    %662 = arith.addf %660, %661 : vector<8x32xf32>
    %663 = math.tanh %662 : vector<8x32xf32>
    %664 = arith.mulf %659, %663 : vector<8x32xf32>
    %c7_i32_104 = arith.constant 7 : i32
    %665 = vector.broadcast %c7_i32_104 : i32 to vector<8x1xi32>
    %666 = arith.cmpi sgt, %0, %665 : vector<8x1xi32>
    %cst_105 = arith.constant 0.000000e+00 : f32
    %667 = vector.shape_cast %666 : vector<8x1xi1> to vector<8x1xi1>
    %668 = vector.broadcast %667 : vector<8x1xi1> to vector<8x32xi1>
    %669 = vector.broadcast %cst_105 : f32 to vector<8x32xf32>
    %670 = arith.select %668, %664, %669 : vector<8x32xi1>, vector<8x32xf32>
    %671 = arith.mulf %369, %325 : vector<8x32xf32>
    %672 = arith.mulf %412, %325 : vector<8x32xf32>
    %673 = arith.mulf %455, %325 : vector<8x32xf32>
    %674 = arith.mulf %498, %325 : vector<8x32xf32>
    %675 = arith.mulf %541, %325 : vector<8x32xf32>
    %676 = arith.mulf %584, %325 : vector<8x32xf32>
    %677 = arith.mulf %627, %325 : vector<8x32xf32>
    %678 = arith.mulf %670, %325 : vector<8x32xf32>
    %679 = tpu.concatenate %671, %672, %673, %674, %675, %676, %677, %678 in 0 : vector<8x32xf32>, vector<8x32xf32>, vector<8x32xf32>, vector<8x32xf32>, vector<8x32xf32>, vector<8x32xf32>, vector<8x32xf32>, vector<8x32xf32> -> vector<64x32xf32>
    %680 = vector.extract_strided_slice %324 {offsets = [0, 32], sizes = [8, 32], strides = [1, 1]} : vector<8x64xf32> to vector<8x32xf32>
    %c0_106 = arith.constant 0 : index
    %c0_107 = arith.constant 0 : index
    %681 = vector.load %arg10[%c0_106, %c0_107] : memref<32x128xbf16, #tpu.memory_space<vmem>>, vector<32x128xbf16>
    %c0_108 = arith.constant 0 : index
    %c0_109 = arith.constant 0 : index
    %682 = vector.load %arg11[%c0_108, %c0_109] : memref<32x128xbf16, #tpu.memory_space<vmem>>, vector<32x128xbf16>
    %c0_110 = arith.constant 0 : index
    %c0_111 = arith.constant 0 : index
    %683 = vector.load %arg12[%c0_110, %c0_111] : memref<1x128xf32, #tpu.memory_space<vmem>>, vector<1x128xf32>
    %684 = arith.truncf %679 : vector<64x32xf32> to vector<64x32xbf16>
    %cst_112 = arith.constant dense<0.000000e+00> : vector<64x128xf32>
    %685 = tpu.matmul %684, %681, %cst_112 {dimension_numbers = #tpu.dot_dimension_numbers<[1], [0], [0], [1], [0, 0, 1, 1], [], []>} : vector<64x32xbf16>, vector<32x128xbf16>, vector<64x128xf32> -> vector<64x128xf32>
    %cst_113 = arith.constant 0.000000e+00 : f32
    %686 = vector.broadcast %cst_113 : f32 to vector<8x32xf32>
    %cst_114 = arith.constant 0.000000e+00 : f32
    %687 = vector.broadcast %cst_114 : f32 to vector<8x32xf32>
    %688 = vector.extract_strided_slice %685 {offsets = [0, 0], sizes = [8, 128], strides = [1, 1]} : vector<64x128xf32> to vector<8x128xf32>
    %689 = arith.truncf %686 : vector<8x32xf32> to vector<8x32xbf16>
    %cst_115 = arith.constant dense<0.000000e+00> : vector<8x128xf32>
    %690 = tpu.matmul %689, %682, %cst_115 {dimension_numbers = #tpu.dot_dimension_numbers<[1], [0], [0], [1], [0, 0, 1, 1], [], []>} : vector<8x32xbf16>, vector<32x128xbf16>, vector<8x128xf32> -> vector<8x128xf32>
    %691 = arith.addf %688, %690 : vector<8x128xf32>
    %692 = vector.broadcast %683 : vector<1x128xf32> to vector<8x128xf32>
    %693 = arith.addf %691, %692 : vector<8x128xf32>
    %694 = vector.extract_strided_slice %693 {offsets = [0, 0], sizes = [8, 32], strides = [1, 1]} : vector<8x128xf32> to vector<8x32xf32>
    %695 = arith.negf %694 : vector<8x32xf32>
    %696 = math.exp %695 : vector<8x32xf32>
    %cst_116 = arith.constant 1.000000e+00 : f32
    %697 = vector.broadcast %cst_116 : f32 to vector<8x32xf32>
    %698 = arith.addf %697, %696 : vector<8x32xf32>
    %699 = arith.divf %697, %698 : vector<8x32xf32>
    %700 = vector.extract_strided_slice %693 {offsets = [0, 32], sizes = [8, 32], strides = [1, 1]} : vector<8x128xf32> to vector<8x32xf32>
    %701 = arith.negf %700 : vector<8x32xf32>
    %702 = math.exp %701 : vector<8x32xf32>
    %cst_117 = arith.constant 1.000000e+00 : f32
    %703 = vector.broadcast %cst_117 : f32 to vector<8x32xf32>
    %704 = arith.addf %703, %702 : vector<8x32xf32>
    %705 = arith.divf %703, %704 : vector<8x32xf32>
    %706 = vector.extract_strided_slice %693 {offsets = [0, 64], sizes = [8, 32], strides = [1, 1]} : vector<8x128xf32> to vector<8x32xf32>
    %707 = math.tanh %706 : vector<8x32xf32>
    %708 = vector.extract_strided_slice %693 {offsets = [0, 96], sizes = [8, 32], strides = [1, 1]} : vector<8x128xf32> to vector<8x32xf32>
    %709 = arith.negf %708 : vector<8x32xf32>
    %710 = math.exp %709 : vector<8x32xf32>
    %cst_118 = arith.constant 1.000000e+00 : f32
    %711 = vector.broadcast %cst_118 : f32 to vector<8x32xf32>
    %712 = arith.addf %711, %710 : vector<8x32xf32>
    %713 = arith.divf %711, %712 : vector<8x32xf32>
    %714 = arith.mulf %705, %687 : vector<8x32xf32>
    %715 = arith.mulf %699, %707 : vector<8x32xf32>
    %716 = arith.addf %714, %715 : vector<8x32xf32>
    %717 = math.tanh %716 : vector<8x32xf32>
    %718 = arith.mulf %713, %717 : vector<8x32xf32>
    %c0_i32_119 = arith.constant 0 : i32
    %719 = vector.broadcast %c0_i32_119 : i32 to vector<8x1xi32>
    %720 = arith.cmpi sgt, %0, %719 : vector<8x1xi32>
    %721 = vector.shape_cast %720 : vector<8x1xi1> to vector<8x1xi1>
    %722 = vector.broadcast %721 : vector<8x1xi1> to vector<8x32xi1>
    %723 = arith.select %722, %718, %686 : vector<8x32xi1>, vector<8x32xf32>
    %724 = vector.shape_cast %720 : vector<8x1xi1> to vector<8x1xi1>
    %725 = vector.broadcast %724 : vector<8x1xi1> to vector<8x32xi1>
    %726 = arith.select %725, %716, %687 : vector<8x32xi1>, vector<8x32xf32>
    %727 = vector.extract_strided_slice %685 {offsets = [8, 0], sizes = [8, 128], strides = [1, 1]} : vector<64x128xf32> to vector<8x128xf32>
    %728 = arith.truncf %723 : vector<8x32xf32> to vector<8x32xbf16>
    %cst_120 = arith.constant dense<0.000000e+00> : vector<8x128xf32>
    %729 = tpu.matmul %728, %682, %cst_120 {dimension_numbers = #tpu.dot_dimension_numbers<[1], [0], [0], [1], [0, 0, 1, 1], [], []>} : vector<8x32xbf16>, vector<32x128xbf16>, vector<8x128xf32> -> vector<8x128xf32>
    %730 = arith.addf %727, %729 : vector<8x128xf32>
    %731 = vector.broadcast %683 : vector<1x128xf32> to vector<8x128xf32>
    %732 = arith.addf %730, %731 : vector<8x128xf32>
    %733 = vector.extract_strided_slice %732 {offsets = [0, 0], sizes = [8, 32], strides = [1, 1]} : vector<8x128xf32> to vector<8x32xf32>
    %734 = arith.negf %733 : vector<8x32xf32>
    %735 = math.exp %734 : vector<8x32xf32>
    %cst_121 = arith.constant 1.000000e+00 : f32
    %736 = vector.broadcast %cst_121 : f32 to vector<8x32xf32>
    %737 = arith.addf %736, %735 : vector<8x32xf32>
    %738 = arith.divf %736, %737 : vector<8x32xf32>
    %739 = vector.extract_strided_slice %732 {offsets = [0, 32], sizes = [8, 32], strides = [1, 1]} : vector<8x128xf32> to vector<8x32xf32>
    %740 = arith.negf %739 : vector<8x32xf32>
    %741 = math.exp %740 : vector<8x32xf32>
    %cst_122 = arith.constant 1.000000e+00 : f32
    %742 = vector.broadcast %cst_122 : f32 to vector<8x32xf32>
    %743 = arith.addf %742, %741 : vector<8x32xf32>
    %744 = arith.divf %742, %743 : vector<8x32xf32>
    %745 = vector.extract_strided_slice %732 {offsets = [0, 64], sizes = [8, 32], strides = [1, 1]} : vector<8x128xf32> to vector<8x32xf32>
    %746 = math.tanh %745 : vector<8x32xf32>
    %747 = vector.extract_strided_slice %732 {offsets = [0, 96], sizes = [8, 32], strides = [1, 1]} : vector<8x128xf32> to vector<8x32xf32>
    %748 = arith.negf %747 : vector<8x32xf32>
    %749 = math.exp %748 : vector<8x32xf32>
    %cst_123 = arith.constant 1.000000e+00 : f32
    %750 = vector.broadcast %cst_123 : f32 to vector<8x32xf32>
    %751 = arith.addf %750, %749 : vector<8x32xf32>
    %752 = arith.divf %750, %751 : vector<8x32xf32>
    %753 = arith.mulf %744, %726 : vector<8x32xf32>
    %754 = arith.mulf %738, %746 : vector<8x32xf32>
    %755 = arith.addf %753, %754 : vector<8x32xf32>
    %756 = math.tanh %755 : vector<8x32xf32>
    %757 = arith.mulf %752, %756 : vector<8x32xf32>
    %c1_i32_124 = arith.constant 1 : i32
    %758 = vector.broadcast %c1_i32_124 : i32 to vector<8x1xi32>
    %759 = arith.cmpi sgt, %0, %758 : vector<8x1xi32>
    %760 = vector.shape_cast %759 : vector<8x1xi1> to vector<8x1xi1>
    %761 = vector.broadcast %760 : vector<8x1xi1> to vector<8x32xi1>
    %762 = arith.select %761, %757, %723 : vector<8x32xi1>, vector<8x32xf32>
    %763 = vector.shape_cast %759 : vector<8x1xi1> to vector<8x1xi1>
    %764 = vector.broadcast %763 : vector<8x1xi1> to vector<8x32xi1>
    %765 = arith.select %764, %755, %726 : vector<8x32xi1>, vector<8x32xf32>
    %766 = vector.extract_strided_slice %685 {offsets = [16, 0], sizes = [8, 128], strides = [1, 1]} : vector<64x128xf32> to vector<8x128xf32>
    %767 = arith.truncf %762 : vector<8x32xf32> to vector<8x32xbf16>
    %cst_125 = arith.constant dense<0.000000e+00> : vector<8x128xf32>
    %768 = tpu.matmul %767, %682, %cst_125 {dimension_numbers = #tpu.dot_dimension_numbers<[1], [0], [0], [1], [0, 0, 1, 1], [], []>} : vector<8x32xbf16>, vector<32x128xbf16>, vector<8x128xf32> -> vector<8x128xf32>
    %769 = arith.addf %766, %768 : vector<8x128xf32>
    %770 = vector.broadcast %683 : vector<1x128xf32> to vector<8x128xf32>
    %771 = arith.addf %769, %770 : vector<8x128xf32>
    %772 = vector.extract_strided_slice %771 {offsets = [0, 0], sizes = [8, 32], strides = [1, 1]} : vector<8x128xf32> to vector<8x32xf32>
    %773 = arith.negf %772 : vector<8x32xf32>
    %774 = math.exp %773 : vector<8x32xf32>
    %cst_126 = arith.constant 1.000000e+00 : f32
    %775 = vector.broadcast %cst_126 : f32 to vector<8x32xf32>
    %776 = arith.addf %775, %774 : vector<8x32xf32>
    %777 = arith.divf %775, %776 : vector<8x32xf32>
    %778 = vector.extract_strided_slice %771 {offsets = [0, 32], sizes = [8, 32], strides = [1, 1]} : vector<8x128xf32> to vector<8x32xf32>
    %779 = arith.negf %778 : vector<8x32xf32>
    %780 = math.exp %779 : vector<8x32xf32>
    %cst_127 = arith.constant 1.000000e+00 : f32
    %781 = vector.broadcast %cst_127 : f32 to vector<8x32xf32>
    %782 = arith.addf %781, %780 : vector<8x32xf32>
    %783 = arith.divf %781, %782 : vector<8x32xf32>
    %784 = vector.extract_strided_slice %771 {offsets = [0, 64], sizes = [8, 32], strides = [1, 1]} : vector<8x128xf32> to vector<8x32xf32>
    %785 = math.tanh %784 : vector<8x32xf32>
    %786 = vector.extract_strided_slice %771 {offsets = [0, 96], sizes = [8, 32], strides = [1, 1]} : vector<8x128xf32> to vector<8x32xf32>
    %787 = arith.negf %786 : vector<8x32xf32>
    %788 = math.exp %787 : vector<8x32xf32>
    %cst_128 = arith.constant 1.000000e+00 : f32
    %789 = vector.broadcast %cst_128 : f32 to vector<8x32xf32>
    %790 = arith.addf %789, %788 : vector<8x32xf32>
    %791 = arith.divf %789, %790 : vector<8x32xf32>
    %792 = arith.mulf %783, %765 : vector<8x32xf32>
    %793 = arith.mulf %777, %785 : vector<8x32xf32>
    %794 = arith.addf %792, %793 : vector<8x32xf32>
    %795 = math.tanh %794 : vector<8x32xf32>
    %796 = arith.mulf %791, %795 : vector<8x32xf32>
    %c2_i32_129 = arith.constant 2 : i32
    %797 = vector.broadcast %c2_i32_129 : i32 to vector<8x1xi32>
    %798 = arith.cmpi sgt, %0, %797 : vector<8x1xi32>
    %799 = vector.shape_cast %798 : vector<8x1xi1> to vector<8x1xi1>
    %800 = vector.broadcast %799 : vector<8x1xi1> to vector<8x32xi1>
    %801 = arith.select %800, %796, %762 : vector<8x32xi1>, vector<8x32xf32>
    %802 = vector.shape_cast %798 : vector<8x1xi1> to vector<8x1xi1>
    %803 = vector.broadcast %802 : vector<8x1xi1> to vector<8x32xi1>
    %804 = arith.select %803, %794, %765 : vector<8x32xi1>, vector<8x32xf32>
    %805 = vector.extract_strided_slice %685 {offsets = [24, 0], sizes = [8, 128], strides = [1, 1]} : vector<64x128xf32> to vector<8x128xf32>
    %806 = arith.truncf %801 : vector<8x32xf32> to vector<8x32xbf16>
    %cst_130 = arith.constant dense<0.000000e+00> : vector<8x128xf32>
    %807 = tpu.matmul %806, %682, %cst_130 {dimension_numbers = #tpu.dot_dimension_numbers<[1], [0], [0], [1], [0, 0, 1, 1], [], []>} : vector<8x32xbf16>, vector<32x128xbf16>, vector<8x128xf32> -> vector<8x128xf32>
    %808 = arith.addf %805, %807 : vector<8x128xf32>
    %809 = vector.broadcast %683 : vector<1x128xf32> to vector<8x128xf32>
    %810 = arith.addf %808, %809 : vector<8x128xf32>
    %811 = vector.extract_strided_slice %810 {offsets = [0, 0], sizes = [8, 32], strides = [1, 1]} : vector<8x128xf32> to vector<8x32xf32>
    %812 = arith.negf %811 : vector<8x32xf32>
    %813 = math.exp %812 : vector<8x32xf32>
    %cst_131 = arith.constant 1.000000e+00 : f32
    %814 = vector.broadcast %cst_131 : f32 to vector<8x32xf32>
    %815 = arith.addf %814, %813 : vector<8x32xf32>
    %816 = arith.divf %814, %815 : vector<8x32xf32>
    %817 = vector.extract_strided_slice %810 {offsets = [0, 32], sizes = [8, 32], strides = [1, 1]} : vector<8x128xf32> to vector<8x32xf32>
    %818 = arith.negf %817 : vector<8x32xf32>
    %819 = math.exp %818 : vector<8x32xf32>
    %cst_132 = arith.constant 1.000000e+00 : f32
    %820 = vector.broadcast %cst_132 : f32 to vector<8x32xf32>
    %821 = arith.addf %820, %819 : vector<8x32xf32>
    %822 = arith.divf %820, %821 : vector<8x32xf32>
    %823 = vector.extract_strided_slice %810 {offsets = [0, 64], sizes = [8, 32], strides = [1, 1]} : vector<8x128xf32> to vector<8x32xf32>
    %824 = math.tanh %823 : vector<8x32xf32>
    %825 = vector.extract_strided_slice %810 {offsets = [0, 96], sizes = [8, 32], strides = [1, 1]} : vector<8x128xf32> to vector<8x32xf32>
    %826 = arith.negf %825 : vector<8x32xf32>
    %827 = math.exp %826 : vector<8x32xf32>
    %cst_133 = arith.constant 1.000000e+00 : f32
    %828 = vector.broadcast %cst_133 : f32 to vector<8x32xf32>
    %829 = arith.addf %828, %827 : vector<8x32xf32>
    %830 = arith.divf %828, %829 : vector<8x32xf32>
    %831 = arith.mulf %822, %804 : vector<8x32xf32>
    %832 = arith.mulf %816, %824 : vector<8x32xf32>
    %833 = arith.addf %831, %832 : vector<8x32xf32>
    %834 = math.tanh %833 : vector<8x32xf32>
    %835 = arith.mulf %830, %834 : vector<8x32xf32>
    %c3_i32_134 = arith.constant 3 : i32
    %836 = vector.broadcast %c3_i32_134 : i32 to vector<8x1xi32>
    %837 = arith.cmpi sgt, %0, %836 : vector<8x1xi32>
    %838 = vector.shape_cast %837 : vector<8x1xi1> to vector<8x1xi1>
    %839 = vector.broadcast %838 : vector<8x1xi1> to vector<8x32xi1>
    %840 = arith.select %839, %835, %801 : vector<8x32xi1>, vector<8x32xf32>
    %841 = vector.shape_cast %837 : vector<8x1xi1> to vector<8x1xi1>
    %842 = vector.broadcast %841 : vector<8x1xi1> to vector<8x32xi1>
    %843 = arith.select %842, %833, %804 : vector<8x32xi1>, vector<8x32xf32>
    %844 = vector.extract_strided_slice %685 {offsets = [32, 0], sizes = [8, 128], strides = [1, 1]} : vector<64x128xf32> to vector<8x128xf32>
    %845 = arith.truncf %840 : vector<8x32xf32> to vector<8x32xbf16>
    %cst_135 = arith.constant dense<0.000000e+00> : vector<8x128xf32>
    %846 = tpu.matmul %845, %682, %cst_135 {dimension_numbers = #tpu.dot_dimension_numbers<[1], [0], [0], [1], [0, 0, 1, 1], [], []>} : vector<8x32xbf16>, vector<32x128xbf16>, vector<8x128xf32> -> vector<8x128xf32>
    %847 = arith.addf %844, %846 : vector<8x128xf32>
    %848 = vector.broadcast %683 : vector<1x128xf32> to vector<8x128xf32>
    %849 = arith.addf %847, %848 : vector<8x128xf32>
    %850 = vector.extract_strided_slice %849 {offsets = [0, 0], sizes = [8, 32], strides = [1, 1]} : vector<8x128xf32> to vector<8x32xf32>
    %851 = arith.negf %850 : vector<8x32xf32>
    %852 = math.exp %851 : vector<8x32xf32>
    %cst_136 = arith.constant 1.000000e+00 : f32
    %853 = vector.broadcast %cst_136 : f32 to vector<8x32xf32>
    %854 = arith.addf %853, %852 : vector<8x32xf32>
    %855 = arith.divf %853, %854 : vector<8x32xf32>
    %856 = vector.extract_strided_slice %849 {offsets = [0, 32], sizes = [8, 32], strides = [1, 1]} : vector<8x128xf32> to vector<8x32xf32>
    %857 = arith.negf %856 : vector<8x32xf32>
    %858 = math.exp %857 : vector<8x32xf32>
    %cst_137 = arith.constant 1.000000e+00 : f32
    %859 = vector.broadcast %cst_137 : f32 to vector<8x32xf32>
    %860 = arith.addf %859, %858 : vector<8x32xf32>
    %861 = arith.divf %859, %860 : vector<8x32xf32>
    %862 = vector.extract_strided_slice %849 {offsets = [0, 64], sizes = [8, 32], strides = [1, 1]} : vector<8x128xf32> to vector<8x32xf32>
    %863 = math.tanh %862 : vector<8x32xf32>
    %864 = vector.extract_strided_slice %849 {offsets = [0, 96], sizes = [8, 32], strides = [1, 1]} : vector<8x128xf32> to vector<8x32xf32>
    %865 = arith.negf %864 : vector<8x32xf32>
    %866 = math.exp %865 : vector<8x32xf32>
    %cst_138 = arith.constant 1.000000e+00 : f32
    %867 = vector.broadcast %cst_138 : f32 to vector<8x32xf32>
    %868 = arith.addf %867, %866 : vector<8x32xf32>
    %869 = arith.divf %867, %868 : vector<8x32xf32>
    %870 = arith.mulf %861, %843 : vector<8x32xf32>
    %871 = arith.mulf %855, %863 : vector<8x32xf32>
    %872 = arith.addf %870, %871 : vector<8x32xf32>
    %873 = math.tanh %872 : vector<8x32xf32>
    %874 = arith.mulf %869, %873 : vector<8x32xf32>
    %c4_i32_139 = arith.constant 4 : i32
    %875 = vector.broadcast %c4_i32_139 : i32 to vector<8x1xi32>
    %876 = arith.cmpi sgt, %0, %875 : vector<8x1xi32>
    %877 = vector.shape_cast %876 : vector<8x1xi1> to vector<8x1xi1>
    %878 = vector.broadcast %877 : vector<8x1xi1> to vector<8x32xi1>
    %879 = arith.select %878, %874, %840 : vector<8x32xi1>, vector<8x32xf32>
    %880 = vector.shape_cast %876 : vector<8x1xi1> to vector<8x1xi1>
    %881 = vector.broadcast %880 : vector<8x1xi1> to vector<8x32xi1>
    %882 = arith.select %881, %872, %843 : vector<8x32xi1>, vector<8x32xf32>
    %883 = vector.extract_strided_slice %685 {offsets = [40, 0], sizes = [8, 128], strides = [1, 1]} : vector<64x128xf32> to vector<8x128xf32>
    %884 = arith.truncf %879 : vector<8x32xf32> to vector<8x32xbf16>
    %cst_140 = arith.constant dense<0.000000e+00> : vector<8x128xf32>
    %885 = tpu.matmul %884, %682, %cst_140 {dimension_numbers = #tpu.dot_dimension_numbers<[1], [0], [0], [1], [0, 0, 1, 1], [], []>} : vector<8x32xbf16>, vector<32x128xbf16>, vector<8x128xf32> -> vector<8x128xf32>
    %886 = arith.addf %883, %885 : vector<8x128xf32>
    %887 = vector.broadcast %683 : vector<1x128xf32> to vector<8x128xf32>
    %888 = arith.addf %886, %887 : vector<8x128xf32>
    %889 = vector.extract_strided_slice %888 {offsets = [0, 0], sizes = [8, 32], strides = [1, 1]} : vector<8x128xf32> to vector<8x32xf32>
    %890 = arith.negf %889 : vector<8x32xf32>
    %891 = math.exp %890 : vector<8x32xf32>
    %cst_141 = arith.constant 1.000000e+00 : f32
    %892 = vector.broadcast %cst_141 : f32 to vector<8x32xf32>
    %893 = arith.addf %892, %891 : vector<8x32xf32>
    %894 = arith.divf %892, %893 : vector<8x32xf32>
    %895 = vector.extract_strided_slice %888 {offsets = [0, 32], sizes = [8, 32], strides = [1, 1]} : vector<8x128xf32> to vector<8x32xf32>
    %896 = arith.negf %895 : vector<8x32xf32>
    %897 = math.exp %896 : vector<8x32xf32>
    %cst_142 = arith.constant 1.000000e+00 : f32
    %898 = vector.broadcast %cst_142 : f32 to vector<8x32xf32>
    %899 = arith.addf %898, %897 : vector<8x32xf32>
    %900 = arith.divf %898, %899 : vector<8x32xf32>
    %901 = vector.extract_strided_slice %888 {offsets = [0, 64], sizes = [8, 32], strides = [1, 1]} : vector<8x128xf32> to vector<8x32xf32>
    %902 = math.tanh %901 : vector<8x32xf32>
    %903 = vector.extract_strided_slice %888 {offsets = [0, 96], sizes = [8, 32], strides = [1, 1]} : vector<8x128xf32> to vector<8x32xf32>
    %904 = arith.negf %903 : vector<8x32xf32>
    %905 = math.exp %904 : vector<8x32xf32>
    %cst_143 = arith.constant 1.000000e+00 : f32
    %906 = vector.broadcast %cst_143 : f32 to vector<8x32xf32>
    %907 = arith.addf %906, %905 : vector<8x32xf32>
    %908 = arith.divf %906, %907 : vector<8x32xf32>
    %909 = arith.mulf %900, %882 : vector<8x32xf32>
    %910 = arith.mulf %894, %902 : vector<8x32xf32>
    %911 = arith.addf %909, %910 : vector<8x32xf32>
    %912 = math.tanh %911 : vector<8x32xf32>
    %913 = arith.mulf %908, %912 : vector<8x32xf32>
    %c5_i32_144 = arith.constant 5 : i32
    %914 = vector.broadcast %c5_i32_144 : i32 to vector<8x1xi32>
    %915 = arith.cmpi sgt, %0, %914 : vector<8x1xi32>
    %916 = vector.shape_cast %915 : vector<8x1xi1> to vector<8x1xi1>
    %917 = vector.broadcast %916 : vector<8x1xi1> to vector<8x32xi1>
    %918 = arith.select %917, %913, %879 : vector<8x32xi1>, vector<8x32xf32>
    %919 = vector.shape_cast %915 : vector<8x1xi1> to vector<8x1xi1>
    %920 = vector.broadcast %919 : vector<8x1xi1> to vector<8x32xi1>
    %921 = arith.select %920, %911, %882 : vector<8x32xi1>, vector<8x32xf32>
    %922 = vector.extract_strided_slice %685 {offsets = [48, 0], sizes = [8, 128], strides = [1, 1]} : vector<64x128xf32> to vector<8x128xf32>
    %923 = arith.truncf %918 : vector<8x32xf32> to vector<8x32xbf16>
    %cst_145 = arith.constant dense<0.000000e+00> : vector<8x128xf32>
    %924 = tpu.matmul %923, %682, %cst_145 {dimension_numbers = #tpu.dot_dimension_numbers<[1], [0], [0], [1], [0, 0, 1, 1], [], []>} : vector<8x32xbf16>, vector<32x128xbf16>, vector<8x128xf32> -> vector<8x128xf32>
    %925 = arith.addf %922, %924 : vector<8x128xf32>
    %926 = vector.broadcast %683 : vector<1x128xf32> to vector<8x128xf32>
    %927 = arith.addf %925, %926 : vector<8x128xf32>
    %928 = vector.extract_strided_slice %927 {offsets = [0, 0], sizes = [8, 32], strides = [1, 1]} : vector<8x128xf32> to vector<8x32xf32>
    %929 = arith.negf %928 : vector<8x32xf32>
    %930 = math.exp %929 : vector<8x32xf32>
    %cst_146 = arith.constant 1.000000e+00 : f32
    %931 = vector.broadcast %cst_146 : f32 to vector<8x32xf32>
    %932 = arith.addf %931, %930 : vector<8x32xf32>
    %933 = arith.divf %931, %932 : vector<8x32xf32>
    %934 = vector.extract_strided_slice %927 {offsets = [0, 32], sizes = [8, 32], strides = [1, 1]} : vector<8x128xf32> to vector<8x32xf32>
    %935 = arith.negf %934 : vector<8x32xf32>
    %936 = math.exp %935 : vector<8x32xf32>
    %cst_147 = arith.constant 1.000000e+00 : f32
    %937 = vector.broadcast %cst_147 : f32 to vector<8x32xf32>
    %938 = arith.addf %937, %936 : vector<8x32xf32>
    %939 = arith.divf %937, %938 : vector<8x32xf32>
    %940 = vector.extract_strided_slice %927 {offsets = [0, 64], sizes = [8, 32], strides = [1, 1]} : vector<8x128xf32> to vector<8x32xf32>
    %941 = math.tanh %940 : vector<8x32xf32>
    %942 = vector.extract_strided_slice %927 {offsets = [0, 96], sizes = [8, 32], strides = [1, 1]} : vector<8x128xf32> to vector<8x32xf32>
    %943 = arith.negf %942 : vector<8x32xf32>
    %944 = math.exp %943 : vector<8x32xf32>
    %cst_148 = arith.constant 1.000000e+00 : f32
    %945 = vector.broadcast %cst_148 : f32 to vector<8x32xf32>
    %946 = arith.addf %945, %944 : vector<8x32xf32>
    %947 = arith.divf %945, %946 : vector<8x32xf32>
    %948 = arith.mulf %939, %921 : vector<8x32xf32>
    %949 = arith.mulf %933, %941 : vector<8x32xf32>
    %950 = arith.addf %948, %949 : vector<8x32xf32>
    %951 = math.tanh %950 : vector<8x32xf32>
    %952 = arith.mulf %947, %951 : vector<8x32xf32>
    %c6_i32_149 = arith.constant 6 : i32
    %953 = vector.broadcast %c6_i32_149 : i32 to vector<8x1xi32>
    %954 = arith.cmpi sgt, %0, %953 : vector<8x1xi32>
    %955 = vector.shape_cast %954 : vector<8x1xi1> to vector<8x1xi1>
    %956 = vector.broadcast %955 : vector<8x1xi1> to vector<8x32xi1>
    %957 = arith.select %956, %952, %918 : vector<8x32xi1>, vector<8x32xf32>
    %958 = vector.shape_cast %954 : vector<8x1xi1> to vector<8x1xi1>
    %959 = vector.broadcast %958 : vector<8x1xi1> to vector<8x32xi1>
    %960 = arith.select %959, %950, %921 : vector<8x32xi1>, vector<8x32xf32>
    %961 = vector.extract_strided_slice %685 {offsets = [56, 0], sizes = [8, 128], strides = [1, 1]} : vector<64x128xf32> to vector<8x128xf32>
    %962 = arith.truncf %957 : vector<8x32xf32> to vector<8x32xbf16>
    %cst_150 = arith.constant dense<0.000000e+00> : vector<8x128xf32>
    %963 = tpu.matmul %962, %682, %cst_150 {dimension_numbers = #tpu.dot_dimension_numbers<[1], [0], [0], [1], [0, 0, 1, 1], [], []>} : vector<8x32xbf16>, vector<32x128xbf16>, vector<8x128xf32> -> vector<8x128xf32>
    %964 = arith.addf %961, %963 : vector<8x128xf32>
    %965 = vector.broadcast %683 : vector<1x128xf32> to vector<8x128xf32>
    %966 = arith.addf %964, %965 : vector<8x128xf32>
    %967 = vector.extract_strided_slice %966 {offsets = [0, 0], sizes = [8, 32], strides = [1, 1]} : vector<8x128xf32> to vector<8x32xf32>
    %968 = arith.negf %967 : vector<8x32xf32>
    %969 = math.exp %968 : vector<8x32xf32>
    %cst_151 = arith.constant 1.000000e+00 : f32
    %970 = vector.broadcast %cst_151 : f32 to vector<8x32xf32>
    %971 = arith.addf %970, %969 : vector<8x32xf32>
    %972 = arith.divf %970, %971 : vector<8x32xf32>
    %973 = vector.extract_strided_slice %966 {offsets = [0, 32], sizes = [8, 32], strides = [1, 1]} : vector<8x128xf32> to vector<8x32xf32>
    %974 = arith.negf %973 : vector<8x32xf32>
    %975 = math.exp %974 : vector<8x32xf32>
    %cst_152 = arith.constant 1.000000e+00 : f32
    %976 = vector.broadcast %cst_152 : f32 to vector<8x32xf32>
    %977 = arith.addf %976, %975 : vector<8x32xf32>
    %978 = arith.divf %976, %977 : vector<8x32xf32>
    %979 = vector.extract_strided_slice %966 {offsets = [0, 64], sizes = [8, 32], strides = [1, 1]} : vector<8x128xf32> to vector<8x32xf32>
    %980 = math.tanh %979 : vector<8x32xf32>
    %981 = vector.extract_strided_slice %966 {offsets = [0, 96], sizes = [8, 32], strides = [1, 1]} : vector<8x128xf32> to vector<8x32xf32>
    %982 = arith.negf %981 : vector<8x32xf32>
    %983 = math.exp %982 : vector<8x32xf32>
    %cst_153 = arith.constant 1.000000e+00 : f32
    %984 = vector.broadcast %cst_153 : f32 to vector<8x32xf32>
    %985 = arith.addf %984, %983 : vector<8x32xf32>
    %986 = arith.divf %984, %985 : vector<8x32xf32>
    %987 = arith.mulf %978, %960 : vector<8x32xf32>
    %988 = arith.mulf %972, %980 : vector<8x32xf32>
    %989 = arith.addf %987, %988 : vector<8x32xf32>
    %990 = math.tanh %989 : vector<8x32xf32>
    %991 = arith.mulf %986, %990 : vector<8x32xf32>
    %c7_i32_154 = arith.constant 7 : i32
    %992 = vector.broadcast %c7_i32_154 : i32 to vector<8x1xi32>
    %993 = arith.cmpi sgt, %0, %992 : vector<8x1xi32>
    %cst_155 = arith.constant 0.000000e+00 : f32
    %994 = vector.shape_cast %993 : vector<8x1xi1> to vector<8x1xi1>
    %995 = vector.broadcast %994 : vector<8x1xi1> to vector<8x32xi1>
    %996 = vector.broadcast %cst_155 : f32 to vector<8x32xf32>
    %997 = arith.select %995, %991, %996 : vector<8x32xi1>, vector<8x32xf32>
    %998 = arith.mulf %997, %680 : vector<8x32xf32>
    %999 = arith.truncf %998 : vector<8x32xf32> to vector<8x32xbf16>
    %c0_156 = arith.constant 0 : index
    %c0_157 = arith.constant 0 : index
    %1000 = vector.load %arg13[%c0_156, %c0_157] : memref<32x16xbf16, #tpu.memory_space<vmem>>, vector<32x16xbf16>
    %cst_158 = arith.constant dense<0.000000e+00> : vector<8x16xf32>
    %1001 = tpu.matmul %999, %1000, %cst_158 {dimension_numbers = #tpu.dot_dimension_numbers<[1], [0], [0], [1], [0, 0, 1, 1], [], []>} : vector<8x32xbf16>, vector<32x16xbf16>, vector<8x16xf32> -> vector<8x16xf32>
    %c0_159 = arith.constant 0 : index
    %c0_160 = arith.constant 0 : index
    %1002 = vector.load %arg14[%c0_159, %c0_160] : memref<1x16xf32, #tpu.memory_space<vmem>>, vector<1x16xf32>
    %1003 = vector.broadcast %1002 : vector<1x16xf32> to vector<8x16xf32>
    %1004 = arith.addf %1001, %1003 : vector<8x16xf32>
    %c0_161 = arith.constant 0 : index
    %c0_162 = arith.constant 0 : index
    %1005 = vector.load %arg15[%c0_161, %c0_162] : memref<8x16xf32, #tpu.memory_space<vmem>>, vector<8x16xf32>
    tpu.vector_store %arg15[%c0_161, %c0_162], %1004 {strides = array<i32>} : memref<8x16xf32, #tpu.memory_space<vmem>>, vector<8x16xf32>,
    return
  }
}

</mosaic_0001>

<bundles_post_ra>
// kernel: tpu_custom_call.1
= control target key start
LH: loop header
LB: loop body
LE: loop exit
PB: predicated region body
PF: predicated region fallthrough
CT: control target
= control target key end

     0   :  { %20 = vsyncpa [#allocation3], 0  ;;  %s3948_s0 = inlined_call_operand.vmem [shape: f32[64,28], index: 0, kind: input, shape index: {}]   ;;  %s3949_s1 = inlined_call_operand.vmem [shape: s32[8,1], index: 1, kind: input, shape index: {}]   ;;  %s3950_s2 = inlined_call_operand.vmem [shape: bf16[28,128], index: 2, kind: input, shape index: {}]   ;;  %s3951_s3 = inlined_call_operand.vmem [shape: bf16[32,128], index: 3, kind: input, shape index: {}]   ;;  %s3952_s4 = inlined_call_operand.hbm [shape: f32[1,128], index: 4, kind: input, shape index: {}]   ;;  %s3953_s5 = inlined_call_operand.vmem [shape: bf16[32,64], index: 5, kind: input, shape index: {}]   ;;  %s3954_s6 = inlined_call_operand.vmem [shape: f32[1,64], index: 6, kind: input, shape index: {}]   ;;  %s3955_s7 = inlined_call_operand.vmem [shape: bf16[28,128], index: 7, kind: input, shape index: {}]   ;;  %s3956_s8 = inlined_call_operand.vmem [shape: bf16[32,128], index: 8, kind: input, shape index: {}]   ;;  %s3957_s9 = inlined_call_operand.vmem [shape: f32[1,128], index: 9, kind: input, shape index: {}]   ;;  %s3958_s10 = inlined_call_operand.vmem [shape: bf16[32,128], index: 10, kind: input, shape index: {}]   ;;  %s3959_s11 = inlined_call_operand.vmem [shape: bf16[32,128], index: 11, kind: input, shape index: {}]   ;;  %s3960_s12 = inlined_call_operand.vmem [shape: f32[1,128], index: 12, kind: input, shape index: {}]   ;;  %s3961_s13 = inlined_call_operand.vmem [shape: bf16[32,16], index: 13, kind: input, shape index: {}]   ;;  %s3962_s14 = inlined_call_operand.vmem [shape: f32[1,16], index: 14, kind: input, shape index: {}]   ;;  %s3963_s15 = inlined_call_operand.hbm [shape: f32[8,16], index: 15, kind: output, shape index: {}]  }
   0x1   :  { %21 = vsyncpa [#allocation4], 0  ;;  %s3130_s18 = smov [#allocation2]   ;;  %s3082_s22 = scalar_lea.hbm %s3952_s4, 16 }
   0x2   :  { %s36_s19 = sshll.u32 %s3130_s18, 4  ;;  %p3083_p0 = scmp.ne.s32.totalorder %s3952_s4, %s3082_s22  ;;  %s37_s19 = int_to_ptr.vmem [resolvable:$true] %s36_s19 }
   0x3   :  { %p3086_p1 = scmp.lt.u32.totalorder %s3082_s22, %s3952_s4 }
   0x5   :  { %p3088_p2 = pnand %p3086_p1, %p3083_p0 }
   0x7   :  { %3091 = shalt.err (!%p3088_p2)
}
   0x8   :  { %s3092_s27 = scalar_lea.vmem %s37_s19, 16  ;;  %s3096_s28 = scalar_lea.vmem %s37_s19, 32 }
   0x9   :  { %p3093_p3 = scmp.ne.s32.totalorder %s37_s19, %s3092_s27  ;;  %p3097_p4 = scmp.lt.s32.totalorder %s37_s19, %s37_s19 }
   0xa   :  { %p3098_p5 = scmp.lt.s32.totalorder %s3096_s28, %s3092_s27 }
   0xc   :  { %p3099_p6 = por %p3098_p5, %p3097_p4 }
   0xe   :  { %p3100_p7 = pnand %p3099_p6, %p3093_p3 }
  0x10   :  { %3103 = shalt.err (!%p3100_p7)
}
  0x11   :  { %39 = dma.hbm_to_vmem [thread:$0]  %s3952_s4, 16, %s37_s19, [#allocation3]  }
  0x12   :  { %3126 = dma.done.wait [#allocation3], 16  }
  0x13   :  { %3127 = vsyncadd [#allocation3], 4294967280  ;;  %v3131_v0 = vmov 0.0   ;;  %vm3132_vm0 = vmmov 0   ;;  %v3133_v1 = vmov 0   ;;  %v2874_v2 = vld [vmem:[%s3950_s2] sm:$0xff]  }
  0x14   :  { %2630 = vmatprep.subr.bf16.mxu1 %v3131_v0  ;;  %2634 = vmatprep.mubr.msk.bf16.mxu1 %vm3132_vm0, %v3131_v0  ;;  %v3241_v3 = vld [vmem:[%s3951_s3] sm:$0xff]   ;;  %vm110_vm1 = vcmask 1045504   ;;  %v2876_v4 = vld [vmem:[%s3950_s2 + $0x8] sm:$0x3f]   ;;  %v67_v9 = vld [vmem:[%s3948_s0 + $0x10] sm:$0xff]  ;;  %vm97_vm2 = vcmask 228352  }
  0x15   :  { %2872 = vset.pattern.permute.xlu1 %v3133_v1  ;;  %2873 = vset.pattern.permute.xlu0 %v3133_v1  ;;  %v3250_v5 = vld [vmem:[%s3951_s3 + $0x8] sm:$0xff]   ;;  %v112_v6 = vsel %vm110_vm1, %v2876_v4, 0  ;;  %v65_v7 = vld [vmem:[%s3948_s0] sm:$0xff]  ;;  %v68_v11 = vld [vmem:[%s3948_s0 + $0x18] sm:$0xff]  ;;  %s3135_s16 = smov 32   ;;  %vm191_vm5 = vcmask 261120  }
  0x16   :  { %2618 = vmatprep.subr.bf16.mxu0 %v2874_v2  ;;  %2631 = vmatpush3.bf16.msra.mxu1 %v3241_v3  ;;  %v66_v8 = vld [vmem:[%s3948_s0 + $0x8] sm:$0xff]  ;;  %v3269_v12 = vpack.c.bf16 %v68_v11, %v67_v9  ;;  %v3292_v13 = vld [vmem:[%s3949_s1] sm:$0xff]  ;;  %s3134_s1 = smov 64   ;;  %v71_v63 = vld [vmem:[%s3948_s0 + $0x30] sm:$0xff]  ;;  %s3136_s4 = smov 96  }
  0x17   :  { %2619 = vmatpush3.bf16.msra.mxu0 %v2874_v2  ;;  %2632 = vmatprep.subr.bf16.mxu1 %v3131_v0  ;;  %v3264_v10 = vpack.c.bf16 %v66_v8, %v65_v7  ;;  %vm267_vm3 = vcmp.gt.s32.totalorder %v3292_v13, 0  ;;  %v3298_v18 = vld [vmem:[#allocation2] ss:$0 sm:$0xff]  ;;  %vm348_vm6 = vcmp.gt.s32.totalorder %v3292_v13, 1  ;;  %v70_v62 = vld [vmem:[%s3948_s0 + $0x28] sm:$0xff]  ;;  %vm429_vm8 = vcmp.gt.s32.totalorder %v3292_v13, 2 }
  0x18   :  { %2862 = vmatprep.subr.msk.bf16.mxu0 %vm110_vm1, %v2876_v4  ;;  %v268_v14 = vsel %vm267_vm3, 1, %v3133_v1  ;;  %v349_v50 = vsel %vm348_vm6, 1, %v3133_v1  ;;  %v69_v61 = vld [vmem:[%s3948_s0 + $0x20] sm:$0xff]  ;;  %v72_v4 = vld [vmem:[%s3948_s0 + $0x38] sm:$0xff]  ;;  %vm510_vm10 = vcmp.gt.s32.totalorder %v3292_v13, 3  ;;  %vm591_vm12 = vcmp.gt.s32.totalorder %v3292_v13, 4 }
  0x19   :  { %2622 = vmatprep.mubr.msk.bf16.mxu0 %vm97_vm2, %v3264_v10  ;;  %270 = vperm.xlu1 %2872, %v268_v14   ;;  %v3335_v2 = vpack.c.bf16 %v70_v62, %v69_v61  ;;  %vm672_vm14 = vcmp.gt.s32.totalorder %v3292_v13, 5  ;;  %vm753_vm3 = vcmp.gt.s32.totalorder %v3292_v13, 6  ;;  %s3137_s3 = smov [#allocation5]  }
  0x1a   :  { %2633 = vmatpush3.bf16.msra.mxu1 %v3250_v5 }
  0x1b   :  { %2621 = vmatpush3.bf16.msra.mxu0 %v112_v6  ;;  %2638 = vmatprep.subr.bf16.mxu1 %v3131_v0  ;;  %v3340_v6 = vpack.c.bf16 %v72_v4, %v71_v63 }
  0x1c   :  { %2646 = vmatprep.subr.bf16.mxu0 %v3131_v0 }
  0x1d   :  { %2635 = vmatmul.mubr.bf16.vlgmr.msra.gmra.mrb[0].mxu1 %v3133_v1 }
  0x1e   :  { %2623 = vmatmul.mubr.msk.bf16.vlgmr.msra.gmra.mrb[0].mxu0 %vm97_vm2, %v3269_v12  ;;  %2639 = vmatpush3.bf16.msra.mxu1 %v3241_v3 }
  0x1f   :  { %2642 = vmatprep.mubr.msk.bf16.mxu1 %vm3132_vm0, %v3131_v0  ;;  %2640 = vmatprep.subr.bf16.mxu1 %v3131_v0 }
  0x20   :  { %2647 = vmatpush3.bf16.msra.mxu0 %v3241_v3  ;;  %2626 = vmatprep.mubr.msk.bf16.mxu0 %vm97_vm2, %v3335_v2 }
  0x21   :  { %2648 = vmatprep.subr.bf16.mxu0 %v3131_v0 }
  0x22   :  { %2641 = vmatpush3.bf16.msra.mxu1 %v3250_v5 }
  0x23   :  { %2654 = vmatprep.subr.bf16.mxu1 %v3131_v0 }
  0x24   :  { %2649 = vmatpush3.bf16.msra.mxu0 %v3250_v5 }
  0x25   :  { %2662 = vmatprep.subr.bf16.mxu0 %v3131_v0 }
  0x26   :  { %2627 = vmatmul.mubr.msk.bf16.gmra.mrb[4].mxu0 %vm97_vm2, %v3340_v6 }
  0x27   :  { %2650 = vmatprep.mubr.msk.bf16.mxu0 %vm3132_vm0, %v3131_v0 }
  0x98   :  { %v3306_v37 = vpop.permute.xlu1 %270 }
  0x99   :  { %vm272_vm4 = vcmp.eq.s32.totalorder %v3306_v37, 1 }
  0xf0   :  { %v229_v15 = vpop.f32.mrb[0].mxu1 }
  0xf1   :  { %v3296_v16 = vpop.f32.mrb[0].mxu0  ;;  %v2636_v17 = vpop.f32.mrb[1].mxu1 }
  0xf2   :  { %v148_v19 = vpop.f32.mrb[1].mxu0  ;;  %v232_v21 = vpop.f32.mrb[2].mxu1 }
  0xf3   :  { %v235_v20 = vadd.f32 %v229_v15, %v148_v19  ;;  %v3300_v22 = vpop.f32.mrb[2].mxu0  ;;  %v2637_v23 = vpop.f32.mrb[3].mxu1 }
  0xf4   :  { %v151_v24 = vpop.f32.mrb[3].mxu0 }
  0xf5   :  { %v242_v25 = vadd.f32 %v3298_v18, %v235_v20 }
  0xf7   :  { %2890 = vtanh.f32 %v242_v25  ;;  %v2451_v27 = vmul.f32 -1.442695, %v242_v25 }
  0xf9   :  { %2892 = vpow2.f32 %v2451_v27  ;;  %v3355_v17 = vpop.f32.mrb[4].mxu0 }
  0xfa   :  { %v3357_v19 = vpop.f32.mrb[5].mxu0 }
  0xfb   :  { %v3359_v20 = vpop.f32.mrb[6].mxu0 }
  0xfc   :  { %v3361_v21 = vpop.f32.mrb[7].mxu0 }
 0x101   :  { %v2891_v26 = vpop.eup %2890 }
 0x102   :  { %252 = vrot.lane.b32.xlu0 %v2891_v26, %s3134_s1 }
 0x103   :  { %v2893_v28 = vpop.eup %2892 }
 0x104   :  { %v246_v29 = vadd.f32 1.0, %v2893_v28 }
 0x106   :  { %2894 = vrcp.f32 %v246_v29 }
 0x110   :  { %v2895_v30 = vpop.eup %2894 }
 0x111   :  { %v250_v33 = vmul.f32 0.0, %v2895_v30 }
 0x174   :  { %v253_v31 = vpop.permute.xlu0 %252 }
 0x175   :  { %v255_v32 = vmul.f32 %v2895_v30, %v253_v31  ;;  %v430_v31 = vsel %vm429_vm8, 1, %v3133_v1  ;;  %vm834_vm8 = vcmp.gt.s32.totalorder %v3292_v13, 7 }
 0x177   :  { %257 = vrot.lane.b32.xlu0 %v255_v32, %s3135_s16 }
 0x1e9   :  { %v258_v34 = vpop.permute.xlu0 %257 }
 0x1ea   :  { %v260_v35 = vadd.f32 %v258_v34, %v250_v33 }
 0x1ec   :  { %2896 = vtanh.f32 %v260_v35  ;;  %v274_v57 = vsel %vm272_vm4, %v260_v35, 0.0 }
 0x1f6   :  { %v2897_v36 = vpop.eup %2896 }
 0x1f7   :  { %263 = vrot.lane.b32.xlu1 %v2897_v36, %s3134_s1 }
 0x269   :  { %v264_v38 = vpop.permute.xlu1 %263 }
 0x26a   :  { %v266_v39 = vmul.f32 %v2895_v30, %v264_v38 }
 0x26c   :  { %v273_v40 = vsel %vm272_vm4, %v266_v39, 0.0 }
 0x26d   :  { %v275_v41 = vpack.c.bf16 %v273_v40, %v273_v40 }
 0x26f   :  { %277 = vrot.lane.b32.xlu0 %v275_v41, %s3135_s16 }
 0x2e1   :  { %v278_v42 = vpop.permute.xlu0 %277 }
 0x2e2   :  { %2643 = vmatmul.mubr.msk.bf16.vlgmr.msra.gmra.mrb[4].mxu1 %vm191_vm5, %v278_v42 }
 0x2e3   :  { %2655 = vmatpush3.bf16.msra.mxu1 %v3241_v3  ;;  %2658 = vmatprep.mubr.msk.bf16.mxu1 %vm3132_vm0, %v3131_v0 }
 0x2e4   :  { %2656 = vmatprep.subr.bf16.mxu1 %v3131_v0 }
 0x2e7   :  { %2657 = vmatpush3.bf16.msra.mxu1 %v3250_v5 }
 0x2e8   :  { %2670 = vmatprep.subr.bf16.mxu1 %v3131_v0 }
 0x3b5   :  { %v316_v43 = vpop.f32.mrb[4].mxu1 }
 0x3b6   :  { %v322_v44 = vadd.f32 %v316_v43, %v151_v24  ;;  %v2644_v45 = vpop.f32.mrb[5].mxu1 }
 0x3b7   :  { %v319_v46 = vpop.f32.mrb[6].mxu1 }
 0x3b8   :  { %v323_v47 = vadd.f32 %v3298_v18, %v322_v44  ;;  %v2645_v48 = vpop.f32.mrb[7].mxu1 }
 0x3ba   :  { %2898 = vtanh.f32 %v323_v47  ;;  %v2453_v51 = vmul.f32 -1.442695, %v323_v47 }
 0x3bc   :  { %2900 = vpow2.f32 %v2453_v51 }
 0x3c4   :  { %v2899_v49 = vpop.eup %2898 }
 0x3c5   :  { %333 = vrot.lane.b32.xlu1 %v2899_v49, %s3134_s1 }
 0x3c6   :  { %v2901_v52 = vpop.eup %2900 }
 0x3c7   :  { %v327_v53 = vadd.f32 1.0, %v2901_v52 }
 0x3c9   :  { %351 = vperm.xlu1 %2872, %v349_v50   ;;  %2902 = vrcp.f32 %v327_v53 }
 0x3d3   :  { %v2903_v54 = vpop.eup %2902 }
 0x3d4   :  { %v331_v58 = vmul.f32 %v2903_v54, %v274_v57 }
 0x437   :  { %v334_v55 = vpop.permute.xlu1 %333 }
 0x438   :  { %v336_v56 = vmul.f32 %v2903_v54, %v334_v55 }
 0x43a   :  { %338 = vrot.lane.b32.xlu0 %v336_v56, %s3135_s16  ;;  %v511_v56 = vsel %vm510_vm10, 1, %v3133_v1 }
 0x448   :  { %v3349_v8 = vpop.permute.xlu1 %351 }
 0x449   :  { %vm353_vm7 = vcmp.eq.s32.totalorder %v3349_v8, 1 }
 0x4ac   :  { %v339_v59 = vpop.permute.xlu0 %338 }
 0x4ad   :  { %v341_v60 = vadd.f32 %v339_v59, %v331_v58 }
 0x4af   :  { %2904 = vtanh.f32 %v341_v60  ;;  %v355_v38 = vsel %vm353_vm7, %v341_v60, %v274_v57 }
 0x4b9   :  { %v2905_v7 = vpop.eup %2904 }
 0x4ba   :  { %344 = vrot.lane.b32.xlu0 %v2905_v7, %s3134_s1 }
 0x52c   :  { %v345_v9 = vpop.permute.xlu0 %344 }
 0x52d   :  { %v347_v11 = vmul.f32 %v2903_v54, %v345_v9 }
 0x52f   :  { %v354_v14 = vsel %vm353_vm7, %v347_v11, %v273_v40 }
 0x530   :  { %v356_v15 = vpack.c.bf16 %v354_v14, %v354_v14 }
 0x532   :  { %358 = vrot.lane.b32.xlu1 %v356_v15, %s3135_s16 }
 0x5a4   :  { %v359_v23 = vpop.permute.xlu1 %358 }
 0x5a5   :  { %2651 = vmatmul.mubr.msk.bf16.vlgmr.msra.gmra.mrb[8].mxu0 %vm191_vm5, %v359_v23 }
 0x5a6   :  { %2663 = vmatpush3.bf16.msra.mxu0 %v3241_v3  ;;  %2666 = vmatprep.mubr.msk.bf16.mxu0 %vm3132_vm0, %v3131_v0 }
 0x5a7   :  { %2664 = vmatprep.subr.bf16.mxu0 %v3131_v0 }
 0x5aa   :  { %2665 = vmatpush3.bf16.msra.mxu0 %v3250_v5 }
 0x5ab   :  { %2678 = vmatprep.subr.bf16.mxu0 %v3131_v0 }
 0x678   :  { %v397_v24 = vpop.f32.mrb[8].mxu0 }
 0x679   :  { %v403_v25 = vadd.f32 %v3296_v16, %v397_v24  ;;  %v2652_v26 = vpop.f32.mrb[9].mxu0 }
 0x67a   :  { %v400_v27 = vpop.f32.mrb[10].mxu0 }
 0x67b   :  { %v404_v28 = vadd.f32 %v3298_v18, %v403_v25  ;;  %v2653_v29 = vpop.f32.mrb[11].mxu0 }
 0x67d   :  { %2906 = vtanh.f32 %v404_v28  ;;  %v2455_v32 = vmul.f32 -1.442695, %v404_v28 }
 0x67f   :  { %2908 = vpow2.f32 %v2455_v32 }
 0x687   :  { %v2907_v30 = vpop.eup %2906 }
 0x688   :  { %414 = vrot.lane.b32.xlu0 %v2907_v30, %s3134_s1 }
 0x689   :  { %v2909_v33 = vpop.eup %2908 }
 0x68a   :  { %v408_v34 = vadd.f32 1.0, %v2909_v33  ;;  %v592_v33 = vsel %vm591_vm12, 1, %v3133_v1 }
 0x68c   :  { %432 = vperm.xlu0 %2873, %v430_v31   ;;  %2910 = vrcp.f32 %v408_v34 }
 0x696   :  { %v2911_v16 = vpop.eup %2910 }
 0x697   :  { %v412_v39 = vmul.f32 %v2911_v16, %v355_v38 }
 0x6fa   :  { %v415_v35 = vpop.permute.xlu0 %414 }
 0x6fb   :  { %v417_v36 = vmul.f32 %v2911_v16, %v415_v35 }
 0x6fd   :  { %419 = vrot.lane.b32.xlu1 %v417_v36, %s3135_s16 }
 0x70b   :  { %v3379_v43 = vpop.permute.xlu0 %432 }
 0x70c   :  { %vm434_vm9 = vcmp.eq.s32.totalorder %v3379_v43, 1 }
 0x76f   :  { %v420_v40 = vpop.permute.xlu1 %419 }
 0x770   :  { %v422_v41 = vadd.f32 %v420_v40, %v412_v39 }
 0x772   :  { %2912 = vtanh.f32 %v422_v41  ;;  %v436_v62 = vsel %vm434_vm9, %v422_v41, %v355_v38 }
 0x77c   :  { %v2913_v42 = vpop.eup %2912 }
 0x77d   :  { %425 = vrot.lane.b32.xlu1 %v2913_v42, %s3134_s1 }
 0x7ef   :  { %v426_v44 = vpop.permute.xlu1 %425 }
 0x7f0   :  { %v428_v45 = vmul.f32 %v2911_v16, %v426_v44 }
 0x7f2   :  { %v435_v46 = vsel %vm434_vm9, %v428_v45, %v354_v14 }
 0x7f3   :  { %v437_v47 = vpack.c.bf16 %v435_v46, %v435_v46 }
 0x7f5   :  { %439 = vrot.lane.b32.xlu1 %v437_v47, %s3135_s16 }
 0x867   :  { %v440_v48 = vpop.permute.xlu1 %439 }
 0x868   :  { %2659 = vmatmul.mubr.msk.bf16.vlgmr.msra.gmra.mrb[8].mxu1 %vm191_vm5, %v440_v48 }
 0x869   :  { %2671 = vmatpush3.bf16.msra.mxu1 %v3241_v3  ;;  %2674 = vmatprep.mubr.msk.bf16.mxu1 %vm3132_vm0, %v3131_v0 }
 0x86a   :  { %2672 = vmatprep.subr.bf16.mxu1 %v3131_v0 }
 0x86d   :  { %2673 = vmatpush3.bf16.msra.mxu1 %v3250_v5 }
 0x86e   :  { %2686 = vmatprep.subr.bf16.mxu1 %v3131_v0 }
 0x93b   :  { %v478_v49 = vpop.f32.mrb[8].mxu1 }
 0x93c   :  { %v484_v50 = vadd.f32 %v3300_v22, %v478_v49  ;;  %v2660_v51 = vpop.f32.mrb[9].mxu1 }
 0x93d   :  { %v481_v52 = vpop.f32.mrb[10].mxu1 }
 0x93e   :  { %v485_v53 = vadd.f32 %v3298_v18, %v484_v50  ;;  %v2661_v54 = vpop.f32.mrb[11].mxu1 }
 0x940   :  { %2914 = vtanh.f32 %v485_v53  ;;  %v2457_v57 = vmul.f32 -1.442695, %v485_v53 }
 0x942   :  { %2916 = vpow2.f32 %v2457_v57 }
 0x94a   :  { %v2915_v55 = vpop.eup %2914 }
 0x94b   :  { %495 = vrot.lane.b32.xlu0 %v2915_v55, %s3134_s1 }
 0x94c   :  { %v2917_v58 = vpop.eup %2916 }
 0x94d   :  { %v489_v59 = vadd.f32 1.0, %v2917_v58 }
 0x94f   :  { %513 = vperm.xlu0 %2873, %v511_v56   ;;  %2918 = vrcp.f32 %v489_v59 }
 0x959   :  { %v2919_v22 = vpop.eup %2918 }
 0x95a   :  { %v493_v63 = vmul.f32 %v2919_v22, %v436_v62 }
 0x9bd   :  { %v496_v60 = vpop.permute.xlu0 %495 }
 0x9be   :  { %v498_v61 = vmul.f32 %v2919_v22, %v496_v60 }
 0x9c0   :  { %500 = vrot.lane.b32.xlu1 %v498_v61, %s3135_s16 }
 0x9ce   :  { %v3401_v11 = vpop.permute.xlu0 %513 }
 0x9cf   :  { %vm515_vm11 = vcmp.eq.s32.totalorder %v3401_v11, 1 }
 0xa32   :  { %v501_v4 = vpop.permute.xlu1 %500 }
 0xa33   :  { %v503_v7 = vadd.f32 %v501_v4, %v493_v63 }
 0xa35   :  { %2920 = vtanh.f32 %v503_v7  ;;  %v517_v39 = vsel %vm515_vm11, %v503_v7, %v436_v62 }
 0xa3f   :  { %v2921_v9 = vpop.eup %2920 }
 0xa40   :  { %506 = vrot.lane.b32.xlu1 %v2921_v9, %s3134_s1 }
 0xab2   :  { %v507_v14 = vpop.permute.xlu1 %506 }
 0xab3   :  { %v509_v15 = vmul.f32 %v2919_v22, %v507_v14 }
 0xab5   :  { %v516_v23 = vsel %vm515_vm11, %v509_v15, %v435_v46 }
 0xab6   :  { %v518_v24 = vpack.c.bf16 %v516_v23, %v516_v23 }
 0xab8   :  { %520 = vrot.lane.b32.xlu0 %v518_v24, %s3135_s16 }
 0xb2a   :  { %v521_v25 = vpop.permute.xlu0 %520 }
 0xb2b   :  { %2667 = vmatmul.mubr.msk.bf16.vlgmr.msra.gmra.mrb[12].mxu0 %vm191_vm5, %v521_v25 }
 0xb2c   :  { %2679 = vmatpush3.bf16.msra.mxu0 %v3241_v3  ;;  %2682 = vmatprep.mubr.msk.bf16.mxu0 %vm3132_vm0, %v3131_v0 }
 0xb2d   :  { %2680 = vmatprep.subr.bf16.mxu0 %v3131_v0 }
 0xb30   :  { %2681 = vmatpush3.bf16.msra.mxu0 %v3250_v5 }
 0xb31   :  { %2694 = vmatprep.subr.bf16.mxu0 %v3131_v0 }
 0xbfe   :  { %v559_v26 = vpop.f32.mrb[12].mxu0 }
 0xbff   :  { %v565_v27 = vadd.f32 %v559_v26, %v3357_v19  ;;  %v2668_v28 = vpop.f32.mrb[13].mxu0 }
 0xc00   :  { %v562_v29 = vpop.f32.mrb[14].mxu0 }
 0xc01   :  { %v566_v30 = vadd.f32 %v3298_v18, %v565_v27  ;;  %v2669_v31 = vpop.f32.mrb[15].mxu0 }
 0xc03   :  { %2922 = vtanh.f32 %v566_v30  ;;  %v2459_v34 = vmul.f32 -1.442695, %v566_v30 }
 0xc05   :  { %2924 = vpow2.f32 %v2459_v34 }
 0xc0d   :  { %v2923_v32 = vpop.eup %2922 }
 0xc0e   :  { %576 = vrot.lane.b32.xlu1 %v2923_v32, %s3134_s1 }
 0xc0f   :  { %v2925_v16 = vpop.eup %2924 }
 0xc10   :  { %v570_v35 = vadd.f32 1.0, %v2925_v16 }
 0xc12   :  { %594 = vperm.xlu1 %2872, %v592_v33   ;;  %2926 = vrcp.f32 %v570_v35  ;;  %v754_v33 = vsel %vm753_vm3, 1, %v3133_v1 }
 0xc1c   :  { %v2927_v19 = vpop.eup %2926 }
 0xc1d   :  { %v574_v40 = vmul.f32 %v2927_v19, %v517_v39 }
 0xc80   :  { %v577_v36 = vpop.permute.xlu1 %576 }
 0xc81   :  { %v579_v38 = vmul.f32 %v2927_v19, %v577_v36 }
 0xc83   :  { %581 = vrot.lane.b32.xlu0 %v579_v38, %s3135_s16 }
 0xc91   :  { %v3423_v45 = vpop.permute.xlu1 %594 }
 0xc92   :  { %vm596_vm13 = vcmp.eq.s32.totalorder %v3423_v45, 1 }
 0xcf5   :  { %v582_v41 = vpop.permute.xlu0 %581 }
 0xcf6   :  { %v584_v42 = vadd.f32 %v582_v41, %v574_v40 }
 0xcf8   :  { %2928 = vtanh.f32 %v584_v42  ;;  %v598_v61 = vsel %vm596_vm13, %v584_v42, %v517_v39 }
 0xd02   :  { %v2929_v44 = vpop.eup %2928 }
 0xd03   :  { %587 = vrot.lane.b32.xlu0 %v2929_v44, %s3134_s1 }
 0xd75   :  { %v588_v46 = vpop.permute.xlu0 %587 }
 0xd76   :  { %v590_v47 = vmul.f32 %v2927_v19, %v588_v46 }
 0xd78   :  { %v597_v48 = vsel %vm596_vm13, %v590_v47, %v516_v23 }
 0xd79   :  { %v599_v49 = vpack.c.bf16 %v597_v48, %v597_v48 }
 0xd7b   :  { %601 = vrot.lane.b32.xlu1 %v599_v49, %s3135_s16 }
 0xded   :  { %v602_v50 = vpop.permute.xlu1 %601 }
 0xdee   :  { %2675 = vmatmul.mubr.msk.bf16.vlgmr.msra.gmra.mrb[12].mxu1 %vm191_vm5, %v602_v50 }
 0xdef   :  { %2687 = vmatpush3.bf16.msra.mxu1 %v3241_v3  ;;  %2690 = vmatprep.mubr.msk.bf16.mxu1 %vm3132_vm0, %v3131_v0  ;;  %v673_v3 = vsel %vm672_vm14, 1, %v3133_v1 }
 0xdf0   :  { %2688 = vmatprep.subr.bf16.mxu1 %v3131_v0 }
 0xdf3   :  { %2689 = vmatpush3.bf16.msra.mxu1 %v3250_v5 }
 0xec1   :  { %v640_v51 = vpop.f32.mrb[12].mxu1 }
 0xec2   :  { %v646_v52 = vadd.f32 %v640_v51, %v3361_v21  ;;  %v2676_v53 = vpop.f32.mrb[13].mxu1 }
 0xec3   :  { %v643_v54 = vpop.f32.mrb[14].mxu1 }
 0xec4   :  { %v647_v55 = vadd.f32 %v3298_v18, %v646_v52  ;;  %v2677_v56 = vpop.f32.mrb[15].mxu1 }
 0xec6   :  { %2930 = vtanh.f32 %v647_v55  ;;  %v2461_v58 = vmul.f32 -1.442695, %v647_v55 }
 0xec8   :  { %2932 = vpow2.f32 %v2461_v58 }
 0xed0   :  { %v2931_v57 = vpop.eup %2930 }
 0xed1   :  { %657 = vrot.lane.b32.xlu0 %v2931_v57, %s3134_s1 }
 0xed2   :  { %v2933_v5 = vpop.eup %2932 }
 0xed3   :  { %v651_v59 = vadd.f32 1.0, %v2933_v5 }
 0xed5   :  { %675 = vperm.xlu0 %2873, %v673_v3   ;;  %2934 = vrcp.f32 %v651_v59  ;;  %v835_v3 = vsel %vm834_vm8, 1, %v3133_v1 }
 0xedf   :  { %v2935_v21 = vpop.eup %2934 }
 0xee0   :  { %v655_v62 = vmul.f32 %v2935_v21, %v598_v61 }
 0xf43   :  { %v658_v22 = vpop.permute.xlu0 %657 }
 0xf44   :  { %v660_v60 = vmul.f32 %v2935_v21, %v658_v22 }
 0xf46   :  { %662 = vrot.lane.b32.xlu1 %v660_v60, %s3135_s16 }
 0xf54   :  { %v3444_v9 = vpop.permute.xlu0 %675 }
 0xf55   :  { %vm677_vm15 = vcmp.eq.s32.totalorder %v3444_v9, 1 }
 0xfb8   :  { %v663_v63 = vpop.permute.xlu1 %662 }
 0xfb9   :  { %v665_v4 = vadd.f32 %v663_v63, %v655_v62  ;;  %v2880_v62 = vld [vmem:[%s3955_s7] sm:$0xff]   ;;  %v2879_v63 = vld [vmem:[%s3953_s5 + $0x8] sm:$0xff]  }
 0xfba   :  { %2702 = vmatprep.subr.bf16.mxu1 %v2880_v62 }
 0xfbb   :  { %2936 = vtanh.f32 %v665_v4  ;;  %v679_v38 = vsel %vm677_vm15, %v665_v4, %v598_v61  ;;  %v2878_v61 = vld [vmem:[%s3953_s5] sm:$0xff]  }
 0xfc5   :  { %v2937_v7 = vpop.eup %2936 }
 0xfc6   :  { %668 = vrot.lane.b32.xlu1 %v2937_v7, %s3134_s1  ;;  %v2881_v7 = vld [vmem:[%s3955_s7 + $0x8] sm:$0x3f]  }
0x1038   :  { %v669_v14 = vpop.permute.xlu1 %668 }
0x1039   :  { %v671_v15 = vmul.f32 %v2935_v21, %v669_v14  ;;  %v932_v14 = vsel %vm110_vm1, %v2881_v7, 0 }
0x103b   :  { %v678_v23 = vsel %vm677_vm15, %v671_v15, %v597_v48  ;;  %v3500_v15 = vld [vmem:[%s3956_s8] sm:$0xff]  }
0x103c   :  { %v680_v24 = vpack.c.bf16 %v678_v23, %v678_v23 }
0x103e   :  { %682 = vrot.lane.b32.xlu0 %v680_v24, %s3135_s16 }
0x10b0   :  { %v683_v25 = vpop.permute.xlu0 %682 }
0x10b1   :  { %2683 = vmatmul.mubr.msk.bf16.vlgmr.msra.gmra.mrb[16].mxu0 %vm191_vm5, %v683_v25 }
0x10b2   :  { %2698 = vmatprep.mubr.msk.bf16.mxu0 %vm3132_vm0, %v3131_v0  ;;  %2695 = vmatpush3.bf16.msra.mxu0 %v2878_v61 }
0x10b3   :  { %2696 = vmatprep.subr.bf16.mxu0 %v3131_v0 }
0x10b6   :  { %2697 = vmatpush3.bf16.msra.mxu0 %v2879_v63 }
0x10b7   :  { %2714 = vmatprep.subr.bf16.mxu0 %v3131_v0 }
0x1184   :  { %v721_v26 = vpop.f32.mrb[16].mxu0 }
0x1185   :  { %v727_v27 = vadd.f32 %v3355_v17, %v721_v26  ;;  %v2684_v28 = vpop.f32.mrb[17].mxu0  ;;  %v3513_v26 = vld [vmem:[%s3956_s8 + $0x8] sm:$0xff]  }
0x1186   :  { %v724_v29 = vpop.f32.mrb[18].mxu0 }
0x1187   :  { %v728_v30 = vadd.f32 %v3298_v18, %v727_v27  ;;  %v2685_v31 = vpop.f32.mrb[19].mxu0 }
0x1189   :  { %2938 = vtanh.f32 %v728_v30  ;;  %v2463_v34 = vmul.f32 -1.442695, %v728_v30 }
0x118b   :  { %2940 = vpow2.f32 %v2463_v34 }
0x1193   :  { %v2939_v32 = vpop.eup %2938 }
0x1194   :  { %738 = vrot.lane.b32.xlu1 %v2939_v32, %s3134_s1 }
0x1195   :  { %v2941_v16 = vpop.eup %2940 }
0x1196   :  { %v732_v35 = vadd.f32 1.0, %v2941_v16  ;;  %v3548_v16 = vld [vmem:[%s3957_s9] ss:$0 sm:$0xff] }
0x1198   :  { %756 = vperm.xlu1 %2872, %v754_v33   ;;  %2942 = vrcp.f32 %v732_v35 }
0x11a2   :  { %v2943_v17 = vpop.eup %2942 }
0x11a3   :  { %v736_v39 = vmul.f32 %v2943_v17, %v679_v38 }
0x1206   :  { %v739_v19 = vpop.permute.xlu1 %738 }
0x1207   :  { %v741_v36 = vmul.f32 %v2943_v17, %v739_v19 }
0x1209   :  { %743 = vrot.lane.b32.xlu0 %v741_v36, %s3135_s16 }
0x1217   :  { %v3462_v44 = vpop.permute.xlu1 %756 }
0x1218   :  { %vm758_vm6 = vcmp.eq.s32.totalorder %v3462_v44, 1 }
0x127b   :  { %v744_v40 = vpop.permute.xlu0 %743 }
0x127c   :  { %v746_v41 = vadd.f32 %v744_v40, %v736_v39 }
0x127e   :  { %2944 = vtanh.f32 %v746_v41 }
0x1288   :  { %v2945_v42 = vpop.eup %2944 }
0x1289   :  { %749 = vrot.lane.b32.xlu0 %v2945_v42, %s3134_s1 }
0x12fb   :  { %v750_v46 = vpop.permute.xlu0 %749 }
0x12fc   :  { %v752_v47 = vmul.f32 %v2943_v17, %v750_v46 }
0x12fe   :  { %v759_v48 = vsel %vm758_vm6, %v752_v47, %v678_v23 }
0x12ff   :  { %v761_v49 = vpack.c.bf16 %v759_v48, %v759_v48 }
0x1301   :  { %763 = vrot.lane.b32.xlu1 %v761_v49, %s3135_s16 }
0x1373   :  { %v764_v50 = vpop.permute.xlu1 %763 }
0x1374   :  { %2691 = vmatmul.mubr.msk.bf16.vlgmr.msra.gmra.mrb[16].mxu1 %vm191_vm5, %v764_v50 }
0x1375   :  { %2706 = vmatprep.mubr.msk.bf16.mxu1 %vm97_vm2, %v3264_v10  ;;  %2703 = vmatpush3.bf16.msra.mxu1 %v2880_v62 }
0x1376   :  { %2863 = vmatprep.subr.msk.bf16.mxu1 %vm110_vm1, %v2881_v7 }
0x1379   :  { %2705 = vmatpush3.bf16.msra.mxu1 %v932_v14 }
0x137a   :  { %2730 = vmatprep.subr.bf16.mxu1 %v3131_v0 }
0x137c   :  { %2707 = vmatmul.mubr.msk.bf16.vlgmr.msra.gmra.mrb[20].mxu1 %vm97_vm2, %v3269_v12 }
0x137d   :  { %2731 = vmatpush3.bf16.msra.mxu1 %v3500_v15  ;;  %2710 = vmatprep.mubr.msk.bf16.mxu1 %vm97_vm2, %v3335_v2 }
0x137e   :  { %2732 = vmatprep.subr.bf16.mxu1 %v3131_v0 }
0x1381   :  { %2733 = vmatpush3.bf16.msra.mxu1 %v3513_v26 }
0x1382   :  { %2746 = vmatprep.subr.bf16.mxu1 %v3131_v0 }
0x1384   :  { %2711 = vmatmul.mubr.msk.bf16.gmra.mrb[24].mxu1 %vm97_vm2, %v3340_v6 }
0x1385   :  { %2734 = vmatprep.mubr.msk.bf16.mxu1 %vm3132_vm0, %v3131_v0 }
0x1447   :  { %v802_v51 = vpop.f32.mrb[16].mxu1 }
0x1448   :  { %v808_v52 = vadd.f32 %v3359_v20, %v802_v51  ;;  %v2692_v53 = vpop.f32.mrb[17].mxu1 }
0x1449   :  { %v805_v54 = vpop.f32.mrb[18].mxu1 }
0x144a   :  { %v809_v55 = vadd.f32 %v3298_v18, %v808_v52  ;;  %v2693_v56 = vpop.f32.mrb[19].mxu1  ;;  %v760_v18 = vsel %vm758_vm6, %v746_v41, %v679_v38 }
0x144c   :  { %2946 = vtanh.f32 %v809_v55  ;;  %v2465_v58 = vmul.f32 -1.442695, %v809_v55 }
0x144e   :  { %2948 = vpow2.f32 %v2465_v58 }
0x144f   :  { %v3539_v6 = vpop.f32.mrb[20].mxu1 }
0x1450   :  { %v968_v28 = vpop.f32.mrb[21].mxu1 }
0x1451   :  { %v3541_v29 = vpop.f32.mrb[22].mxu1 }
0x1452   :  { %v971_v30 = vpop.f32.mrb[23].mxu1 }
0x1456   :  { %v2947_v57 = vpop.eup %2946 }
0x1457   :  { %819 = vrot.lane.b32.xlu0 %v2947_v57, %s3134_s1 }
0x1458   :  { %v2949_v10 = vpop.eup %2948 }
0x1459   :  { %v813_v5 = vadd.f32 1.0, %v2949_v10 }
0x145b   :  { %837 = vperm.xlu0 %2873, %v835_v3   ;;  %2950 = vrcp.f32 %v813_v5 }
0x1465   :  { %v2951_v20 = vpop.eup %2950 }
0x1466   :  { %v817_v13 = vmul.f32 %v2951_v20, %v760_v18 }
0x14c9   :  { %v820_v59 = vpop.permute.xlu0 %819 }
0x14ca   :  { %v822_v21 = vmul.f32 %v2951_v20, %v820_v59 }
0x14cc   :  { %824 = vrot.lane.b32.xlu1 %v822_v21, %s3135_s16 }
0x14da   :  { %v3504_v23 = vpop.permute.xlu0 %837 }
0x14db   :  { %vm839_vm1 = vcmp.eq.s32.totalorder %v3504_v23, 1 }
0x153e   :  { %v825_v22 = vpop.permute.xlu1 %824 }
0x153f   :  { %v827_v60 = vadd.f32 %v825_v22, %v817_v13 }
0x1541   :  { %2952 = vtanh.f32 %v827_v60 }
0x154b   :  { %v2953_v4 = vpop.eup %2952 }
0x154c   :  { %830 = vrot.lane.b32.xlu1 %v2953_v4, %s3134_s1 }
0x15be   :  { %v831_v24 = vpop.permute.xlu1 %830 }
0x15bf   :  { %v833_v25 = vmul.f32 %v2951_v20, %v831_v24 }
0x15c1   :  { %v840_v12 = vsel %vm839_vm1, %v833_v25, 0.0 }
0x15c2   :  { %v841_v27 = vpack.c.bf16 %v840_v12, %v840_v12  ;;  %v3574_v12 = vpop.f32.mrb[24].mxu1 }
0x15c4   :  { %854 = vrot.lane.b32.xlu0 %v841_v27, %s3135_s16  ;;  %v3576_v27 = vpop.f32.mrb[25].mxu1 }
0x1636   :  { %v855_v2 = vpop.permute.xlu0 %854 }
0x1637   :  { %2699 = vmatmul.mubr.msk.bf16.vlgmr.msra.gmra.mrb[20].mxu0 %vm191_vm5, %v855_v2  ;;  %v3578_v2 = vpop.f32.mrb[26].mxu1 }
0x1638   :  { %2715 = vmatpush3.bf16.msra.mxu0 %v3500_v15  ;;  %2718 = vmatprep.mubr.msk.bf16.mxu0 %vm3132_vm0, %v3131_v0 }
0x1639   :  { %2716 = vmatprep.subr.bf16.mxu0 %v3131_v0 }
0x163c   :  { %2717 = vmatpush3.bf16.msra.mxu0 %v3513_v26 }
0x163d   :  { %2722 = vmatprep.subr.bf16.mxu0 %v3131_v0 }
0x163f   :  { %2719 = vmatmul.mubr.bf16.vlgmr.msra.gmra.mrb[24].mxu0 %v3133_v1 }
0x1640   :  { %2723 = vmatpush3.bf16.msra.mxu0 %v3500_v15  ;;  %2726 = vmatprep.mubr.msk.bf16.mxu0 %vm3132_vm0, %v3131_v0 }
0x1641   :  { %2724 = vmatprep.subr.bf16.mxu0 %v3131_v0 }
0x1644   :  { %2725 = vmatpush3.bf16.msra.mxu0 %v3513_v26 }
0x1645   :  { %2738 = vmatprep.subr.bf16.mxu0 %v3131_v0 }
0x170a   :  { %v3543_v31 = vpop.f32.mrb[20].mxu0 }
0x170b   :  { %v2700_v32 = vpop.f32.mrb[21].mxu0 }
0x170c   :  { %v908_v33 = vpop.f32.mrb[22].mxu0 }
0x170d   :  { %v2701_v34 = vpop.f32.mrb[23].mxu0 }
0x1712   :  { %v1045_v35 = vpop.f32.mrb[24].mxu0 }
0x1713   :  { %v1051_v17 = vadd.f32 %v1045_v35, %v968_v28  ;;  %v2720_v19 = vpop.f32.mrb[25].mxu0  ;;  %v3580_v28 = vpop.f32.mrb[27].mxu1 }
0x1714   :  { %v1048_v36 = vpop.f32.mrb[26].mxu0 }
0x1715   :  { %v1058_v38 = vadd.f32 %v3548_v16, %v1051_v17  ;;  %v2721_v39 = vpop.f32.mrb[27].mxu0 }
0x1717   :  { %2954 = vtanh.f32 %v1058_v38  ;;  %v2479_v41 = vmul.f32 -1.442695, %v1058_v38 }
0x1719   :  { %2956 = vpow2.f32 %v2479_v41 }
0x1721   :  { %v2955_v40 = vpop.eup %2954 }
0x1722   :  { %1068 = vrot.lane.b32.xlu1 %v2955_v40, %s3134_s1 }
0x1723   :  { %v2957_v42 = vpop.eup %2956 }
0x1724   :  { %v1062_v46 = vadd.f32 1.0, %v2957_v42 }
0x1726   :  { %2958 = vrcp.f32 %v1062_v46 }
0x1730   :  { %v2959_v47 = vpop.eup %2958 }
0x1731   :  { %v1066_v50 = vmul.f32 0.0, %v2959_v47 }
0x1794   :  { %v1069_v48 = vpop.permute.xlu1 %1068 }
0x1795   :  { %v1071_v49 = vmul.f32 %v2959_v47, %v1069_v48 }
0x1797   :  { %1073 = vrot.lane.b32.xlu0 %v1071_v49, %s3135_s16 }
0x1809   :  { %v1074_v51 = vpop.permute.xlu0 %1073 }
0x180a   :  { %v1076_v52 = vadd.f32 %v1074_v51, %v1066_v50 }
0x180c   :  { %2960 = vtanh.f32 %v1076_v52  ;;  %v1084_v4 = vsel %vm272_vm4, %v1076_v52, 0.0 }
0x1816   :  { %v2961_v53 = vpop.eup %2960 }
0x1817   :  { %1079 = vrot.lane.b32.xlu1 %v2961_v53, %s3134_s1 }
0x1889   :  { %v1080_v54 = vpop.permute.xlu1 %1079 }
0x188a   :  { %v1082_v55 = vmul.f32 %v2959_v47, %v1080_v54 }
0x188c   :  { %v3556_v56 = vsel %vm272_vm4, %v1082_v55, 0.0 }
0x188d   :  { %v1085_v57 = vpack.c.bf16 %v3556_v56, %v3556_v56 }
0x188f   :  { %1087 = vrot.lane.b32.xlu0 %v1085_v57, %s3135_s16 }
0x1901   :  { %v1088_v3 = vpop.permute.xlu0 %1087 }
0x1902   :  { %2727 = vmatmul.mubr.msk.bf16.vlgmr.msra.gmra.mrb[28].mxu0 %vm191_vm5, %v1088_v3 }
0x1903   :  { %2739 = vmatpush3.bf16.msra.mxu0 %v3500_v15  ;;  %2742 = vmatprep.mubr.msk.bf16.mxu0 %vm3132_vm0, %v3131_v0 }
0x1904   :  { %2740 = vmatprep.subr.bf16.mxu0 %v3131_v0 }
0x1907   :  { %2741 = vmatpush3.bf16.msra.mxu0 %v3513_v26 }
0x1908   :  { %2754 = vmatprep.subr.bf16.mxu0 %v3131_v0 }
0x19d5   :  { %v1126_v58 = vpop.f32.mrb[28].mxu0 }
0x19d6   :  { %v1132_v10 = vadd.f32 %v1126_v58, %v971_v30  ;;  %v2728_v5 = vpop.f32.mrb[29].mxu0 }
0x19d7   :  { %v1129_v20 = vpop.f32.mrb[30].mxu0 }
0x19d8   :  { %v1133_v59 = vadd.f32 %v3548_v16, %v1132_v10  ;;  %v2729_v21 = vpop.f32.mrb[31].mxu0 }
0x19da   :  { %2962 = vtanh.f32 %v1133_v59  ;;  %v2481_v13 = vmul.f32 -1.442695, %v1133_v59 }
0x19dc   :  { %2964 = vpow2.f32 %v2481_v13 }
0x19e4   :  { %v2963_v18 = vpop.eup %2962 }
0x19e5   :  { %1143 = vrot.lane.b32.xlu1 %v2963_v18, %s3134_s1 }
0x19e6   :  { %v2965_v22 = vpop.eup %2964 }
0x19e7   :  { %v1137_v60 = vadd.f32 1.0, %v2965_v22 }
0x19e9   :  { %2966 = vrcp.f32 %v1137_v60 }
0x19f3   :  { %v2967_v61 = vpop.eup %2966 }
0x19f4   :  { %v1141_v7 = vmul.f32 %v2967_v61, %v1084_v4 }
0x1a57   :  { %v1144_v62 = vpop.permute.xlu1 %1143 }
0x1a58   :  { %v1146_v63 = vmul.f32 %v2967_v61, %v1144_v62 }
0x1a5a   :  { %1148 = vrot.lane.b32.xlu0 %v1146_v63, %s3135_s16 }
0x1acc   :  { %v1149_v14 = vpop.permute.xlu0 %1148 }
0x1acd   :  { %v1151_v24 = vadd.f32 %v1149_v14, %v1141_v7 }
0x1acf   :  { %2968 = vtanh.f32 %v1151_v24 }
0x1ad9   :  { %v2969_v25 = vpop.eup %2968 }
0x1ada   :  { %1154 = vrot.lane.b32.xlu1 %v2969_v25, %s3134_s1 }
0x1b4c   :  { %v1155_v30 = vpop.permute.xlu1 %1154 }
0x1b4d   :  { %v3582_v32 = vmul.f32 %v2967_v61, %v1155_v30 }
0x1b4f   :  { %v1159_v33 = vsel %vm353_vm7, %v3582_v32, %v3556_v56 }
0x1b50   :  { %v1161_v34 = vpack.c.bf16 %v1159_v33, %v1159_v33 }
0x1b52   :  { %1163 = vrot.lane.b32.xlu0 %v1161_v34, %s3135_s16 }
0x1bc4   :  { %v1164_v35 = vpop.permute.xlu0 %1163 }
0x1bc5   :  { %2735 = vmatmul.mubr.msk.bf16.vlgmr.msra.gmra.mrb[28].mxu1 %vm191_vm5, %v1164_v35 }
0x1bc6   :  { %2747 = vmatpush3.bf16.msra.mxu1 %v3500_v15  ;;  %2750 = vmatprep.mubr.msk.bf16.mxu1 %vm3132_vm0, %v3131_v0 }
0x1bc7   :  { %2748 = vmatprep.subr.bf16.mxu1 %v3131_v0 }
0x1bca   :  { %2749 = vmatpush3.bf16.msra.mxu1 %v3513_v26 }
0x1bcb   :  { %2762 = vmatprep.subr.bf16.mxu1 %v3131_v0 }
0x1c98   :  { %v1202_v17 = vpop.f32.mrb[28].mxu1 }
0x1c99   :  { %v1208_v19 = vadd.f32 %v3539_v6, %v1202_v17  ;;  %v2736_v36 = vpop.f32.mrb[29].mxu1  ;;  %v1160_v6 = vsel %vm353_vm7, %v1151_v24, %v1084_v4 }
0x1c9a   :  { %v1205_v38 = vpop.f32.mrb[30].mxu1 }
0x1c9b   :  { %v1209_v39 = vadd.f32 %v3548_v16, %v1208_v19  ;;  %v2737_v40 = vpop.f32.mrb[31].mxu1 }
0x1c9d   :  { %2970 = vtanh.f32 %v1209_v39  ;;  %v2483_v42 = vmul.f32 -1.442695, %v1209_v39 }
0x1c9f   :  { %2972 = vpow2.f32 %v2483_v42 }
0x1ca7   :  { %v2971_v41 = vpop.eup %2970 }
0x1ca8   :  { %1219 = vrot.lane.b32.xlu1 %v2971_v41, %s3134_s1 }
0x1ca9   :  { %v2973_v46 = vpop.eup %2972 }
0x1caa   :  { %v1213_v47 = vadd.f32 1.0, %v2973_v46 }
0x1cac   :  { %2974 = vrcp.f32 %v1213_v47 }
0x1cb6   :  { %v2975_v48 = vpop.eup %2974 }
0x1cb7   :  { %v1217_v51 = vmul.f32 %v2975_v48, %v1160_v6 }
0x1d1a   :  { %v1220_v49 = vpop.permute.xlu1 %1219 }
0x1d1b   :  { %v1222_v50 = vmul.f32 %v2975_v48, %v1220_v49 }
0x1d1d   :  { %1224 = vrot.lane.b32.xlu0 %v1222_v50, %s3135_s16 }
0x1d8f   :  { %v1225_v52 = vpop.permute.xlu0 %1224 }
0x1d90   :  { %v1227_v53 = vadd.f32 %v1225_v52, %v1217_v51 }
0x1d92   :  { %2976 = vtanh.f32 %v1227_v53 }
0x1d9c   :  { %v2977_v54 = vpop.eup %2976 }
0x1d9d   :  { %1230 = vrot.lane.b32.xlu1 %v2977_v54, %s3134_s1 }
0x1e0f   :  { %v1231_v55 = vpop.permute.xlu1 %1230 }
0x1e10   :  { %v3603_v57 = vmul.f32 %v2975_v48, %v1231_v55 }
0x1e12   :  { %v1235_v3 = vsel %vm434_vm9, %v3603_v57, %v1159_v33 }
0x1e13   :  { %v1237_v58 = vpack.c.bf16 %v1235_v3, %v1235_v3 }
0x1e15   :  { %1239 = vrot.lane.b32.xlu0 %v1237_v58, %s3135_s16 }
0x1e87   :  { %v1240_v10 = vpop.permute.xlu0 %1239 }
0x1e88   :  { %2743 = vmatmul.mubr.msk.bf16.vlgmr.msra.gmra.mrb[32].mxu0 %vm191_vm5, %v1240_v10 }
0x1e89   :  { %2755 = vmatpush3.bf16.msra.mxu0 %v3500_v15  ;;  %2758 = vmatprep.mubr.msk.bf16.mxu0 %vm3132_vm0, %v3131_v0 }
0x1e8a   :  { %2756 = vmatprep.subr.bf16.mxu0 %v3131_v0 }
0x1e8d   :  { %2757 = vmatpush3.bf16.msra.mxu0 %v3513_v26 }
0x1e8e   :  { %2770 = vmatprep.subr.bf16.mxu0 %v3131_v0 }
0x1f5b   :  { %v1278_v5 = vpop.f32.mrb[32].mxu0 }
0x1f5c   :  { %v1284_v20 = vadd.f32 %v3541_v29, %v1278_v5  ;;  %v2744_v59 = vpop.f32.mrb[33].mxu0  ;;  %v1236_v29 = vsel %vm434_vm9, %v1227_v53, %v1160_v6 }
0x1f5d   :  { %v1281_v21 = vpop.f32.mrb[34].mxu0 }
0x1f5e   :  { %v1285_v18 = vadd.f32 %v3548_v16, %v1284_v20  ;;  %v2745_v13 = vpop.f32.mrb[35].mxu0 }
0x1f60   :  { %2978 = vtanh.f32 %v1285_v18  ;;  %v2485_v60 = vmul.f32 -1.442695, %v1285_v18 }
0x1f62   :  { %2980 = vpow2.f32 %v2485_v60 }
0x1f6a   :  { %v2979_v22 = vpop.eup %2978 }
0x1f6b   :  { %1295 = vrot.lane.b32.xlu1 %v2979_v22, %s3134_s1 }
0x1f6c   :  { %v2981_v61 = vpop.eup %2980 }
0x1f6d   :  { %v1289_v62 = vadd.f32 1.0, %v2981_v61 }
0x1f6f   :  { %2982 = vrcp.f32 %v1289_v62 }
0x1f79   :  { %v2983_v63 = vpop.eup %2982 }
0x1f7a   :  { %v1293_v14 = vmul.f32 %v2983_v63, %v1236_v29 }
0x1fdd   :  { %v1296_v4 = vpop.permute.xlu1 %1295 }
0x1fde   :  { %v1298_v7 = vmul.f32 %v2983_v63, %v1296_v4 }
0x1fe0   :  { %1300 = vrot.lane.b32.xlu0 %v1298_v7, %s3135_s16 }
0x2052   :  { %v1301_v24 = vpop.permute.xlu0 %1300 }
0x2053   :  { %v1303_v25 = vadd.f32 %v1301_v24, %v1293_v14 }
0x2055   :  { %2984 = vtanh.f32 %v1303_v25 }
0x205f   :  { %v2985_v30 = vpop.eup %2984 }
0x2060   :  { %1306 = vrot.lane.b32.xlu1 %v2985_v30, %s3134_s1 }
0x20d2   :  { %v1307_v33 = vpop.permute.xlu1 %1306 }
0x20d3   :  { %v3623_v34 = vmul.f32 %v2983_v63, %v1307_v33 }
0x20d5   :  { %v1311_v35 = vsel %vm515_vm11, %v3623_v34, %v1235_v3 }
0x20d6   :  { %v1313_v17 = vpack.c.bf16 %v1311_v35, %v1311_v35 }
0x20d8   :  { %1315 = vrot.lane.b32.xlu0 %v1313_v17, %s3135_s16 }
0x214a   :  { %v1316_v19 = vpop.permute.xlu0 %1315 }
0x214b   :  { %2751 = vmatmul.mubr.msk.bf16.vlgmr.msra.gmra.mrb[32].mxu1 %vm191_vm5, %v1316_v19 }
0x214c   :  { %2763 = vmatpush3.bf16.msra.mxu1 %v3500_v15  ;;  %2766 = vmatprep.mubr.msk.bf16.mxu1 %vm3132_vm0, %v3131_v0 }
0x214d   :  { %2764 = vmatprep.subr.bf16.mxu1 %v3131_v0 }
0x2150   :  { %2765 = vmatpush3.bf16.msra.mxu1 %v3513_v26 }
0x221e   :  { %v1354_v36 = vpop.f32.mrb[32].mxu1 }
0x221f   :  { %v1360_v38 = vadd.f32 %v1354_v36, %v3576_v27  ;;  %v2752_v39 = vpop.f32.mrb[33].mxu1  ;;  %v1312_v27 = vsel %vm515_vm11, %v1303_v25, %v1236_v29 }
0x2220   :  { %v1357_v40 = vpop.f32.mrb[34].mxu1 }
0x2221   :  { %v1361_v41 = vadd.f32 %v3548_v16, %v1360_v38  ;;  %v2753_v42 = vpop.f32.mrb[35].mxu1 }
0x2223   :  { %2986 = vtanh.f32 %v1361_v41  ;;  %v2487_v47 = vmul.f32 -1.442695, %v1361_v41 }
0x2225   :  { %2988 = vpow2.f32 %v2487_v47 }
0x222d   :  { %v2987_v46 = vpop.eup %2986 }
0x222e   :  { %1371 = vrot.lane.b32.xlu1 %v2987_v46, %s3134_s1 }
0x222f   :  { %v2989_v48 = vpop.eup %2988 }
0x2230   :  { %v1365_v49 = vadd.f32 1.0, %v2989_v48 }
0x2232   :  { %2990 = vrcp.f32 %v1365_v49 }
0x223c   :  { %v2991_v50 = vpop.eup %2990 }
0x223d   :  { %v1369_v52 = vmul.f32 %v2991_v50, %v1312_v27 }
0x22a0   :  { %v1372_v6 = vpop.permute.xlu1 %1371 }
0x22a1   :  { %v1374_v51 = vmul.f32 %v2991_v50, %v1372_v6 }
0x22a3   :  { %1376 = vrot.lane.b32.xlu0 %v1374_v51, %s3135_s16 }
0x2315   :  { %v1377_v53 = vpop.permute.xlu0 %1376 }
0x2316   :  { %v1379_v54 = vadd.f32 %v1377_v53, %v1369_v52 }
0x2318   :  { %2992 = vtanh.f32 %v1379_v54 }
0x2322   :  { %v2993_v55 = vpop.eup %2992 }
0x2323   :  { %1382 = vrot.lane.b32.xlu1 %v2993_v55, %s3134_s1 }
0x2395   :  { %v1383_v3 = vpop.permute.xlu1 %1382 }
0x2396   :  { %v3642_v58 = vmul.f32 %v2991_v50, %v1383_v3  ;;  %v1158_v3 = vsel %vm353_vm7, %v3582_v32, 0.0 }
0x2398   :  { %v1387_v10 = vsel %vm596_vm13, %v3642_v58, %v1311_v35 }
0x2399   :  { %v1389_v5 = vpack.c.bf16 %v1387_v10, %v1387_v10 }
0x239b   :  { %1391 = vrot.lane.b32.xlu0 %v1389_v5, %s3135_s16  ;;  %v1386_v5 = vsel %vm596_vm13, %v3642_v58, 0.0 }
0x240d   :  { %v1392_v20 = vpop.permute.xlu0 %1391 }
0x240e   :  { %2759 = vmatmul.mubr.msk.bf16.vlgmr.msra.gmra.mrb[36].mxu0 %vm191_vm5, %v1392_v20 }
0x240f   :  { %2771 = vmatpush3.bf16.msra.mxu0 %v3500_v15  ;;  %2774 = vmatprep.mubr.msk.bf16.mxu0 %vm3132_vm0, %v3131_v0 }
0x2410   :  { %2772 = vmatprep.subr.bf16.mxu0 %v3131_v0 }
0x2413   :  { %2773 = vmatpush3.bf16.msra.mxu0 %v3513_v26 }
0x2414   :  { %2790 = vmatprep.subr.bf16.mxu0 %v3131_v0 }
0x24e1   :  { %v1430_v59 = vpop.f32.mrb[36].mxu0 }
0x24e2   :  { %v1436_v21 = vadd.f32 %v1430_v59, %v3580_v28  ;;  %v2760_v18 = vpop.f32.mrb[37].mxu0  ;;  %v1388_v28 = vsel %vm596_vm13, %v1379_v54, %v1312_v27 }
0x24e3   :  { %v1433_v13 = vpop.f32.mrb[38].mxu0 }
0x24e4   :  { %v1437_v22 = vadd.f32 %v3548_v16, %v1436_v21  ;;  %v2761_v60 = vpop.f32.mrb[39].mxu0 }
0x24e6   :  { %2994 = vtanh.f32 %v1437_v22  ;;  %v2489_v15 = vmul.f32 -1.442695, %v1437_v22 }
0x24e8   :  { %2996 = vpow2.f32 %v2489_v15  ;;  %v2885_v15 = vld [vmem:[%s3958_s10 + $0x8] sm:$0xff]  }
0x24f0   :  { %v2995_v61 = vpop.eup %2994 }
0x24f1   :  { %1447 = vrot.lane.b32.xlu1 %v2995_v61, %s3134_s1 }
0x24f2   :  { %v2997_v62 = vpop.eup %2996 }
0x24f3   :  { %v1441_v63 = vadd.f32 1.0, %v2997_v62 }
0x24f5   :  { %2998 = vrcp.f32 %v1441_v63 }
0x24ff   :  { %v2999_v26 = vpop.eup %2998 }
0x2500   :  { %v1445_v29 = vmul.f32 %v2999_v26, %v1388_v28 }
0x2563   :  { %v1448_v4 = vpop.permute.xlu1 %1447 }
0x2564   :  { %v1450_v7 = vmul.f32 %v2999_v26, %v1448_v4 }
0x2566   :  { %1452 = vrot.lane.b32.xlu0 %v1450_v7, %s3135_s16 }
0x25d8   :  { %v1453_v14 = vpop.permute.xlu0 %1452 }
0x25d9   :  { %v1455_v24 = vadd.f32 %v1453_v14, %v1445_v29  ;;  %v3741_v14 = vld [vmem:[%s3959_s11 + $0x8] sm:$0xff]  }
0x25db   :  { %3000 = vtanh.f32 %v1455_v24  ;;  %v3679_v52 = vsel %vm677_vm15, %v1455_v24, %v1388_v28  ;;  %v3734_v28 = vld [vmem:[%s3959_s11] sm:$0xff]  }
0x25e5   :  { %v3001_v25 = vpop.eup %3000 }
0x25e6   :  { %1458 = vrot.lane.b32.xlu1 %v3001_v25, %s3134_s1 }
0x2658   :  { %v1459_v30 = vpop.permute.xlu1 %1458 }
0x2659   :  { %v1461_v33 = vmul.f32 %v2999_v26, %v1459_v30 }
0x265b   :  { %v1463_v35 = vsel %vm677_vm15, %v1461_v33, %v1387_v10  ;;  %v1310_v10 = vsel %vm515_vm11, %v3623_v34, 0.0  ;;  %v1462_v20 = vsel %vm677_vm15, %v1461_v33, 0.0 }
0x265c   :  { %v1465_v17 = vpack.c.bf16 %v1463_v35, %v1463_v35 }
0x265e   :  { %1467 = vrot.lane.b32.xlu0 %v1465_v17, %s3135_s16 }
0x26d0   :  { %v1468_v19 = vpop.permute.xlu0 %1467 }
0x26d1   :  { %2767 = vmatmul.mubr.msk.bf16.vlgmr.msra.gmra.mrb[36].mxu1 %vm191_vm5, %v1468_v19 }
0x27a4   :  { %v1506_v36 = vpop.f32.mrb[36].mxu1 }
0x27a5   :  { %v1512_v38 = vadd.f32 %v3574_v12, %v1506_v36  ;;  %v2768_v39 = vpop.f32.mrb[37].mxu1  ;;  %v2466_v12 = vld [vmem:[%s3954_s6] ss:$0 sm:$0xff] }
0x27a6   :  { %v1509_v40 = vpop.f32.mrb[38].mxu1  ;;  %v3674_v27 = vadd.f32 %v2466_v12, %v3543_v31  ;;  %v1234_v31 = vsel %vm434_vm9, %v3603_v57, 0.0  ;;  %v3770_v39 = vld [vmem:[%s3960_s12] ss:$0 sm:$0xff] }
0x27a7   :  { %v1513_v41 = vadd.f32 %v3548_v16, %v1512_v38  ;;  %v2769_v42 = vpop.f32.mrb[39].mxu1 }
0x27a9   :  { %3002 = vtanh.f32 %v1513_v41  ;;  %v2491_v47 = vmul.f32 -1.442695, %v1513_v41 }
0x27ab   :  { %3004 = vpow2.f32 %v2491_v47 }
0x27b3   :  { %v3003_v46 = vpop.eup %3002 }
0x27b4   :  { %1523 = vrot.lane.b32.xlu1 %v3003_v46, %s3134_s1 }
0x27b5   :  { %v3005_v48 = vpop.eup %3004 }
0x27b6   :  { %v1517_v49 = vadd.f32 1.0, %v3005_v48 }
0x27b8   :  { %3006 = vrcp.f32 %v1517_v49 }
0x27c2   :  { %v3007_v50 = vpop.eup %3006 }
0x27c3   :  { %v1521_v53 = vmul.f32 %v3007_v50, %v3679_v52 }
0x2826   :  { %v1524_v6 = vpop.permute.xlu1 %1523 }
0x2827   :  { %v1526_v51 = vmul.f32 %v3007_v50, %v1524_v6 }
0x2829   :  { %1528 = vrot.lane.b32.xlu0 %v1526_v51, %s3135_s16 }
0x282d   :  { %1616 = vrot.lane.b32.xlu0 %v3674_v27, %s3136_s4 }
0x289b   :  { %v1529_v54 = vpop.permute.xlu0 %1528 }
0x289c   :  { %v3682_v55 = vadd.f32 %v1529_v54, %v1521_v53 }
0x289e   :  { %3008 = vtanh.f32 %v3682_v55 }
0x289f   :  { %v3699_v59 = vpop.permute.xlu0 %1616 }
0x28a0   :  { %v1619_v32 = vmul.f32 %v3699_v59, %v3556_v56  ;;  %v1620_v21 = vmul.f32 %v3699_v59, %v1158_v3  ;;  %v1621_v57 = vmul.f32 %v3699_v59, %v1234_v31  ;;  %v1622_v18 = vmul.f32 %v3699_v59, %v1310_v10  ;;  %v2884_v56 = vld [vmem:[%s3958_s10] sm:$0xff]  }
0x28a1   :  { %v3707_v34 = vmul.f32 %v3699_v59, %v1386_v5  ;;  %v3710_v13 = vmul.f32 %v3699_v59, %v1462_v20  ;;  %2778 = vmatprep.subr.bf16.mxu1 %v2884_v56 }
0x28a2   :  { %v1636_v58 = vpack.c.bf16 %v1620_v21, %v1619_v32  ;;  %v1637_v22 = vpack.c.bf16 %v1622_v18, %v1621_v57  ;;  %2779 = vmatpush3.bf16.msra.mxu1 %v2884_v56 }
0x28a3   :  { %v1638_v60 = vpack.c.bf16 %v3710_v13, %v3707_v34  ;;  %2780 = vmatprep.subr.bf16.mxu1 %v2885_v15 }
0x28a4   :  { %1644 = vrot.lane.b32.xlu0 %v1636_v58, %s3135_s16 }
0x28a6   :  { %2781 = vmatpush3.bf16.msra.mxu1 %v2885_v15 }
0x28a7   :  { %2806 = vmatprep.subr.bf16.mxu1 %v3131_v0 }
0x28a8   :  { %v3009_v61 = vpop.eup %3008 }
0x28a9   :  { %1534 = vrot.lane.b32.xlu1 %v3009_v61, %s3134_s1 }
0x2916   :  { %v1645_v62 = vpop.permute.xlu0 %1644 }
0x2917   :  { %2782 = vmatprep.mubr.msk.bf16.mxu1 %vm191_vm5, %v1645_v62  ;;  %v1540_v62 = vsel %vm758_vm6, %v3682_v55, %v3679_v52 }
0x291b   :  { %v1535_v63 = vpop.permute.xlu1 %1534 }
0x291c   :  { %v3724_v26 = vmul.f32 %v3007_v50, %v1535_v63 }
0x291e   :  { %v1539_v4 = vsel %vm758_vm6, %v3724_v26, %v1463_v35  ;;  %v1538_v55 = vsel %vm758_vm6, %v3724_v26, 0.0 }
0x291f   :  { %v1541_v7 = vpack.c.bf16 %v1539_v4, %v1539_v4 }
0x2921   :  { %1543 = vrot.lane.b32.xlu1 %v1541_v7, %s3135_s16 }
0x2925   :  { %1646 = vrot.lane.b32.xlu1 %v1637_v22, %s3135_s16 }
0x2993   :  { %v1544_v29 = vpop.permute.xlu1 %1543 }
0x2994   :  { %2775 = vmatmul.mubr.msk.bf16.vlgmr.msra.gmra.mrb[40].mxu0 %vm191_vm5, %v1544_v29 }
0x2995   :  { %2791 = vmatpush3.bf16.msra.mxu0 %v3734_v28  ;;  %2794 = vmatprep.mubr.msk.bf16.mxu0 %vm3132_vm0, %v3131_v0 }
0x2996   :  { %2792 = vmatprep.subr.bf16.mxu0 %v3131_v0 }
0x2997   :  { %v1647_v24 = vpop.permute.xlu1 %1646 }
0x2998   :  { %2783 = vmatmul.mubr.msk.bf16.vlgmr.msra.gmra.mrb[40].mxu1 %vm191_vm5, %v1647_v24 }
0x2999   :  { %2793 = vmatpush3.bf16.msra.mxu0 %v3741_v14  ;;  %2807 = vmatpush3.bf16.msra.mxu1 %v3734_v28 }
0x299a   :  { %2798 = vmatprep.subr.bf16.mxu0 %v3131_v0  ;;  %2808 = vmatprep.subr.bf16.mxu1 %v3131_v0 }
0x299c   :  { %2795 = vmatmul.mubr.bf16.vlgmr.msra.gmra.mrb[44].mxu0 %v3133_v1 }
0x299d   :  { %2799 = vmatpush3.bf16.msra.mxu0 %v3734_v28  ;;  %2802 = vmatprep.mubr.msk.bf16.mxu0 %vm3132_vm0, %v3131_v0 }
0x299e   :  { %2800 = vmatprep.subr.bf16.mxu0 %v3131_v0  ;;  %2809 = vmatpush3.bf16.msra.mxu1 %v3741_v14 }
0x299f   :  { %2822 = vmatprep.subr.bf16.mxu1 %v3131_v0 }
0x29a1   :  { %2801 = vmatpush3.bf16.msra.mxu0 %v3741_v14 }
0x29a2   :  { %2814 = vmatprep.subr.bf16.mxu0 %v3131_v0 }
0x2a67   :  { %v1582_v25 = vpop.f32.mrb[40].mxu0 }
0x2a68   :  { %v1588_v30 = vadd.f32 %v3578_v2, %v1582_v25  ;;  %v2776_v33 = vpop.f32.mrb[41].mxu0 }
0x2a69   :  { %v1585_v1 = vpop.f32.mrb[42].mxu0  ;;  %v1625_v33 = vmul.f32 %v3699_v59, %v1538_v55 }
0x2a6a   :  { %v2777_v35 = vpop.f32.mrb[43].mxu0  ;;  %v1589_v10 = vadd.f32 %v3548_v16, %v1588_v30 }
0x2a6b   :  { %v3761_v17 = vpop.f32.mrb[40].mxu1 }
0x2a6c   :  { %v1710_v19 = vpop.f32.mrb[41].mxu1  ;;  %v2493_v32 = vmul.f32 -1.442695, %v1589_v10 }
0x2a6d   :  { %v3763_v36 = vpop.f32.mrb[42].mxu1 }
0x2a6e   :  { %v3765_v38 = vpop.f32.mrb[43].mxu1 }
0x2a6f   :  { %v1787_v40 = vpop.f32.mrb[44].mxu0 }
0x2a70   :  { %v1793_v41 = vadd.f32 %v1787_v40, %v1710_v19  ;;  %v2796_v42 = vpop.f32.mrb[45].mxu0 }
0x2a71   :  { %v1790_v46 = vpop.f32.mrb[46].mxu0 }
0x2a72   :  { %v1800_v2 = vadd.f32 %v3770_v39, %v1793_v41  ;;  %v2797_v47 = vpop.f32.mrb[47].mxu0 }
0x2a74   :  { %3010 = vtanh.f32 %v1800_v2  ;;  %v2503_v49 = vmul.f32 -1.442695, %v1800_v2 }
0x2a76   :  { %3012 = vpow2.f32 %v2503_v49 }
0x2a7e   :  { %v3011_v48 = vpop.eup %3010 }
0x2a7f   :  { %1810 = vrot.lane.b32.xlu0 %v3011_v48, %s3134_s1 }
0x2a80   :  { %v3013_v50 = vpop.eup %3012 }
0x2a81   :  { %v1804_v6 = vadd.f32 1.0, %v3013_v50 }
0x2a83   :  { %3014 = vrcp.f32 %v1804_v6 }
0x2a8d   :  { %v3015_v51 = vpop.eup %3014 }
0x2a8e   :  { %v1808_v54 = vmul.f32 0.0, %v3015_v51 }
0x2af1   :  { %v1811_v12 = vpop.permute.xlu0 %1810 }
0x2af2   :  { %v1813_v53 = vmul.f32 %v3015_v51, %v1811_v12 }
0x2af4   :  { %1815 = vrot.lane.b32.xlu1 %v1813_v53, %s3135_s16 }
0x2b66   :  { %v1816_v3 = vpop.permute.xlu1 %1815 }
0x2b67   :  { %v3775_v31 = vadd.f32 %v1816_v3, %v1808_v54 }
0x2b69   :  { %3016 = vtanh.f32 %v3775_v31 }
0x2b6a   :  { %3018 = vtanh.f32 %v1589_v10 }
0x2b6b   :  { %3020 = vpow2.f32 %v2493_v32 }
0x2b73   :  { %v3017_v5 = vpop.eup %3016 }
0x2b74   :  { %1821 = vrot.lane.b32.xlu0 %v3017_v5, %s3134_s1  ;;  %v3019_v20 = vpop.eup %3018 }
0x2b75   :  { %v3021_v21 = vpop.eup %3020 }
0x2b76   :  { %v1593_v57 = vadd.f32 1.0, %v3021_v21 }
0x2b78   :  { %1599 = vrot.lane.b32.xlu0 %v3019_v20, %s3134_s1  ;;  %3022 = vrcp.f32 %v1593_v57 }
0x2b82   :  { %v3023_v16 = vpop.eup %3022 }
0x2b83   :  { %v1597_v4 = vmul.f32 %v3023_v16, %v1540_v62 }
0x2be6   :  { %v1822_v18 = vpop.permute.xlu0 %1821 }
0x2be7   :  { %v1824_v58 = vmul.f32 %v3015_v51, %v1822_v18 }
0x2be9   :  { %v1825_v22 = vsel %vm272_vm4, %v1824_v58, 0.0 }
0x2bea   :  { %v1827_v56 = vpack.c.bf16 %v1825_v22, %v1825_v22  ;;  %v1600_v61 = vpop.permute.xlu0 %1599 }
0x2beb   :  { %v1602_v15 = vmul.f32 %v3023_v16, %v1600_v61 }
0x2bec   :  { %1829 = vrot.lane.b32.xlu1 %v1827_v56, %s3135_s16 }
0x2bed   :  { %1604 = vrot.lane.b32.xlu0 %v1602_v15, %s3135_s16 }
0x2c5e   :  { %v1830_v63 = vpop.permute.xlu1 %1829 }
0x2c5f   :  { %2803 = vmatmul.mubr.msk.bf16.vlgmr.msra.gmra.mrb[48].mxu0 %vm191_vm5, %v1830_v63  ;;  %v1605_v7 = vpop.permute.xlu0 %1604 }
0x2c60   :  { %v1607_v29 = vadd.f32 %v1605_v7, %v1597_v4  ;;  %2815 = vmatpush3.bf16.msra.mxu0 %v3734_v28  ;;  %2818 = vmatprep.mubr.msk.bf16.mxu0 %vm3132_vm0, %v3131_v0 }
0x2c61   :  { %2816 = vmatprep.subr.bf16.mxu0 %v3131_v0 }
0x2c62   :  { %3024 = vtanh.f32 %v1607_v29 }
0x2c64   :  { %2817 = vmatpush3.bf16.msra.mxu0 %v3741_v14 }
0x2c65   :  { %2830 = vmatprep.subr.bf16.mxu0 %v3131_v0 }
0x2c6c   :  { %v3025_v24 = vpop.eup %3024 }
0x2c6d   :  { %1610 = vrot.lane.b32.xlu0 %v3025_v24, %s3134_s1 }
0x2c71   :  { %1648 = vrot.lane.b32.xlu0 %v1638_v60, %s3135_s16 }
0x2cdf   :  { %v1611_v52 = vpop.permute.xlu0 %1610 }
0x2ce0   :  { %v1613_v25 = vmul.f32 %v3023_v16, %v1611_v52 }
0x2ce2   :  { %v1614_v30 = vsel %vm839_vm1, %v1613_v25, 0.0 }
0x2ce3   :  { %v1626_v1 = vmul.f32 %v3699_v59, %v1614_v30  ;;  %v1649_v35 = vpop.permute.xlu0 %1648 }
0x2ce4   :  { %2786 = vmatprep.mubr.msk.bf16.mxu1 %vm191_vm5, %v1649_v35 }
0x2ce5   :  { %v1639_v19 = vpack.c.bf16 %v1626_v1, %v1625_v33 }
0x2d32   :  { %v1868_v40 = vpop.f32.mrb[48].mxu0 }
0x2d33   :  { %v1874_v34 = vadd.f32 %v1868_v40, %v3765_v38  ;;  %v2804_v13 = vpop.f32.mrb[49].mxu0  ;;  %v1826_v38 = vsel %vm272_vm4, %v3775_v31, 0.0 }
0x2d34   :  { %v1871_v60 = vpop.f32.mrb[50].mxu0 }
0x2d35   :  { %v1875_v41 = vadd.f32 %v3770_v39, %v1874_v34  ;;  %v2805_v26 = vpop.f32.mrb[51].mxu0 }
0x2d37   :  { %3026 = vtanh.f32 %v1875_v41  ;;  %v2505_v46 = vmul.f32 -1.442695, %v1875_v41 }
0x2d39   :  { %3028 = vpow2.f32 %v2505_v46 }
0x2d41   :  { %v3027_v42 = vpop.eup %3026 }
0x2d42   :  { %1885 = vrot.lane.b32.xlu1 %v3027_v42, %s3134_s1 }
0x2d43   :  { %v3029_v2 = vpop.eup %3028 }
0x2d44   :  { %v1879_v59 = vadd.f32 1.0, %v3029_v2 }
0x2d46   :  { %3030 = vrcp.f32 %v1879_v59 }
0x2d50   :  { %v3031_v47 = vpop.eup %3030 }
0x2d51   :  { %v1883_v50 = vmul.f32 %v3031_v47, %v1826_v38 }
0x2db4   :  { %v1886_v48 = vpop.permute.xlu1 %1885 }
0x2db5   :  { %v1888_v49 = vmul.f32 %v3031_v47, %v1886_v48 }
0x2db7   :  { %1890 = vrot.lane.b32.xlu1 %v1888_v49, %s3135_s16 }
0x2e29   :  { %v1891_v6 = vpop.permute.xlu1 %1890 }
0x2e2a   :  { %v1893_v51 = vadd.f32 %v1891_v6, %v1883_v50 }
0x2e2c   :  { %3032 = vtanh.f32 %v1893_v51 }
0x2e36   :  { %v3033_v12 = vpop.eup %3032 }
0x2e37   :  { %1896 = vrot.lane.b32.xlu1 %v3033_v12, %s3134_s1 }
0x2e3b   :  { %1650 = vrot.lane.b32.xlu1 %v1639_v19, %s3135_s16 }
0x2ea9   :  { %v1897_v53 = vpop.permute.xlu1 %1896 }
0x2eaa   :  { %v1899_v54 = vmul.f32 %v3031_v47, %v1897_v53 }
0x2eac   :  { %v1900_v3 = vsel %vm353_vm7, %v1899_v54, %v1825_v22 }
0x2ead   :  { %v1651_v10 = vpop.permute.xlu1 %1650  ;;  %v1902_v5 = vpack.c.bf16 %v1900_v3, %v1900_v3 }
0x2eae   :  { %2787 = vmatmul.mubr.msk.bf16.gmra.mrb[44].mxu1 %vm191_vm5, %v1651_v10 }
0x2eaf   :  { %1904 = vrot.lane.b32.xlu0 %v1902_v5, %s3135_s16  ;;  %2810 = vmatprep.mubr.msk.bf16.mxu1 %vm3132_vm0, %v3131_v0 }
0x2f21   :  { %v1905_v37 = vpop.permute.xlu0 %1904 }
0x2f22   :  { %2811 = vmatmul.mubr.msk.bf16.vlgmr.msra.gmra.mrb[48].mxu1 %vm191_vm5, %v1905_v37 }
0x2f23   :  { %2823 = vmatpush3.bf16.msra.mxu1 %v3734_v28  ;;  %2826 = vmatprep.mubr.msk.bf16.mxu1 %vm3132_vm0, %v3131_v0 }
0x2f24   :  { %2824 = vmatprep.subr.bf16.mxu1 %v3131_v0 }
0x2f27   :  { %2825 = vmatpush3.bf16.msra.mxu1 %v3741_v14 }
0x2f28   :  { %2838 = vmatprep.subr.bf16.mxu1 %v3131_v0 }
0x2f81   :  { %v3831_v31 = vpop.f32.mrb[44].mxu1 }
0x2f82   :  { %v3833_v20 = vpop.f32.mrb[45].mxu1 }
0x2f83   :  { %v3835_v32 = vpop.f32.mrb[46].mxu1 }
0x2f84   :  { %v3837_v21 = vpop.f32.mrb[47].mxu1 }
0x2ff5   :  { %v1943_v57 = vpop.f32.mrb[48].mxu1 }
0x2ff6   :  { %v1949_v18 = vadd.f32 %v3761_v17, %v1943_v57  ;;  %v2812_v58 = vpop.f32.mrb[49].mxu1  ;;  %v1901_v17 = vsel %vm353_vm7, %v1893_v51, %v1826_v38 }
0x2ff7   :  { %v1946_v22 = vpop.f32.mrb[50].mxu1 }
0x2ff8   :  { %v1950_v16 = vadd.f32 %v3770_v39, %v1949_v18  ;;  %v2813_v56 = vpop.f32.mrb[51].mxu1 }
0x2ffa   :  { %3034 = vtanh.f32 %v1950_v16  ;;  %v2507_v15 = vmul.f32 -1.442695, %v1950_v16 }
0x2ffc   :  { %3036 = vpow2.f32 %v2507_v15 }
0x3004   :  { %v3035_v61 = vpop.eup %3034 }
0x3005   :  { %1960 = vrot.lane.b32.xlu1 %v3035_v61, %s3134_s1 }
0x3006   :  { %v3037_v62 = vpop.eup %3036 }
0x3007   :  { %v1954_v63 = vadd.f32 1.0, %v3037_v62 }
0x3009   :  { %3038 = vrcp.f32 %v1954_v63 }
0x3013   :  { %v3039_v4 = vpop.eup %3038 }
0x3014   :  { %v1958_v24 = vmul.f32 %v3039_v4, %v1901_v17 }
0x3077   :  { %v1961_v7 = vpop.permute.xlu1 %1960 }
0x3078   :  { %v1963_v29 = vmul.f32 %v3039_v4, %v1961_v7 }
0x307a   :  { %1965 = vrot.lane.b32.xlu0 %v1963_v29, %s3135_s16 }
0x30ec   :  { %v1966_v52 = vpop.permute.xlu0 %1965 }
0x30ed   :  { %v1968_v55 = vadd.f32 %v1966_v52, %v1958_v24 }
0x30ef   :  { %3040 = vtanh.f32 %v1968_v55 }
0x30f9   :  { %v3041_v25 = vpop.eup %3040 }
0x30fa   :  { %1971 = vrot.lane.b32.xlu1 %v3041_v25, %s3134_s1 }
0x316c   :  { %v1972_v30 = vpop.permute.xlu1 %1971 }
0x316d   :  { %v1974_v33 = vmul.f32 %v3039_v4, %v1972_v30 }
0x316f   :  { %v1975_v1 = vsel %vm434_vm9, %v1974_v33, %v1900_v3 }
0x3170   :  { %v1977_v35 = vpack.c.bf16 %v1975_v1, %v1975_v1 }
0x3172   :  { %1979 = vrot.lane.b32.xlu0 %v1977_v35, %s3135_s16 }
0x31e4   :  { %v1980_v19 = vpop.permute.xlu0 %1979 }
0x31e5   :  { %2819 = vmatmul.mubr.msk.bf16.vlgmr.msra.gmra.mrb[52].mxu0 %vm191_vm5, %v1980_v19 }
0x31e6   :  { %2831 = vmatpush3.bf16.msra.mxu0 %v3734_v28  ;;  %2834 = vmatprep.mubr.msk.bf16.mxu0 %vm3132_vm0, %v3131_v0 }
0x31e7   :  { %2832 = vmatprep.subr.bf16.mxu0 %v3131_v0 }
0x31ea   :  { %2833 = vmatpush3.bf16.msra.mxu0 %v3741_v14 }
0x31eb   :  { %2846 = vmatprep.subr.bf16.mxu0 %v3131_v0 }
0x32b8   :  { %v2018_v8 = vpop.f32.mrb[52].mxu0 }
0x32b9   :  { %v2024_v40 = vadd.f32 %v3763_v36, %v2018_v8  ;;  %v2820_v34 = vpop.f32.mrb[53].mxu0  ;;  %v1976_v36 = vsel %vm434_vm9, %v1968_v55, %v1901_v17 }
0x32ba   :  { %v2021_v13 = vpop.f32.mrb[54].mxu0 }
0x32bb   :  { %v2025_v60 = vadd.f32 %v3770_v39, %v2024_v40  ;;  %v2821_v41 = vpop.f32.mrb[55].mxu0 }
0x32bd   :  { %3042 = vtanh.f32 %v2025_v60  ;;  %v2509_v42 = vmul.f32 -1.442695, %v2025_v60 }
0x32bf   :  { %3044 = vpow2.f32 %v2509_v42 }
0x32c7   :  { %v3043_v26 = vpop.eup %3042 }
0x32c8   :  { %2035 = vrot.lane.b32.xlu1 %v3043_v26, %s3134_s1 }
0x32c9   :  { %v3045_v46 = vpop.eup %3044 }
0x32ca   :  { %v2029_v2 = vadd.f32 1.0, %v3045_v46 }
0x32cc   :  { %3046 = vrcp.f32 %v2029_v2 }
0x32d6   :  { %v3047_v59 = vpop.eup %3046 }
0x32d7   :  { %v2033_v49 = vmul.f32 %v3047_v59, %v1976_v36 }
0x333a   :  { %v2036_v47 = vpop.permute.xlu1 %2035 }
0x333b   :  { %v2038_v48 = vmul.f32 %v3047_v59, %v2036_v47 }
0x333d   :  { %2040 = vrot.lane.b32.xlu0 %v2038_v48, %s3135_s16 }
0x33af   :  { %v2041_v38 = vpop.permute.xlu0 %2040 }
0x33b0   :  { %v2043_v50 = vadd.f32 %v2041_v38, %v2033_v49 }
0x33b2   :  { %3048 = vtanh.f32 %v2043_v50 }
0x33bc   :  { %v3049_v6 = vpop.eup %3048 }
0x33bd   :  { %2046 = vrot.lane.b32.xlu1 %v3049_v6, %s3134_s1 }
0x342f   :  { %v2047_v51 = vpop.permute.xlu1 %2046 }
0x3430   :  { %v2049_v12 = vmul.f32 %v3047_v59, %v2047_v51 }
0x3432   :  { %v2050_v53 = vsel %vm515_vm11, %v2049_v12, %v1975_v1 }
0x3433   :  { %v2052_v54 = vpack.c.bf16 %v2050_v53, %v2050_v53 }
0x3435   :  { %2054 = vrot.lane.b32.xlu0 %v2052_v54, %s3135_s16 }
0x34a7   :  { %v2055_v3 = vpop.permute.xlu0 %2054 }
0x34a8   :  { %2827 = vmatmul.mubr.msk.bf16.vlgmr.msra.gmra.mrb[52].mxu1 %vm191_vm5, %v2055_v3 }
0x34a9   :  { %2839 = vmatpush3.bf16.msra.mxu1 %v3734_v28  ;;  %2842 = vmatprep.mubr.msk.bf16.mxu1 %vm3132_vm0, %v3131_v0 }
0x34aa   :  { %2840 = vmatprep.subr.bf16.mxu1 %v3131_v0 }
0x34ad   :  { %2841 = vmatpush3.bf16.msra.mxu1 %v3741_v14 }
0x34ae   :  { %2854 = vmatprep.subr.bf16.mxu1 %v3131_v0 }
0x357b   :  { %v2093_v43 = vpop.f32.mrb[52].mxu1 }
0x357c   :  { %v2099_v10 = vadd.f32 %v2093_v43, %v3833_v20  ;;  %v2828_v5 = vpop.f32.mrb[53].mxu1  ;;  %v2051_v20 = vsel %vm515_vm11, %v2043_v50, %v1976_v36 }
0x357d   :  { %v2096_v37 = vpop.f32.mrb[54].mxu1 }
0x357e   :  { %v2100_v57 = vadd.f32 %v3770_v39, %v2099_v10  ;;  %v2829_v18 = vpop.f32.mrb[55].mxu1 }
0x3580   :  { %3050 = vtanh.f32 %v2100_v57  ;;  %v2511_v22 = vmul.f32 -1.442695, %v2100_v57 }
0x3582   :  { %3052 = vpow2.f32 %v2511_v22 }
0x358a   :  { %v3051_v58 = vpop.eup %3050 }
0x358b   :  { %2110 = vrot.lane.b32.xlu1 %v3051_v58, %s3134_s1 }
0x358c   :  { %v3053_v16 = vpop.eup %3052 }
0x358d   :  { %v2104_v56 = vadd.f32 1.0, %v3053_v16 }
0x358f   :  { %3054 = vrcp.f32 %v2104_v56 }
0x3599   :  { %v3055_v61 = vpop.eup %3054 }
0x359a   :  { %v2108_v63 = vmul.f32 %v3055_v61, %v2051_v20 }
0x35fd   :  { %v2111_v15 = vpop.permute.xlu1 %2110 }
0x35fe   :  { %v2113_v62 = vmul.f32 %v3055_v61, %v2111_v15 }
0x3600   :  { %2115 = vrot.lane.b32.xlu0 %v2113_v62, %s3135_s16 }
0x3672   :  { %v2116_v4 = vpop.permute.xlu0 %2115 }
0x3673   :  { %v2118_v7 = vadd.f32 %v2116_v4, %v2108_v63 }
0x3675   :  { %3056 = vtanh.f32 %v2118_v7 }
0x367f   :  { %v3057_v29 = vpop.eup %3056 }
0x3680   :  { %2121 = vrot.lane.b32.xlu1 %v3057_v29, %s3134_s1 }
0x36f2   :  { %v2122_v17 = vpop.permute.xlu1 %2121 }
0x36f3   :  { %v2124_v24 = vmul.f32 %v3055_v61, %v2122_v17 }
0x36f5   :  { %v2125_v52 = vsel %vm596_vm13, %v2124_v24, %v2050_v53 }
0x36f6   :  { %v2127_v55 = vpack.c.bf16 %v2125_v52, %v2125_v52 }
0x36f8   :  { %2129 = vrot.lane.b32.xlu0 %v2127_v55, %s3135_s16 }
0x376a   :  { %v2130_v25 = vpop.permute.xlu0 %2129 }
0x376b   :  { %2835 = vmatmul.mubr.msk.bf16.vlgmr.msra.gmra.mrb[56].mxu0 %vm191_vm5, %v2130_v25 }
0x376c   :  { %2847 = vmatpush3.bf16.msra.mxu0 %v3734_v28  ;;  %2850 = vmatprep.mubr.msk.bf16.mxu0 %vm3132_vm0, %v3131_v0 }
0x376d   :  { %2848 = vmatprep.subr.bf16.mxu0 %v3131_v0 }
0x3770   :  { %2849 = vmatpush3.bf16.msra.mxu0 %v3741_v14 }
0x383e   :  { %v2168_v11 = vpop.f32.mrb[56].mxu0 }
0x383f   :  { %v2174_v30 = vadd.f32 %v2168_v11, %v3837_v21  ;;  %v2836_v33 = vpop.f32.mrb[57].mxu0  ;;  %v2126_v21 = vsel %vm596_vm13, %v2118_v7, %v2051_v20 }
0x3840   :  { %v2171_v1 = vpop.f32.mrb[58].mxu0 }
0x3841   :  { %v2175_v35 = vadd.f32 %v3770_v39, %v2174_v30  ;;  %v2837_v19 = vpop.f32.mrb[59].mxu0  ;;  %v2888_v1 = vld [vmem:[%s3961_s13] sm:$0xff]  }
0x3843   :  { %3058 = vtanh.f32 %v2175_v35  ;;  %v2513_v28 = vmul.f32 -1.442695, %v2175_v35  ;;  %v2889_v35 = vld [vmem:[%s3961_s13 + $0x8] sm:$0xff]  }
0x3845   :  { %3060 = vpow2.f32 %v2513_v28 }
0x384d   :  { %v3059_v8 = vpop.eup %3058 }
0x384e   :  { %2185 = vrot.lane.b32.xlu1 %v3059_v8, %s3134_s1 }
0x384f   :  { %v3061_v40 = vpop.eup %3060 }
0x3850   :  { %v2179_v34 = vadd.f32 1.0, %v3061_v40 }
0x3852   :  { %3062 = vrcp.f32 %v2179_v34 }
0x385c   :  { %v3063_v13 = vpop.eup %3062 }
0x385d   :  { %v2183_v41 = vmul.f32 %v3063_v13, %v2126_v21 }
0x38c0   :  { %v2186_v60 = vpop.permute.xlu1 %2185 }
0x38c1   :  { %v2188_v14 = vmul.f32 %v3063_v13, %v2186_v60 }
0x38c3   :  { %2190 = vrot.lane.b32.xlu0 %v2188_v14, %s3135_s16 }
0x3935   :  { %v2191_v26 = vpop.permute.xlu0 %2190 }
0x3936   :  { %v2193_v42 = vadd.f32 %v2191_v26, %v2183_v41 }
0x3938   :  { %3064 = vtanh.f32 %v2193_v42 }
0x3942   :  { %v3065_v46 = vpop.eup %3064 }
0x3943   :  { %2196 = vrot.lane.b32.xlu1 %v3065_v46, %s3134_s1 }
0x39b5   :  { %v2197_v2 = vpop.permute.xlu1 %2196 }
0x39b6   :  { %v2199_v59 = vmul.f32 %v3063_v13, %v2197_v2 }
0x39b8   :  { %v2200_v47 = vsel %vm677_vm15, %v2199_v59, %v2125_v52 }
0x39b9   :  { %v2202_v48 = vpack.c.bf16 %v2200_v47, %v2200_v47 }
0x39bb   :  { %2204 = vrot.lane.b32.xlu0 %v2202_v48, %s3135_s16 }
0x3a2d   :  { %v2205_v36 = vpop.permute.xlu0 %2204 }
0x3a2e   :  { %2843 = vmatmul.mubr.msk.bf16.vlgmr.msra.gmra.mrb[56].mxu1 %vm191_vm5, %v2205_v36 }
0x3a2f   :  { %2858 = vmatprep.mubr.msk.bf16.mxu1 %vm3132_vm0, %v3131_v0  ;;  %2855 = vmatpush3.bf16.msra.mxu1 %v2888_v1  ;;  %vm2425_vm0 = vcmask 130048  }
0x3a30   :  { %2856 = vmatprep.subr.bf16.mxu1 %v3131_v0  ;;  %v2518_v0 = vld [vmem:[%s3962_s14] ss:$0 sm:$0xff] }
0x3a33   :  { %2857 = vmatpush3.bf16.msra.mxu1 %v2889_v35 }
0x3b01   :  { %v2243_v45 = vpop.f32.mrb[56].mxu1 }
0x3b02   :  { %v2249_v49 = vadd.f32 %v3831_v31, %v2243_v45  ;;  %v2844_v38 = vpop.f32.mrb[57].mxu1  ;;  %v2201_v31 = vsel %vm677_vm15, %v2193_v42, %v2126_v21 }
0x3b03   :  { %v2246_v50 = vpop.f32.mrb[58].mxu1 }
0x3b04   :  { %v2250_v6 = vadd.f32 %v3770_v39, %v2249_v49  ;;  %v2845_v51 = vpop.f32.mrb[59].mxu1 }
0x3b06   :  { %3066 = vtanh.f32 %v2250_v6  ;;  %v2515_v53 = vmul.f32 -1.442695, %v2250_v6 }
0x3b08   :  { %3068 = vpow2.f32 %v2515_v53 }
0x3b10   :  { %v3067_v12 = vpop.eup %3066 }
0x3b11   :  { %2260 = vrot.lane.b32.xlu1 %v3067_v12, %s3134_s1 }
0x3b12   :  { %v3069_v54 = vpop.eup %3068 }
0x3b13   :  { %v2254_v3 = vadd.f32 1.0, %v3069_v54 }
0x3b15   :  { %3070 = vrcp.f32 %v2254_v3 }
0x3b1f   :  { %v3071_v43 = vpop.eup %3070 }
0x3b20   :  { %v2258_v37 = vmul.f32 %v3071_v43, %v2201_v31 }
0x3b83   :  { %v2261_v10 = vpop.permute.xlu1 %2260 }
0x3b84   :  { %v2263_v5 = vmul.f32 %v3071_v43, %v2261_v10 }
0x3b86   :  { %2265 = vrot.lane.b32.xlu0 %v2263_v5, %s3135_s16 }
0x3bf8   :  { %v2266_v57 = vpop.permute.xlu0 %2265 }
0x3bf9   :  { %v2268_v18 = vadd.f32 %v2266_v57, %v2258_v37 }
0x3bfb   :  { %3072 = vtanh.f32 %v2268_v18 }
0x3c05   :  { %v3073_v58 = vpop.eup %3072 }
0x3c06   :  { %2271 = vrot.lane.b32.xlu1 %v3073_v58, %s3134_s1 }
0x3c78   :  { %v2272_v22 = vpop.permute.xlu1 %2271 }
0x3c79   :  { %v2274_v16 = vmul.f32 %v3071_v43, %v2272_v22 }
0x3c7b   :  { %v2275_v56 = vsel %vm758_vm6, %v2274_v16, %v2200_v47 }
0x3c7c   :  { %v2277_v61 = vpack.c.bf16 %v2275_v56, %v2275_v56 }
0x3c7e   :  { %2279 = vrot.lane.b32.xlu0 %v2277_v61, %s3135_s16 }
0x3cf0   :  { %v2280_v15 = vpop.permute.xlu0 %2279 }
0x3cf1   :  { %2851 = vmatmul.mubr.msk.bf16.vlgmr.msra.gmra.mrb[60].mxu0 %vm191_vm5, %v2280_v15 }
0x3dc4   :  { %v2318_v9 = vpop.f32.mrb[60].mxu0 }
0x3dc5   :  { %v2324_v62 = vadd.f32 %v3835_v32, %v2318_v9  ;;  %v2852_v20 = vpop.f32.mrb[61].mxu0 }
0x3dc6   :  { %v2321_v63 = vpop.f32.mrb[62].mxu0 }
0x3dc7   :  { %v2325_v4 = vadd.f32 %v3770_v39, %v2324_v62  ;;  %v2853_v7 = vpop.f32.mrb[63].mxu0  ;;  %v2276_v39 = vsel %vm758_vm6, %v2268_v18, %v2201_v31 }
0x3dc9   :  { %3074 = vtanh.f32 %v2325_v4  ;;  %v2517_v17 = vmul.f32 -1.442695, %v2325_v4 }
0x3dcb   :  { %3076 = vpow2.f32 %v2517_v17 }
0x3dd3   :  { %v3075_v29 = vpop.eup %3074 }
0x3dd4   :  { %2335 = vrot.lane.b32.xlu1 %v3075_v29, %s3134_s1 }
0x3dd5   :  { %v3077_v24 = vpop.eup %3076 }
0x3dd6   :  { %v2329_v52 = vadd.f32 1.0, %v3077_v24 }
0x3dd8   :  { %3078 = vrcp.f32 %v2329_v52 }
0x3de2   :  { %v3079_v55 = vpop.eup %3078 }
0x3de3   :  { %v2333_v32 = vmul.f32 %v3079_v55, %v2276_v39 }
0x3e46   :  { %v2336_v25 = vpop.permute.xlu1 %2335 }
0x3e47   :  { %v2338_v11 = vmul.f32 %v3079_v55, %v2336_v25 }
0x3e49   :  { %2340 = vrot.lane.b32.xlu0 %v2338_v11, %s3135_s16 }
0x3e4d   :  { %2351 = vrot.lane.b32.xlu0 %v3674_v27, %s3134_s1 }
0x3ebb   :  { %v2341_v30 = vpop.permute.xlu0 %2340 }
0x3ebc   :  { %v2343_v33 = vadd.f32 %v2341_v30, %v2333_v32 }
0x3ebe   :  { %3080 = vtanh.f32 %v2343_v33 }
0x3ebf   :  { %v2352_v8 = vpop.permute.xlu0 %2351 }
0x3ec8   :  { %v3081_v19 = vpop.eup %3080 }
0x3ec9   :  { %2346 = vrot.lane.b32.xlu1 %v3081_v19, %s3134_s1  ;;  %s2433_s1 = sshll.u32 %s3137_s3, 4  ;;  %s2434_s1 = int_to_ptr.vmem [resolvable:$true] %s2433_s1 }
0x3eca   :  { %s3104_s28 = scalar_lea.vmem %s2434_s1, 128  ;;  %p3109_p9 = scmp.lt.s32.totalorder %s2434_s1, %s2434_s1 }
0x3ecb   :  { %p3105_p8 = scmp.ne.s32.totalorder %s2434_s1, %s3104_s28  ;;  %p3110_p10 = scmp.lt.s32.totalorder %s3104_s28, %s3104_s28 }
0x3ecd   :  { %p3111_p11 = por %p3110_p10, %p3109_p9 }
0x3ecf   :  { %p3112_p12 = pnand %p3111_p11, %p3105_p8 }
0x3f3b   :  { %v2347_v44 = vpop.permute.xlu1 %2346 }
0x3f3c   :  { %v2349_v27 = vmul.f32 %v3079_v55, %v2347_v44 }
0x3f3e   :  { %v2350_v28 = vsel %vm839_vm1, %v2349_v27, 0.0 }
0x3f3f   :  { %v2354_v40 = vmul.f32 %v2352_v8, %v2350_v28 }
0x3f41   :  { %v2355_v34 = vpack.c.bf16 %v2354_v40, %v2354_v40 }
0x3f43   :  { %2368 = vrot.lane.b32.xlu1 %v2355_v34, %s3135_s16 }
0x3fb5   :  { %v2369_v13 = vpop.permute.xlu1 %2368 }
0x3fb6   :  { %2859 = vmatmul.mubr.msk.bf16.vlgmr.msra.gmra.mrb[60].mxu1 %vm191_vm5, %v2369_v13 }
0x4089   :  { %v2419_v60 = vpop.f32.mrb[60].mxu1 }
0x408a   :  { %v2420_v14 = vadd.f32 %v2518_v0, %v2419_v60  ;;  %v2860_v21 = vpop.f32.mrb[61].mxu1 }
0x408b   :  { %v2422_v23 = vpop.f32.mrb[62].mxu1 }
0x408c   :  { %v2861_v41 = vpop.f32.mrb[63].mxu1  ;;  %2426 = vst.msk [vmem:[#allocation5] sm:$0xff] %vm2425_vm0, %v2420_v14 }
0x408d   :  { %3115 = shalt.err (!%p3112_p12)
}
0x408e   :  { %s3116_s14 = scalar_lea.hbm %s3963_s15, 128 }
0x408f   :  { %p3117_p13 = scmp.ne.s32.totalorder %s3963_s15, %s3116_s14  ;;  %p3120_p0 = scmp.lt.u32.totalorder %s3116_s14, %s3963_s15 }
0x4091   :  { %p3122_p1 = pnand %p3120_p0, %p3117_p13 }
0x4093   :  { %3125 = shalt.err (!%p3122_p1)
}
0x4094   :  { %2436 = dma.vmem_to_hbm [thread:$0]  %s2434_s1, 128, %s3963_s15, [#allocation4]  }
0x4095   :  { %3128 = dma.done.wait [#allocation4], 128  }
0x4096   :  { %3129 = vsyncadd [#allocation4], 4294967168 }
0x4097   :  { %2440 = vsyncpa [#allocation3], 1 }
0x4098   :  { %2441 = vsyncpa [#allocation4], 1 }

</bundles_post_ra>
